<compile_context>
chip_gen: v6e
topology: v6e:2x2x1
jax: 0.10.0
libtpu: 0.0.40
codegen_flags: <defaults>
</compile_context>

<pallas_src>
import functools
import math

import jax
import jax.numpy as jnp
from jax.experimental import pallas as pl
from jax.experimental.pallas import tpu as pltpu


# ------------------------------ helpers ---------------------------------------

def _round_up(x, m):
    return ((x + m - 1) // m) * m


def _pick_tile(dim, cap, align):
    """Largest tile <= cap that divides `dim` and is a multiple of `align`.
    Falls back to the full dimension (block == full dim is always legal);
    callers pad dims so that `align` always divides them."""
    if dim <= cap:
        return dim
    t = (cap // align) * align
    while t >= align:
        if dim % t == 0:
            return t
        t -= align
    return dim


# ------------------------------ kernels ---------------------------------------

def _matmul_bias_kernel(x_ref, w_ref, b_ref, o_ref, acc_ref):
    """y = x @ w + b.  x/w are bf16 in HBM, K-tiled, f32 VMEM accumulator."""
    @pl.when(pl.program_id(2) == 0)
    def _():
        acc_ref[...] = jnp.zeros(acc_ref.shape, acc_ref.dtype)

    acc_ref[...] += jnp.dot(x_ref[...], w_ref[...],
                            preferred_element_type=jnp.float32)

    @pl.when(pl.program_id(2) == pl.num_programs(2) - 1)
    def _():
        o_ref[...] = (acc_ref[...] + b_ref[...]).astype(o_ref.dtype)


def _proj_add_ln_kernel(x_ref, w_ref, b_ref, r_ref, g_ref, bln_ref, o_ref):
    """out = LayerNorm(resid + x @ w + b).  x cast to bf16 for the MXU."""
    y = jnp.dot(x_ref[...].astype(jnp.bfloat16), w_ref[...],
                preferred_element_type=jnp.float32) + b_ref[...]
    h = r_ref[...] + y
    mean = jnp.mean(h, axis=-1, keepdims=True)
    var = jnp.mean((h - mean) ** 2, axis=-1, keepdims=True)
    o_ref[...] = (h - mean) * jax.lax.rsqrt(var + 1e-5) * g_ref[...] + bln_ref[...]


def _ffn_add_ln_kernel(x_ref, w1_ref, b1_ref, w2_ref, b2_ref, g_ref, bln_ref,
                       o_ref, acc_ref):
    """out = LayerNorm(x + (ReLU(x@w1+b1) @ w2 + b2)), d_ff tiled on axis 1."""
    f = pl.program_id(1)

    @pl.when(f == 0)
    def _():
        acc_ref[...] = jnp.zeros(acc_ref.shape, acc_ref.dtype)

    xb = x_ref[...].astype(jnp.bfloat16)
    h1 = jnp.dot(xb, w1_ref[...], preferred_element_type=jnp.float32) + b1_ref[...]
    h1 = jnp.maximum(h1, 0.0)
    acc_ref[...] += jnp.dot(h1.astype(jnp.bfloat16), w2_ref[...],
                            preferred_element_type=jnp.float32)

    @pl.when(f == pl.num_programs(1) - 1)
    def _():
        h = x_ref[...] + acc_ref[...] + b2_ref[...]
        mean = jnp.mean(h, axis=-1, keepdims=True)
        var = jnp.mean((h - mean) ** 2, axis=-1, keepdims=True)
        o_ref[...] = (h - mean) * jax.lax.rsqrt(var + 1e-5) * g_ref[...] + bln_ref[...]


def _attn_kernel(q_ref, k_ref, v_ref, bias_ref, o_ref, m_ref, l_ref, acc_ref,
                 *, num_heads, d_k, scale):
    """Flash-style attention.  One (batch, q-tile) per outer grid point; the
    innermost grid axis walks Sk tiles with an online softmax.  Heads are a
    static in-kernel loop over column slices of the (seq, d_model) blocks, so
    no head-split transposes are ever needed and the output block is written
    lane-dense as (1, tq, d_model)."""
    ki = pl.program_id(2)

    @pl.when(ki == 0)
    def _():
        m_ref[...] = jnp.full(m_ref.shape, -jnp.inf, m_ref.dtype)
        l_ref[...] = jnp.zeros(l_ref.shape, l_ref.dtype)
        acc_ref[...] = jnp.zeros(acc_ref.shape, acc_ref.dtype)

    bias = bias_ref[0]                          # (tq or 1, tk) additive, f32

    for h in range(num_heads):
        lo, hi = h * d_k, (h + 1) * d_k
        qh = q_ref[0, :, lo:hi].astype(jnp.bfloat16)      # (tq, dk)
        kh = k_ref[0, :, lo:hi].astype(jnp.bfloat16)      # (tk, dk)
        vh = v_ref[0, :, lo:hi].astype(jnp.bfloat16)      # (tk, dk)

        s = jax.lax.dot_general(qh, kh, (((1,), (1,)), ((), ())),
                                preferred_element_type=jnp.float32)
        s = s * scale + bias                              # (tq, tk)

        m_prev = m_ref[:, h:h + 1]                        # (tq, 1)
        m_new = jnp.maximum(m_prev, jnp.max(s, axis=-1, keepdims=True))
        alpha = jnp.exp(m_prev - m_new)
        p = jnp.exp(s - m_new)
        l_ref[:, h:h + 1] = alpha * l_ref[:, h:h + 1] + jnp.sum(
            p, axis=-1, keepdims=True)
        acc_ref[:, lo:hi] = alpha * acc_ref[:, lo:hi] + jnp.dot(
            p.astype(jnp.bfloat16), vh, preferred_element_type=jnp.float32)
        m_ref[:, h:h + 1] = m_new

    @pl.when(ki == pl.num_programs(2) - 1)
    def _():
        for h in range(num_heads):
            lo, hi = h * d_k, (h + 1) * d_k
            inv = pl.reciprocal(l_ref[:, h:h + 1], approx=True)
            o_ref[0, :, lo:hi] = (acc_ref[:, lo:hi] * inv).astype(o_ref.dtype)


# ------------------------------ kernel wrappers --------------------------------

def linear(x2d, w, b, *, tm_cap=512, tn_cap=512, tk_cap=1024):
    """Tiled, pipelined y = x @ w + b in bf16 with f32 accumulation.
    M/N/K are zero-padded so tiles always divide (no full-dim fallback)."""
    m, k = x2d.shape
    n = w.shape[1]
    xb = x2d.astype(jnp.bfloat16)
    wb = w.astype(jnp.bfloat16)
    bf = b.astype(jnp.float32)

    mp = _round_up(m, 16)          # bf16 sublane packing
    kp = _round_up(k, 128)
    np_ = _round_up(n, 128)
    if mp != m or kp != k:
        xb = jnp.pad(xb, ((0, mp - m), (0, kp - k)))
    if kp != k or np_ != n:
        wb = jnp.pad(wb, ((0, kp - k), (0, np_ - n)))
    if np_ != n:
        bf = jnp.pad(bf, ((0, np_ - n),))

    tm = _pick_tile(mp, tm_cap, 16)
    tn = _pick_tile(np_, tn_cap, 128)
    tk = _pick_tile(kp, tk_cap, 128)

    out = pl.pallas_call(
        _matmul_bias_kernel,
        grid=(mp // tm, np_ // tn, kp // tk),
        in_specs=[
            pl.BlockSpec((tm, tk), lambda i, j, kk: (i, kk)),
            pl.BlockSpec((tk, tn), lambda i, j, kk: (kk, j)),
            pl.BlockSpec((1, tn), lambda i, j, kk: (0, j)),
        ],
        out_specs=pl.BlockSpec((tm, tn), lambda i, j, kk: (i, j)),
        out_shape=jax.ShapeDtypeStruct((mp, np_), jnp.float32),
        scratch_shapes=[pltpu.VMEM((tm, tn), jnp.float32)],
        compiler_params=pltpu.CompilerParams(
            dimension_semantics=("parallel", "parallel", "arbitrary")),
    )(xb, wb, bf.reshape(1, np_))

    if mp != m or np_ != n:
        out = out[:m, :n]
    return out


def proj_add_layernorm(x2d, w, b, resid2d, gamma, beta, *, tm_cap=512):
    """LayerNorm(resid + x @ w + b).  M-tiled; K == N == d_model kept full
    (required for the LN reduction and small enough to stay VMEM-resident)."""
    m, k = x2d.shape
    n = w.shape[1]
    mp = _round_up(m, 8)
    if mp != m:
        x2d = jnp.pad(x2d, ((0, mp - m), (0, 0)))
        resid2d = jnp.pad(resid2d, ((0, mp - m), (0, 0)))
    tm = _pick_tile(mp, tm_cap, 8)
    wb = w.astype(jnp.bfloat16)

    out = pl.pallas_call(
        _proj_add_ln_kernel,
        grid=(mp // tm,),
        in_specs=[
            pl.BlockSpec((tm, k), lambda i: (i, 0)),
            pl.BlockSpec((k, n), lambda i: (0, 0)),
            pl.BlockSpec((1, n), lambda i: (0, 0)),
            pl.BlockSpec((tm, n), lambda i: (i, 0)),
            pl.BlockSpec((1, n), lambda i: (0, 0)),
            pl.BlockSpec((1, n), lambda i: (0, 0)),
        ],
        out_specs=pl.BlockSpec((tm, n), lambda i: (i, 0)),
        out_shape=jax.ShapeDtypeStruct((mp, n), jnp.float32),
        compiler_params=pltpu.CompilerParams(
            dimension_semantics=("parallel",)),
    )(x2d, wb, b.reshape(1, n), resid2d, gamma.reshape(1, n), beta.reshape(1, n))

    return out[:m] if mp != m else out


def ffn_add_layernorm(x2d, w1, b1, w2, b2, gamma, beta, *,
                      tm_cap=512, tf_cap=512):
    """LayerNorm(x + FF(x)) fully fused, with the d_ff axis tiled so the
    w1/w2 chunks stay small in VMEM (v7x-safe)."""
    m, d = x2d.shape
    dff = w1.shape[1]

    mp = _round_up(m, 8)
    if mp != m:
        x2d = jnp.pad(x2d, ((0, mp - m), (0, 0)))
    dffp = _round_up(dff, 128)
    if dffp != dff:
        w1 = jnp.pad(w1, ((0, 0), (0, dffp - dff)))
        b1 = jnp.pad(b1, ((0, dffp - dff),))
        w2 = jnp.pad(w2, ((0, dffp - dff), (0, 0)))

    tm = _pick_tile(mp, tm_cap, 8)
    tf = _pick_tile(dffp, tf_cap, 128)
    w1b = w1.astype(jnp.bfloat16)
    w2b = w2.astype(jnp.bfloat16)

    out = pl.pallas_call(
        _ffn_add_ln_kernel,
        grid=(mp // tm, dffp // tf),
        in_specs=[
            pl.BlockSpec((tm, d), lambda i, f: (i, 0)),
            pl.BlockSpec((d, tf), lambda i, f: (0, f)),
            pl.BlockSpec((1, tf), lambda i, f: (0, f)),
            pl.BlockSpec((tf, d), lambda i, f: (f, 0)),
            pl.BlockSpec((1, d), lambda i, f: (0, 0)),
            pl.BlockSpec((1, d), lambda i, f: (0, 0)),
            pl.BlockSpec((1, d), lambda i, f: (0, 0)),
        ],
        out_specs=pl.BlockSpec((tm, d), lambda i, f: (i, 0)),
        out_shape=jax.ShapeDtypeStruct((mp, d), jnp.float32),
        scratch_shapes=[pltpu.VMEM((tm, d), jnp.float32)],
        compiler_params=pltpu.CompilerParams(
            dimension_semantics=("parallel", "arbitrary")),
    )(x2d, w1b, b1.reshape(1, dffp), w2b, b2.reshape(1, d),
      gamma.reshape(1, d), beta.reshape(1, d))

    return out[:m] if mp != m else out


def scaled_dot_attention(q_src, q_col, k_src, k_col, v_src, v_col, bias,
                         num_heads, d_model, *, tq_cap=256, tk_cap=256):
    """Flash-style attention reading Q/K/V directly from projection slabs.

    q_src/k_src/v_src: (B, S, C) arrays whose last axis contains the relevant
    projection at column-block index q_col/k_col/v_col (block width d_model).
    bias: additive mask bias of shape (1|B, 1|Sq, Sk), float32.
    Returns (B, Sq, d_model) float32, merged heads (no transposes needed)."""
    assert d_model % num_heads == 0
    b, sq, _ = q_src.shape
    sk = k_src.shape[1]
    d_k = d_model // num_heads
    for src in (q_src, k_src, v_src):
        # Column-block indexing of a fused slab needs a 128-aligned d_model.
        assert src.shape[-1] == d_model or d_model % 128 == 0, (
            "d_model must be a multiple of 128 to index a fused QKV/KV slab")

    tq = _pick_tile(sq, tq_cap, 8)
    tk = _pick_tile(sk, tk_cap, 128)

    bias_b, bias_q, _ = bias.shape
    assert bias_b in (1, b) and bias_q in (1, sq)
    bias_q_blk = tq if bias_q == sq else 1

    def q_map(bb, qi, ki):
        return (bb, qi, q_col)

    def k_map(bb, qi, ki):
        return (bb, ki, k_col)

    def v_map(bb, qi, ki):
        return (bb, ki, v_col)

    def bias_map(bb, qi, ki):
        return (bb if bias_b > 1 else 0, qi if bias_q == sq else 0, ki)

    kernel = functools.partial(_attn_kernel, num_heads=num_heads, d_k=d_k,
                               scale=1.0 / math.sqrt(d_k))
    return pl.pallas_call(
        kernel,
        grid=(b, sq // tq, sk // tk),
        in_specs=[
            pl.BlockSpec((1, tq, d_model), q_map),
            pl.BlockSpec((1, tk, d_model), k_map),
            pl.BlockSpec((1, tk, d_model), v_map),
            pl.BlockSpec((1, bias_q_blk, tk), bias_map),
        ],
        out_specs=pl.BlockSpec((1, tq, d_model), lambda bb, qi, ki: (bb, qi, 0)),
        out_shape=jax.ShapeDtypeStruct((b, sq, d_model), jnp.float32),
        scratch_shapes=[
            pltpu.VMEM((tq, num_heads), jnp.float32),   # running max m
            pltpu.VMEM((tq, num_heads), jnp.float32),   # running sum l
            pltpu.VMEM((tq, d_model), jnp.float32),     # output accumulator
        ],
        compiler_params=pltpu.CompilerParams(
            dimension_semantics=("parallel", "parallel", "arbitrary")),
    )(q_src, k_src, v_src, bias)


# ------------------------------ model pieces -----------------------------------

def self_attention_heads(p, x, bias, num_heads):
    """Fused QKV projection + flash attention; returns merged heads (B,S,D)
    BEFORE the output projection (fused with add+LN by the caller)."""
    b, s, d = x.shape
    qkv = linear(x.reshape(-1, d), p["w_qkv"], p["b_qkv"]).reshape(b, s, 3 * d)
    if d % 128 == 0:
        return scaled_dot_attention(qkv, 0, qkv, 1, qkv, 2, bias, num_heads, d)
    # Fallback for non-128-aligned d_model: split the slab (cheap XLA slices).
    q = qkv[:, :, :d]
    k = qkv[:, :, d:2 * d]
    v = qkv[:, :, 2 * d:]
    return scaled_dot_attention(q, 0, k, 0, v, 0, bias, num_heads, d)


def cross_attention_heads(p, x_q, x_kv, bias, num_heads):
    b, sq, d = x_q.shape
    sk = x_kv.shape[1]
    q = linear(x_q.reshape(-1, d), p["wq"], p["bq"]).reshape(b, sq, d)
    kv = linear(x_kv.reshape(-1, d), p["w_kv"], p["b_kv"]).reshape(b, sk, 2 * d)
    if d % 128 == 0:
        return scaled_dot_attention(q, 0, kv, 0, kv, 1, bias, num_heads, d)
    k = kv[:, :, :d]
    v = kv[:, :, d:]
    return scaled_dot_attention(q, 0, k, 0, v, 0, bias, num_heads, d)


def encoder_layer(p, x, bias, num_heads):
    b, s, d = x.shape
    a = self_attention_heads(p["self_attn"], x, bias, num_heads)
    x = proj_add_layernorm(a.reshape(-1, d), p["self_attn"]["wo"],
                           p["self_attn"]["bo"], x.reshape(-1, d),
                           p["norm1_g"], p["norm1_b"]).reshape(b, s, d)
    x = ffn_add_layernorm(x.reshape(-1, d), p["ff"]["w1"], p["ff"]["b1"],
                          p["ff"]["w2"], p["ff"]["b2"],
                          p["norm2_g"], p["norm2_b"]).reshape(b, s, d)
    return x


def decoder_layer(p, x, enc_out, self_bias, cross_bias, num_heads):
    b, s, d = x.shape
    a = self_attention_heads(p["self_attn"], x, self_bias, num_heads)
    x = proj_add_layernorm(a.reshape(-1, d), p["self_attn"]["wo"],
                           p["self_attn"]["bo"], x.reshape(-1, d),
                           p["norm1_g"], p["norm1_b"]).reshape(b, s, d)
    a = cross_attention_heads(p["cross_attn"], x, enc_out, cross_bias, num_heads)
    x = proj_add_layernorm(a.reshape(-1, d), p["cross_attn"]["wo"],
                           p["cross_attn"]["bo"], x.reshape(-1, d),
                           p["norm2_g"], p["norm2_b"]).reshape(b, s, d)
    x = ffn_add_layernorm(x.reshape(-1, d), p["ff"]["w1"], p["ff"]["b1"],
                          p["ff"]["w2"], p["ff"]["b2"],
                          p["norm3_g"], p["norm3_b"]).reshape(b, s, d)
    return x


def positional_encoding(max_len, d_model):
    position = jnp.arange(max_len, dtype=jnp.float32)[:, None]
    div_term = jnp.exp(
        jnp.arange(0, d_model, 2, dtype=jnp.float32)
        * (-math.log(10000.0) / d_model))
    pe = jnp.zeros((max_len, d_model), dtype=jnp.float32)
    pe = pe.at[:, 0::2].set(jnp.sin(position * div_term))
    pe = pe.at[:, 1::2].set(jnp.cos(position * div_term))
    return pe


def prepare_bias(mask, sk):
    """(B|1, 1, Sq|1, Sk) 0/1 mask -> additive bias (B|1, Sq|1, Sk) float32.
    Neither the head dim nor the batch dim of a shared mask is materialized."""
    m = jnp.asarray(mask, jnp.float32)
    if m.ndim == 4:
        m = m[:, 0]
    if m.ndim == 2:
        m = m[None]
    if m.shape[-1] != sk:
        m = jnp.broadcast_to(m, m.shape[:-1] + (sk,))
    return (m - 1.0) * 1e9


def transformer_forward(params, src, tgt, src_mask, tgt_mask, cross_mask,
                        num_heads):
    pe = params["pe"]
    b, s_src = src.shape
    _, s_tgt = tgt.shape

    src_bias = prepare_bias(src_mask, s_src)
    tgt_bias = prepare_bias(tgt_mask, s_tgt)
    cross_bias = prepare_bias(cross_mask, s_src)

    # Encoder
    enc = jnp.take(params["enc_emb"], src, axis=0) + pe[:s_src][None, :, :]
    for lp in params["enc_layers"]:
        enc = encoder_layer(lp, enc, src_bias, num_heads)

    # Decoder
    dec = jnp.take(params["dec_emb"], tgt, axis=0) + pe[:s_tgt][None, :, :]
    for lp in params["dec_layers"]:
        dec = decoder_layer(lp, dec, enc, tgt_bias, cross_bias, num_heads)

    # Final projection to tgt vocab (N padded to 128 internally)
    bsz, s, d = dec.shape
    logits = linear(dec.reshape(-1, d), params["fc_w"], params["fc_b"])
    return logits.reshape(bsz, s, -1)


# ------------------------------ parameter init ---------------------------------

def _init_linear(key, d_in, d_out):
    k1, k2 = jax.random.split(key)
    lim = 1.0 / math.sqrt(d_in)
    w = jax.random.uniform(k1, (d_in, d_out), jnp.float32, -lim, lim)
    b = jax.random.uniform(k2, (d_out,), jnp.float32, -lim, lim)
    return w, b


def _init_mha_self(key, d_model):
    ks = jax.random.split(key, 4)
    wq, bq = _init_linear(ks[0], d_model, d_model)
    wk, bk = _init_linear(ks[1], d_model, d_model)
    wv, bv = _init_linear(ks[2], d_model, d_model)
    wo, bo = _init_linear(ks[3], d_model, d_model)
    return dict(w_qkv=jnp.concatenate([wq, wk, wv], axis=1),
                b_qkv=jnp.concatenate([bq, bk, bv]),
                wo=wo, bo=bo)


def _init_mha_cross(key, d_model):
    ks = jax.random.split(key, 4)
    wq, bq = _init_linear(ks[0], d_model, d_model)
    wk, bk = _init_linear(ks[1], d_model, d_model)
    wv, bv = _init_linear(ks[2], d_model, d_model)
    wo, bo = _init_linear(ks[3], d_model, d_model)
    return dict(wq=wq, bq=bq,
                w_kv=jnp.concatenate([wk, wv], axis=1),
                b_kv=jnp.concatenate([bk, bv]),
                wo=wo, bo=bo)


def _init_ff(key, d_model, d_ff):
    k1, k2 = jax.random.split(key)
    w1, b1 = _init_linear(k1, d_model, d_ff)
    w2, b2 = _init_linear(k2, d_ff, d_model)
    return dict(w1=w1, b1=b1, w2=w2, b2=b2)


def _init_encoder_layer(key, d_model, d_ff):
    k1, k2 = jax.random.split(key)
    return dict(
        self_attn=_init_mha_self(k1, d_model),
        ff=_init_ff(k2, d_model, d_ff),
        norm1_g=jnp.ones((d_model,), jnp.float32),
        norm1_b=jnp.zeros((d_model,), jnp.float32),
        norm2_g=jnp.ones((d_model,), jnp.float32),
        norm2_b=jnp.zeros((d_model,), jnp.float32),
    )


def _init_decoder_layer(key, d_model, d_ff):
    k1, k2, k3 = jax.random.split(key, 3)
    return dict(
        self_attn=_init_mha_self(k1, d_model),
        cross_attn=_init_mha_cross(k2, d_model),
        ff=_init_ff(k3, d_model, d_ff),
        norm1_g=jnp.ones((d_model,), jnp.float32),
        norm1_b=jnp.zeros((d_model,), jnp.float32),
        norm2_g=jnp.ones((d_model,), jnp.float32),
        norm2_b=jnp.zeros((d_model,), jnp.float32),
        norm3_g=jnp.ones((d_model,), jnp.float32),
        norm3_b=jnp.zeros((d_model,), jnp.float32),
    )


def init_transformer(key, src_vocab, tgt_vocab, d_model, num_layers, d_ff,
                     max_len=64):
    keys = jax.random.split(key, 3 + 2 * num_layers)
    enc_emb = 0.02 * jax.random.normal(keys[0], (src_vocab, d_model), jnp.float32)
    dec_emb = 0.02 * jax.random.normal(keys[1], (tgt_vocab, d_model), jnp.float32)
    fc_w, fc_b = _init_linear(keys[2], d_model, tgt_vocab)
    enc_layers = [_init_encoder_layer(keys[3 + i], d_model, d_ff)
                  for i in range(num_layers)]
    dec_layers = [_init_decoder_layer(keys[3 + num_layers + i], d_model, d_ff)
                  for i in range(num_layers)]
    return dict(
        enc_emb=enc_emb, dec_emb=dec_emb, fc_w=fc_w, fc_b=fc_b,
        enc_layers=enc_layers, dec_layers=dec_layers,
        pe=positional_encoding(max_len, d_model),
    )


# --------------------------------- main -----------------------------------------

if __name__ == "__main__":
    # Small, forward-consistent shapes (d_model kept 128-aligned so the fused
    # QKV/KV slabs can be column-indexed directly by the attention kernel).
    SRC_VOCAB, TGT_VOCAB = 16, 16
    D_MODEL, NUM_LAYERS, NUM_HEADS, D_FF = 128, 2, 4, 256
    B, S_SRC, S_TGT = 2, 8, 8

    key = jax.random.PRNGKey(0)
    k_param, k_src, k_tgt = jax.random.split(key, 3)

    params = init_transformer(k_param, SRC_VOCAB, TGT_VOCAB, D_MODEL,
                              NUM_LAYERS, D_FF)

    src = jax.random.randint(k_src, (B, S_SRC), 0, SRC_VOCAB, dtype=jnp.int32)
    tgt = jax.random.randint(k_tgt, (B, S_TGT), 0, TGT_VOCAB, dtype=jnp.int32)

    # masks (1 = keep, 0 = masked), broadcastable to (B, H, Sq, Sk)
    src_mask = jnp.ones((B, 1, 1, S_SRC), jnp.float32)
    causal = jnp.tril(jnp.ones((S_TGT, S_TGT), jnp.float32))
    tgt_mask = causal[None, None, :, :]
    cross_mask = jnp.ones((B, 1, 1, S_SRC), jnp.float32)

    fwd = jax.jit(functools.partial(transformer_forward, num_heads=NUM_HEADS))
    logits = fwd(params, src, tgt, src_mask, tgt_mask, cross_mask)
    logits = jax.block_until_ready(logits)

    assert logits.shape == (B, S_TGT, TGT_VOCAB), logits.shape
    assert bool(jnp.all(jnp.isfinite(logits)))
    print("KERNEL_OK")
</pallas_src>

<mosaic_0001>
module attributes {stable_mosaic.version = 11 : i64} {
  func.func @_proj_add_ln_kernel(%arg0: i32, %arg1: memref<16x128xf32, #tpu.memory_space<vmem>>, %arg2: memref<128x128xbf16, #tpu.memory_space<vmem>>, %arg3: memref<1x128xf32, #tpu.memory_space<vmem>>, %arg4: memref<16x128xf32, #tpu.memory_space<vmem>>, %arg5: memref<1x128xf32, #tpu.memory_space<vmem>>, %arg6: memref<1x128xf32, #tpu.memory_space<vmem>>, %arg7: memref<16x128xf32, #tpu.memory_space<vmem>>) attributes {dimension_semantics = [#tpu.dimension_semantics<parallel>], iteration_bounds = array<i64: 1>, scalar_prefetch = 0 : i64, scratch_operands = 0 : i64, tpu.core_type = #tpu.core_type<tc>, window_params = [{transform_indices = @transform_0, window_bounds = array<i64: 16, 128>}, {pipeline_mode = #tpu.pipeline_mode<synchronous>, transform_indices = @transform_1, window_bounds = array<i64: 128, 128>}, {pipeline_mode = #tpu.pipeline_mode<synchronous>, transform_indices = @transform_2, window_bounds = array<i64: 1, 128>}, {transform_indices = @transform_3, window_bounds = array<i64: 16, 128>}, {pipeline_mode = #tpu.pipeline_mode<synchronous>, transform_indices = @transform_4, window_bounds = array<i64: 1, 128>}, {pipeline_mode = #tpu.pipeline_mode<synchronous>, transform_indices = @transform_5, window_bounds = array<i64: 1, 128>}, {transform_indices = @transform_6, window_bounds = array<i64: 16, 128>}]} {
    %c0 = arith.constant 0 : index
    %c0_0 = arith.constant 0 : index
    %0 = vector.load %arg1[%c0, %c0_0] : memref<16x128xf32, #tpu.memory_space<vmem>>, vector<16x128xf32>
    %1 = arith.truncf %0 : vector<16x128xf32> to vector<16x128xbf16>
    %c0_1 = arith.constant 0 : index
    %c0_2 = arith.constant 0 : index
    %2 = vector.load %arg2[%c0_1, %c0_2] : memref<128x128xbf16, #tpu.memory_space<vmem>>, vector<128x128xbf16>
    %cst = arith.constant dense<0.000000e+00> : vector<16x128xf32>
    %3 = tpu.matmul %1, %2, %cst {dimension_numbers = #tpu.dot_dimension_numbers<[1], [0], [0], [1], [0, 0, 1, 1], [], []>} : vector<16x128xbf16>, vector<128x128xbf16>, vector<16x128xf32> -> vector<16x128xf32>
    %c0_3 = arith.constant 0 : index
    %c0_4 = arith.constant 0 : index
    %4 = vector.load %arg3[%c0_3, %c0_4] : memref<1x128xf32, #tpu.memory_space<vmem>>, vector<1x128xf32>
    %5 = vector.broadcast %4 : vector<1x128xf32> to vector<16x128xf32>
    %6 = arith.addf %3, %5 : vector<16x128xf32>
    %c0_5 = arith.constant 0 : index
    %c0_6 = arith.constant 0 : index
    %7 = vector.load %arg4[%c0_5, %c0_6] : memref<16x128xf32, #tpu.memory_space<vmem>>, vector<16x128xf32>
    %8 = arith.addf %7, %6 : vector<16x128xf32>
    %cst_7 = arith.constant dense<0.000000e+00> : vector<16xf32>
    %9 = vector.multi_reduction <add>, %8, %cst_7 [1] : vector<16x128xf32> to vector<16xf32>
    %10 = vector.shape_cast %9 : vector<16xf32> to vector<16x1xf32>
    %cst_8 = arith.constant 1.280000e+02 : f32
    %11 = vector.broadcast %cst_8 : f32 to vector<16x1xf32>
    %12 = arith.divf %10, %11 : vector<16x1xf32>
    %13 = vector.broadcast %12 : vector<16x1xf32> to vector<16x128xf32>
    %14 = arith.subf %8, %13 : vector<16x128xf32>
    %15 = arith.mulf %14, %14 : vector<16x128xf32>
    %cst_9 = arith.constant dense<0.000000e+00> : vector<16xf32>
    %16 = vector.multi_reduction <add>, %15, %cst_9 [1] : vector<16x128xf32> to vector<16xf32>
    %17 = vector.shape_cast %16 : vector<16xf32> to vector<16x1xf32>
    %cst_10 = arith.constant 1.280000e+02 : f32
    %18 = vector.broadcast %cst_10 : f32 to vector<16x1xf32>
    %19 = arith.divf %17, %18 : vector<16x1xf32>
    %20 = vector.broadcast %12 : vector<16x1xf32> to vector<16x128xf32>
    %21 = arith.subf %8, %20 : vector<16x128xf32>
    %cst_11 = arith.constant 9.99999974E-6 : f32
    %22 = vector.broadcast %cst_11 : f32 to vector<16x1xf32>
    %23 = arith.addf %19, %22 : vector<16x1xf32>
    %24 = math.rsqrt %23 : vector<16x1xf32>
    %25 = vector.broadcast %24 : vector<16x1xf32> to vector<16x128xf32>
    %26 = arith.mulf %21, %25 : vector<16x128xf32>
    %c0_12 = arith.constant 0 : index
    %c0_13 = arith.constant 0 : index
    %27 = vector.load %arg5[%c0_12, %c0_13] : memref<1x128xf32, #tpu.memory_space<vmem>>, vector<1x128xf32>
    %28 = vector.broadcast %27 : vector<1x128xf32> to vector<16x128xf32>
    %29 = arith.mulf %26, %28 : vector<16x128xf32>
    %c0_14 = arith.constant 0 : index
    %c0_15 = arith.constant 0 : index
    %30 = vector.load %arg6[%c0_14, %c0_15] : memref<1x128xf32, #tpu.memory_space<vmem>>, vector<1x128xf32>
    %31 = vector.broadcast %30 : vector<1x128xf32> to vector<16x128xf32>
    %32 = arith.addf %29, %31 : vector<16x128xf32>
    %c0_16 = arith.constant 0 : index
    %c0_17 = arith.constant 0 : index
    %33 = vector.load %arg7[%c0_16, %c0_17] : memref<16x128xf32, #tpu.memory_space<vmem>>, vector<16x128xf32>
    tpu.vector_store %arg7[%c0_16, %c0_17], %32 {strides = array<i32>} : memref<16x128xf32, #tpu.memory_space<vmem>>, vector<16x128xf32>,
    return
  }
  func.func @transform_0(%arg0: i32) -> (i32, i32) {
    %c0_i32 = arith.constant 0 : i32
    %c0_i32_0 = arith.constant 0 : i32
    return %arg0, %c0_i32 : i32, i32
  }
  func.func @transform_1(%arg0: i32) -> (i32, i32) {
    %c0_i32 = arith.constant 0 : i32
    %c0_i32_0 = arith.constant 0 : i32
    %c0_i32_1 = arith.constant 0 : i32
    return %c0_i32, %c0_i32_0 : i32, i32
  }
  func.func @transform_2(%arg0: i32) -> (i32, i32) {
    %c0_i32 = arith.constant 0 : i32
    %c0_i32_0 = arith.constant 0 : i32
    %c0_i32_1 = arith.constant 0 : i32
    return %c0_i32, %c0_i32_0 : i32, i32
  }
  func.func @transform_3(%arg0: i32) -> (i32, i32) {
    %c0_i32 = arith.constant 0 : i32
    %c0_i32_0 = arith.constant 0 : i32
    return %arg0, %c0_i32 : i32, i32
  }
  func.func @transform_4(%arg0: i32) -> (i32, i32) {
    %c0_i32 = arith.constant 0 : i32
    %c0_i32_0 = arith.constant 0 : i32
    %c0_i32_1 = arith.constant 0 : i32
    return %c0_i32, %c0_i32_0 : i32, i32
  }
  func.func @transform_5(%arg0: i32) -> (i32, i32) {
    %c0_i32 = arith.constant 0 : i32
    %c0_i32_0 = arith.constant 0 : i32
    %c0_i32_1 = arith.constant 0 : i32
    return %c0_i32, %c0_i32_0 : i32, i32
  }
  func.func @transform_6(%arg0: i32) -> (i32, i32) {
    %c0_i32 = arith.constant 0 : i32
    %c0_i32_0 = arith.constant 0 : i32
    return %arg0, %c0_i32 : i32, i32
  }
}

module attributes {stable_mosaic.version = 11 : i64} {
  func.func @_matmul_bias_kernel(%arg0: i32, %arg1: i32, %arg2: i32, %arg3: memref<16x128xbf16, #tpu.memory_space<vmem>>, %arg4: memref<128x384xbf16, #tpu.memory_space<vmem>>, %arg5: memref<1x384xf32, #tpu.memory_space<vmem>>, %arg6: memref<16x384xf32, #tpu.memory_space<vmem>>, %arg7: memref<16x384xf32, #tpu.memory_space<vmem>>) attributes {dimension_semantics = [#tpu.dimension_semantics<parallel>, #tpu.dimension_semantics<parallel>, #tpu.dimension_semantics<arbitrary>], iteration_bounds = array<i64: 1, 1, 1>, scalar_prefetch = 0 : i64, scratch_operands = 1 : i64, tpu.core_type = #tpu.core_type<tc>, window_params = [{transform_indices = @transform_0, window_bounds = array<i64: 16, 128>}, {transform_indices = @transform_1, window_bounds = array<i64: 128, 384>}, {transform_indices = @transform_2, window_bounds = array<i64: 1, 384>}, {transform_indices = @transform_3, window_bounds = array<i64: 16, 384>}]} {
    %c0_i32 = arith.constant 0 : i32
    %0 = arith.cmpi eq, %arg2, %c0_i32 : i32
    %1 = arith.extui %0 : i1 to i32
    %c0_i32_0 = arith.constant 0 : i32
    %2 = arith.cmpi ne, %1, %c0_i32_0 : i32
    scf.if %2 {
      %cst_10 = arith.constant 0.000000e+00 : f32
      %12 = vector.broadcast %cst_10 : f32 to vector<16x384xf32>
      %c0_11 = arith.constant 0 : index
      %c0_12 = arith.constant 0 : index
      %13 = vector.load %arg7[%c0_11, %c0_12] : memref<16x384xf32, #tpu.memory_space<vmem>>, vector<16x384xf32>
      tpu.vector_store %arg7[%c0_11, %c0_12], %12 {strides = array<i32>} : memref<16x384xf32, #tpu.memory_space<vmem>>, vector<16x384xf32>,
    } else {
    }
    %c0 = arith.constant 0 : index
    %c0_1 = arith.constant 0 : index
    %3 = vector.load %arg7[%c0, %c0_1] : memref<16x384xf32, #tpu.memory_space<vmem>>, vector<16x384xf32>
    %c0_2 = arith.constant 0 : index
    %c0_3 = arith.constant 0 : index
    %4 = vector.load %arg3[%c0_2, %c0_3] : memref<16x128xbf16, #tpu.memory_space<vmem>>, vector<16x128xbf16>
    %c0_4 = arith.constant 0 : index
    %c0_5 = arith.constant 0 : index
    %5 = vector.load %arg4[%c0_4, %c0_5] : memref<128x384xbf16, #tpu.memory_space<vmem>>, vector<128x384xbf16>
    %cst = arith.constant dense<0.000000e+00> : vector<16x384xf32>
    %6 = tpu.matmul %4, %5, %cst {dimension_numbers = #tpu.dot_dimension_numbers<[1], [0], [0], [1], [0, 0, 1, 1], [], []>} : vector<16x128xbf16>, vector<128x384xbf16>, vector<16x384xf32> -> vector<16x384xf32>
    %7 = arith.addf %3, %6 : vector<16x384xf32>
    %c0_6 = arith.constant 0 : index
    %c0_7 = arith.constant 0 : index
    %8 = vector.load %arg7[%c0_6, %c0_7] : memref<16x384xf32, #tpu.memory_space<vmem>>, vector<16x384xf32>
    tpu.vector_store %arg7[%c0_6, %c0_7], %7 {strides = array<i32>} : memref<16x384xf32, #tpu.memory_space<vmem>>, vector<16x384xf32>,
    %c0_i32_8 = arith.constant 0 : i32
    %9 = arith.cmpi eq, %arg2, %c0_i32_8 : i32
    %10 = arith.extui %9 : i1 to i32
    %c0_i32_9 = arith.constant 0 : i32
    %11 = arith.cmpi ne, %10, %c0_i32_9 : i32
    scf.if %11 {
      %c0_10 = arith.constant 0 : index
      %c0_11 = arith.constant 0 : index
      %12 = vector.load %arg7[%c0_10, %c0_11] : memref<16x384xf32, #tpu.memory_space<vmem>>, vector<16x384xf32>
      %c0_12 = arith.constant 0 : index
      %c0_13 = arith.constant 0 : index
      %13 = vector.load %arg5[%c0_12, %c0_13] : memref<1x384xf32, #tpu.memory_space<vmem>>, vector<1x384xf32>
      %14 = vector.broadcast %13 : vector<1x384xf32> to vector<16x384xf32>
      %15 = arith.addf %12, %14 : vector<16x384xf32>
      %c0_14 = arith.constant 0 : index
      %c0_15 = arith.constant 0 : index
      %16 = vector.load %arg6[%c0_14, %c0_15] : memref<16x384xf32, #tpu.memory_space<vmem>>, vector<16x384xf32>
      tpu.vector_store %arg6[%c0_14, %c0_15], %15 {strides = array<i32>} : memref<16x384xf32, #tpu.memory_space<vmem>>, vector<16x384xf32>,
    } else {
    }
    return
  }
  func.func @transform_0(%arg0: i32, %arg1: i32, %arg2: i32) -> (i32, i32) {
    %c0_i32 = arith.constant 0 : i32
    return %arg0, %arg2 : i32, i32
  }
  func.func @transform_1(%arg0: i32, %arg1: i32, %arg2: i32) -> (i32, i32) {
    %c0_i32 = arith.constant 0 : i32
    return %arg2, %arg1 : i32, i32
  }
  func.func @transform_2(%arg0: i32, %arg1: i32, %arg2: i32) -> (i32, i32) {
    %c0_i32 = arith.constant 0 : i32
    %c0_i32_0 = arith.constant 0 : i32
    return %c0_i32, %arg1 : i32, i32
  }
  func.func @transform_3(%arg0: i32, %arg1: i32, %arg2: i32) -> (i32, i32) {
    %c0_i32 = arith.constant 0 : i32
    return %arg0, %arg1 : i32, i32
  }
}

module attributes {stable_mosaic.version = 11 : i64} {
  func.func @_ffn_add_ln_kernel(%arg0: i32, %arg1: i32, %arg2: memref<16x128xf32, #tpu.memory_space<vmem>>, %arg3: memref<128x256xbf16, #tpu.memory_space<vmem>>, %arg4: memref<1x256xf32, #tpu.memory_space<vmem>>, %arg5: memref<256x128xbf16, #tpu.memory_space<vmem>>, %arg6: memref<1x128xf32, #tpu.memory_space<vmem>>, %arg7: memref<1x128xf32, #tpu.memory_space<vmem>>, %arg8: memref<1x128xf32, #tpu.memory_space<vmem>>, %arg9: memref<16x128xf32, #tpu.memory_space<vmem>>, %arg10: memref<16x128xf32, #tpu.memory_space<vmem>>) attributes {dimension_semantics = [#tpu.dimension_semantics<parallel>, #tpu.dimension_semantics<arbitrary>], iteration_bounds = array<i64: 1, 1>, scalar_prefetch = 0 : i64, scratch_operands = 1 : i64, tpu.core_type = #tpu.core_type<tc>, window_params = [{transform_indices = @transform_0, window_bounds = array<i64: 16, 128>}, {transform_indices = @transform_1, window_bounds = array<i64: 128, 256>}, {transform_indices = @transform_2, window_bounds = array<i64: 1, 256>}, {transform_indices = @transform_3, window_bounds = array<i64: 256, 128>}, {pipeline_mode = #tpu.pipeline_mode<synchronous>, transform_indices = @transform_4, window_bounds = array<i64: 1, 128>}, {pipeline_mode = #tpu.pipeline_mode<synchronous>, transform_indices = @transform_5, window_bounds = array<i64: 1, 128>}, {pipeline_mode = #tpu.pipeline_mode<synchronous>, transform_indices = @transform_6, window_bounds = array<i64: 1, 128>}, {transform_indices = @transform_7, window_bounds = array<i64: 16, 128>}]} {
    %c0_i32 = arith.constant 0 : i32
    %0 = arith.cmpi eq, %arg1, %c0_i32 : i32
    %1 = arith.extui %0 : i1 to i32
    %c0_i32_0 = arith.constant 0 : i32
    %2 = arith.cmpi ne, %1, %c0_i32_0 : i32
    scf.if %2 {
      %cst_16 = arith.constant 0.000000e+00 : f32
      %21 = vector.broadcast %cst_16 : f32 to vector<16x128xf32>
      %c0_17 = arith.constant 0 : index
      %c0_18 = arith.constant 0 : index
      %22 = vector.load %arg10[%c0_17, %c0_18] : memref<16x128xf32, #tpu.memory_space<vmem>>, vector<16x128xf32>
      tpu.vector_store %arg10[%c0_17, %c0_18], %21 {strides = array<i32>} : memref<16x128xf32, #tpu.memory_space<vmem>>, vector<16x128xf32>,
    } else {
    }
    %c0 = arith.constant 0 : index
    %c0_1 = arith.constant 0 : index
    %3 = vector.load %arg2[%c0, %c0_1] : memref<16x128xf32, #tpu.memory_space<vmem>>, vector<16x128xf32>
    %4 = arith.truncf %3 : vector<16x128xf32> to vector<16x128xbf16>
    %c0_2 = arith.constant 0 : index
    %c0_3 = arith.constant 0 : index
    %5 = vector.load %arg3[%c0_2, %c0_3] : memref<128x256xbf16, #tpu.memory_space<vmem>>, vector<128x256xbf16>
    %cst = arith.constant dense<0.000000e+00> : vector<16x256xf32>
    %6 = tpu.matmul %4, %5, %cst {dimension_numbers = #tpu.dot_dimension_numbers<[1], [0], [0], [1], [0, 0, 1, 1], [], []>} : vector<16x128xbf16>, vector<128x256xbf16>, vector<16x256xf32> -> vector<16x256xf32>
    %c0_4 = arith.constant 0 : index
    %c0_5 = arith.constant 0 : index
    %7 = vector.load %arg4[%c0_4, %c0_5] : memref<1x256xf32, #tpu.memory_space<vmem>>, vector<1x256xf32>
    %8 = vector.broadcast %7 : vector<1x256xf32> to vector<16x256xf32>
    %9 = arith.addf %6, %8 : vector<16x256xf32>
    %cst_6 = arith.constant 0.000000e+00 : f32
    %10 = vector.broadcast %cst_6 : f32 to vector<16x256xf32>
    %11 = arith.maximumf %9, %10 : vector<16x256xf32>
    %c0_7 = arith.constant 0 : index
    %c0_8 = arith.constant 0 : index
    %12 = vector.load %arg10[%c0_7, %c0_8] : memref<16x128xf32, #tpu.memory_space<vmem>>, vector<16x128xf32>
    %13 = arith.truncf %11 : vector<16x256xf32> to vector<16x256xbf16>
    %c0_9 = arith.constant 0 : index
    %c0_10 = arith.constant 0 : index
    %14 = vector.load %arg5[%c0_9, %c0_10] : memref<256x128xbf16, #tpu.memory_space<vmem>>, vector<256x128xbf16>
    %cst_11 = arith.constant dense<0.000000e+00> : vector<16x128xf32>
    %15 = tpu.matmul %13, %14, %cst_11 {dimension_numbers = #tpu.dot_dimension_numbers<[1], [0], [0], [1], [0, 0, 1, 1], [], []>} : vector<16x256xbf16>, vector<256x128xbf16>, vector<16x128xf32> -> vector<16x128xf32>
    %16 = arith.addf %12, %15 : vector<16x128xf32>
    %c0_12 = arith.constant 0 : index
    %c0_13 = arith.constant 0 : index
    %17 = vector.load %arg10[%c0_12, %c0_13] : memref<16x128xf32, #tpu.memory_space<vmem>>, vector<16x128xf32>
    tpu.vector_store %arg10[%c0_12, %c0_13], %16 {strides = array<i32>} : memref<16x128xf32, #tpu.memory_space<vmem>>, vector<16x128xf32>,
    %c0_i32_14 = arith.constant 0 : i32
    %18 = arith.cmpi eq, %arg1, %c0_i32_14 : i32
    %19 = arith.extui %18 : i1 to i32
    %c0_i32_15 = arith.constant 0 : i32
    %20 = arith.cmpi ne, %19, %c0_i32_15 : i32
    scf.if %20 {
      %c0_16 = arith.constant 0 : index
      %c0_17 = arith.constant 0 : index
      %21 = vector.load %arg2[%c0_16, %c0_17] : memref<16x128xf32, #tpu.memory_space<vmem>>, vector<16x128xf32>
      %c0_18 = arith.constant 0 : index
      %c0_19 = arith.constant 0 : index
      %22 = vector.load %arg10[%c0_18, %c0_19] : memref<16x128xf32, #tpu.memory_space<vmem>>, vector<16x128xf32>
      %23 = arith.addf %21, %22 : vector<16x128xf32>
      %c0_20 = arith.constant 0 : index
      %c0_21 = arith.constant 0 : index
      %24 = vector.load %arg6[%c0_20, %c0_21] : memref<1x128xf32, #tpu.memory_space<vmem>>, vector<1x128xf32>
      %25 = vector.broadcast %24 : vector<1x128xf32> to vector<16x128xf32>
      %26 = arith.addf %23, %25 : vector<16x128xf32>
      %cst_22 = arith.constant dense<0.000000e+00> : vector<16xf32>
      %27 = vector.multi_reduction <add>, %26, %cst_22 [1] : vector<16x128xf32> to vector<16xf32>
      %28 = vector.shape_cast %27 : vector<16xf32> to vector<16x1xf32>
      %cst_23 = arith.constant 1.280000e+02 : f32
      %29 = vector.broadcast %cst_23 : f32 to vector<16x1xf32>
      %30 = arith.divf %28, %29 : vector<16x1xf32>
      %31 = vector.broadcast %30 : vector<16x1xf32> to vector<16x128xf32>
      %32 = arith.subf %26, %31 : vector<16x128xf32>
      %33 = arith.mulf %32, %32 : vector<16x128xf32>
      %cst_24 = arith.constant dense<0.000000e+00> : vector<16xf32>
      %34 = vector.multi_reduction <add>, %33, %cst_24 [1] : vector<16x128xf32> to vector<16xf32>
      %35 = vector.shape_cast %34 : vector<16xf32> to vector<16x1xf32>
      %cst_25 = arith.constant 1.280000e+02 : f32
      %36 = vector.broadcast %cst_25 : f32 to vector<16x1xf32>
      %37 = arith.divf %35, %36 : vector<16x1xf32>
      %38 = vector.broadcast %30 : vector<16x1xf32> to vector<16x128xf32>
      %39 = arith.subf %26, %38 : vector<16x128xf32>
      %cst_26 = arith.constant 9.99999974E-6 : f32
      %40 = vector.broadcast %cst_26 : f32 to vector<16x1xf32>
      %41 = arith.addf %37, %40 : vector<16x1xf32>
      %42 = math.rsqrt %41 : vector<16x1xf32>
      %43 = vector.broadcast %42 : vector<16x1xf32> to vector<16x128xf32>
      %44 = arith.mulf %39, %43 : vector<16x128xf32>
      %c0_27 = arith.constant 0 : index
      %c0_28 = arith.constant 0 : index
      %45 = vector.load %arg7[%c0_27, %c0_28] : memref<1x128xf32, #tpu.memory_space<vmem>>, vector<1x128xf32>
      %46 = vector.broadcast %45 : vector<1x128xf32> to vector<16x128xf32>
      %47 = arith.mulf %44, %46 : vector<16x128xf32>
      %c0_29 = arith.constant 0 : index
      %c0_30 = arith.constant 0 : index
      %48 = vector.load %arg8[%c0_29, %c0_30] : memref<1x128xf32, #tpu.memory_space<vmem>>, vector<1x128xf32>
      %49 = vector.broadcast %48 : vector<1x128xf32> to vector<16x128xf32>
      %50 = arith.addf %47, %49 : vector<16x128xf32>
      %c0_31 = arith.constant 0 : index
      %c0_32 = arith.constant 0 : index
      %51 = vector.load %arg9[%c0_31, %c0_32] : memref<16x128xf32, #tpu.memory_space<vmem>>, vector<16x128xf32>
      tpu.vector_store %arg9[%c0_31, %c0_32], %50 {strides = array<i32>} : memref<16x128xf32, #tpu.memory_space<vmem>>, vector<16x128xf32>,
    } else {
    }
    return
  }
  func.func @transform_0(%arg0: i32, %arg1: i32) -> (i32, i32) {
    %c0_i32 = arith.constant 0 : i32
    %c0_i32_0 = arith.constant 0 : i32
    return %arg0, %c0_i32 : i32, i32
  }
  func.func @transform_1(%arg0: i32, %arg1: i32) -> (i32, i32) {
    %c0_i32 = arith.constant 0 : i32
    %c0_i32_0 = arith.constant 0 : i32
    return %c0_i32, %arg1 : i32, i32
  }
  func.func @transform_2(%arg0: i32, %arg1: i32) -> (i32, i32) {
    %c0_i32 = arith.constant 0 : i32
    %c0_i32_0 = arith.constant 0 : i32
    return %c0_i32, %arg1 : i32, i32
  }
  func.func @transform_3(%arg0: i32, %arg1: i32) -> (i32, i32) {
    %c0_i32 = arith.constant 0 : i32
    %c0_i32_0 = arith.constant 0 : i32
    return %arg1, %c0_i32 : i32, i32
  }
  func.func @transform_4(%arg0: i32, %arg1: i32) -> (i32, i32) {
    %c0_i32 = arith.constant 0 : i32
    %c0_i32_0 = arith.constant 0 : i32
    %c0_i32_1 = arith.constant 0 : i32
    return %c0_i32, %c0_i32_0 : i32, i32
  }
  func.func @transform_5(%arg0: i32, %arg1: i32) -> (i32, i32) {
    %c0_i32 = arith.constant 0 : i32
    %c0_i32_0 = arith.constant 0 : i32
    %c0_i32_1 = arith.constant 0 : i32
    return %c0_i32, %c0_i32_0 : i32, i32
  }
  func.func @transform_6(%arg0: i32, %arg1: i32) -> (i32, i32) {
    %c0_i32 = arith.constant 0 : i32
    %c0_i32_0 = arith.constant 0 : i32
    %c0_i32_1 = arith.constant 0 : i32
    return %c0_i32, %c0_i32_0 : i32, i32
  }
  func.func @transform_7(%arg0: i32, %arg1: i32) -> (i32, i32) {
    %c0_i32 = arith.constant 0 : i32
    %c0_i32_0 = arith.constant 0 : i32
    return %arg0, %c0_i32 : i32, i32
  }
}

module attributes {stable_mosaic.version = 11 : i64} {
  func.func @_attn_kernel(%arg0: i32, %arg1: i32, %arg2: i32, %arg3: memref<1x8x128xf32, #tpu.memory_space<vmem>>, %arg4: memref<1x8x128xf32, #tpu.memory_space<vmem>>, %arg5: memref<1x8x128xf32, #tpu.memory_space<vmem>>, %arg6: memref<1x1x8xf32, #tpu.memory_space<vmem>>, %arg7: memref<1x8x128xf32, #tpu.memory_space<vmem>>, %arg8: memref<8x4xf32, #tpu.memory_space<vmem>>, %arg9: memref<8x4xf32, #tpu.memory_space<vmem>>, %arg10: memref<8x128xf32, #tpu.memory_space<vmem>>) attributes {dimension_semantics = [#tpu.dimension_semantics<parallel>, #tpu.dimension_semantics<parallel>, #tpu.dimension_semantics<arbitrary>], iteration_bounds = array<i64: 2, 1, 1>, scalar_prefetch = 0 : i64, scratch_operands = 3 : i64, tpu.core_type = #tpu.core_type<tc>, window_params = [{transform_indices = @transform_0, window_bounds = array<i64: 1, 8, 128>}, {transform_indices = @transform_1, window_bounds = array<i64: 1, 8, 128>}, {transform_indices = @transform_2, window_bounds = array<i64: 1, 8, 128>}, {transform_indices = @transform_3, window_bounds = array<i64: 1, 1, 8>}, {transform_indices = @transform_4, window_bounds = array<i64: 1, 8, 128>}]} {
    %c0_i32 = arith.constant 0 : i32
    %0 = arith.cmpi eq, %arg2, %c0_i32 : i32
    %1 = arith.extui %0 : i1 to i32
    %c0_i32_0 = arith.constant 0 : i32
    %2 = arith.cmpi ne, %1, %c0_i32_0 : i32
    scf.if %2 {
      %cst_102 = arith.constant 0xFF800000 : f32
      %156 = vector.broadcast %cst_102 : f32 to vector<8x4xf32>
      %c0_103 = arith.constant 0 : index
      %c0_104 = arith.constant 0 : index
      %157 = vector.load %arg8[%c0_103, %c0_104] : memref<8x4xf32, #tpu.memory_space<vmem>>, vector<8x4xf32>
      tpu.vector_store %arg8[%c0_103, %c0_104], %156 {strides = array<i32>} : memref<8x4xf32, #tpu.memory_space<vmem>>, vector<8x4xf32>,
      %cst_105 = arith.constant 0.000000e+00 : f32
      %158 = vector.broadcast %cst_105 : f32 to vector<8x4xf32>
      %c0_106 = arith.constant 0 : index
      %c0_107 = arith.constant 0 : index
      %159 = vector.load %arg9[%c0_106, %c0_107] : memref<8x4xf32, #tpu.memory_space<vmem>>, vector<8x4xf32>
      tpu.vector_store %arg9[%c0_106, %c0_107], %158 {strides = array<i32>} : memref<8x4xf32, #tpu.memory_space<vmem>>, vector<8x4xf32>,
      %cst_108 = arith.constant 0.000000e+00 : f32
      %160 = vector.broadcast %cst_108 : f32 to vector<8x128xf32>
      %c0_109 = arith.constant 0 : index
      %c0_110 = arith.constant 0 : index
      %161 = vector.load %arg10[%c0_109, %c0_110] : memref<8x128xf32, #tpu.memory_space<vmem>>, vector<8x128xf32>
      tpu.vector_store %arg10[%c0_109, %c0_110], %160 {strides = array<i32>} : memref<8x128xf32, #tpu.memory_space<vmem>>, vector<8x128xf32>,
    } else {
    }
    %c0 = arith.constant 0 : index
    %c0_1 = arith.constant 0 : index
    %c0_2 = arith.constant 0 : index
    %3 = vector.load %arg6[%c0, %c0_1, %c0_2] : memref<1x1x8xf32, #tpu.memory_space<vmem>>, vector<1x1x8xf32>
    %4 = vector.shape_cast %3 : vector<1x1x8xf32> to vector<1x8xf32>
    %c0_3 = arith.constant 0 : index
    %c0_4 = arith.constant 0 : index
    %c0_5 = arith.constant 0 : index
    %5 = vector.load %arg3[%c0_3, %c0_4, %c0_5] : memref<1x8x128xf32, #tpu.memory_space<vmem>>, vector<1x8x32xf32>
    %6 = vector.shape_cast %5 : vector<1x8x32xf32> to vector<8x32xf32>
    %7 = arith.truncf %6 : vector<8x32xf32> to vector<8x32xbf16>
    %c0_6 = arith.constant 0 : index
    %c0_7 = arith.constant 0 : index
    %c0_8 = arith.constant 0 : index
    %8 = vector.load %arg4[%c0_6, %c0_7, %c0_8] : memref<1x8x128xf32, #tpu.memory_space<vmem>>, vector<1x8x32xf32>
    %9 = vector.shape_cast %8 : vector<1x8x32xf32> to vector<8x32xf32>
    %10 = arith.truncf %9 : vector<8x32xf32> to vector<8x32xbf16>
    %c0_9 = arith.constant 0 : index
    %c0_10 = arith.constant 0 : index
    %c0_11 = arith.constant 0 : index
    %11 = vector.load %arg5[%c0_9, %c0_10, %c0_11] : memref<1x8x128xf32, #tpu.memory_space<vmem>>, vector<1x8x32xf32>
    %12 = vector.shape_cast %11 : vector<1x8x32xf32> to vector<8x32xf32>
    %13 = arith.truncf %12 : vector<8x32xf32> to vector<8x32xbf16>
    %cst = arith.constant dense<0.000000e+00> : vector<8x8xf32>
    %14 = tpu.matmul %7, %10, %cst {dimension_numbers = #tpu.dot_dimension_numbers<[1], [1], [0], [0], [0, 0, 1, 0], [], []>} : vector<8x32xbf16>, vector<8x32xbf16>, vector<8x8xf32> -> vector<8x8xf32>
    %cst_12 = arith.constant 0.176776692 : f32
    %15 = vector.broadcast %cst_12 : f32 to vector<8x8xf32>
    %16 = arith.mulf %14, %15 : vector<8x8xf32>
    %17 = vector.broadcast %4 : vector<1x8xf32> to vector<8x8xf32>
    %18 = arith.addf %16, %17 : vector<8x8xf32>
    %c0_13 = arith.constant 0 : index
    %c0_14 = arith.constant 0 : index
    %19 = vector.load %arg8[%c0_13, %c0_14] : memref<8x4xf32, #tpu.memory_space<vmem>>, vector<8x1xf32>
    %cst_15 = arith.constant dense<0xFF800000> : vector<8xf32>
    %20 = vector.multi_reduction <maximumf>, %18, %cst_15 [1] : vector<8x8xf32> to vector<8xf32>
    %21 = vector.shape_cast %20 : vector<8xf32> to vector<8x1xf32>
    %22 = arith.maximumf %19, %21 : vector<8x1xf32>
    %23 = arith.subf %19, %22 : vector<8x1xf32>
    %24 = math.exp %23 : vector<8x1xf32>
    %25 = vector.broadcast %22 : vector<8x1xf32> to vector<8x8xf32>
    %26 = arith.subf %18, %25 : vector<8x8xf32>
    %27 = math.exp %26 : vector<8x8xf32>
    %c0_16 = arith.constant 0 : index
    %c0_17 = arith.constant 0 : index
    %28 = vector.load %arg9[%c0_16, %c0_17] : memref<8x4xf32, #tpu.memory_space<vmem>>, vector<8x1xf32>
    %29 = arith.mulf %24, %28 : vector<8x1xf32>
    %cst_18 = arith.constant dense<0.000000e+00> : vector<8xf32>
    %30 = vector.multi_reduction <add>, %27, %cst_18 [1] : vector<8x8xf32> to vector<8xf32>
    %31 = vector.shape_cast %30 : vector<8xf32> to vector<8x1xf32>
    %32 = arith.addf %29, %31 : vector<8x1xf32>
    %c0_19 = arith.constant 0 : index
    %c0_20 = arith.constant 0 : index
    %33 = vector.load %arg9[%c0_19, %c0_20] : memref<8x4xf32, #tpu.memory_space<vmem>>, vector<8x1xf32>
    tpu.vector_store %arg9[%c0_19, %c0_20], %32 {strides = array<i32>} : memref<8x4xf32, #tpu.memory_space<vmem>>, vector<8x1xf32>,
    %c0_21 = arith.constant 0 : index
    %c0_22 = arith.constant 0 : index
    %34 = vector.load %arg10[%c0_21, %c0_22] : memref<8x128xf32, #tpu.memory_space<vmem>>, vector<8x32xf32>
    %35 = vector.broadcast %24 : vector<8x1xf32> to vector<8x32xf32>
    %36 = arith.mulf %35, %34 : vector<8x32xf32>
    %37 = arith.truncf %27 : vector<8x8xf32> to vector<8x8xbf16>
    %cst_23 = arith.constant dense<0.000000e+00> : vector<8x32xf32>
    %38 = tpu.matmul %37, %13, %cst_23 {dimension_numbers = #tpu.dot_dimension_numbers<[1], [0], [0], [1], [0, 0, 1, 1], [], []>} : vector<8x8xbf16>, vector<8x32xbf16>, vector<8x32xf32> -> vector<8x32xf32>
    %39 = arith.addf %36, %38 : vector<8x32xf32>
    %c0_24 = arith.constant 0 : index
    %c0_25 = arith.constant 0 : index
    %40 = vector.load %arg10[%c0_24, %c0_25] : memref<8x128xf32, #tpu.memory_space<vmem>>, vector<8x32xf32>
    tpu.vector_store %arg10[%c0_24, %c0_25], %39 {strides = array<i32>} : memref<8x128xf32, #tpu.memory_space<vmem>>, vector<8x32xf32>,
    %c0_26 = arith.constant 0 : index
    %c0_27 = arith.constant 0 : index
    %41 = vector.load %arg8[%c0_26, %c0_27] : memref<8x4xf32, #tpu.memory_space<vmem>>, vector<8x1xf32>
    tpu.vector_store %arg8[%c0_26, %c0_27], %22 {strides = array<i32>} : memref<8x4xf32, #tpu.memory_space<vmem>>, vector<8x1xf32>,
    %c0_28 = arith.constant 0 : index
    %c0_29 = arith.constant 0 : index
    %c32 = arith.constant 32 : index
    %42 = vector.load %arg3[%c0_28, %c0_29, %c32] : memref<1x8x128xf32, #tpu.memory_space<vmem>>, vector<1x8x32xf32>
    %43 = vector.shape_cast %42 : vector<1x8x32xf32> to vector<8x32xf32>
    %44 = arith.truncf %43 : vector<8x32xf32> to vector<8x32xbf16>
    %c0_30 = arith.constant 0 : index
    %c0_31 = arith.constant 0 : index
    %c32_32 = arith.constant 32 : index
    %45 = vector.load %arg4[%c0_30, %c0_31, %c32_32] : memref<1x8x128xf32, #tpu.memory_space<vmem>>, vector<1x8x32xf32>
    %46 = vector.shape_cast %45 : vector<1x8x32xf32> to vector<8x32xf32>
    %47 = arith.truncf %46 : vector<8x32xf32> to vector<8x32xbf16>
    %c0_33 = arith.constant 0 : index
    %c0_34 = arith.constant 0 : index
    %c32_35 = arith.constant 32 : index
    %48 = vector.load %arg5[%c0_33, %c0_34, %c32_35] : memref<1x8x128xf32, #tpu.memory_space<vmem>>, vector<1x8x32xf32>
    %49 = vector.shape_cast %48 : vector<1x8x32xf32> to vector<8x32xf32>
    %50 = arith.truncf %49 : vector<8x32xf32> to vector<8x32xbf16>
    %cst_36 = arith.constant dense<0.000000e+00> : vector<8x8xf32>
    %51 = tpu.matmul %44, %47, %cst_36 {dimension_numbers = #tpu.dot_dimension_numbers<[1], [1], [0], [0], [0, 0, 1, 0], [], []>} : vector<8x32xbf16>, vector<8x32xbf16>, vector<8x8xf32> -> vector<8x8xf32>
    %cst_37 = arith.constant 0.176776692 : f32
    %52 = vector.broadcast %cst_37 : f32 to vector<8x8xf32>
    %53 = arith.mulf %51, %52 : vector<8x8xf32>
    %54 = vector.broadcast %4 : vector<1x8xf32> to vector<8x8xf32>
    %55 = arith.addf %53, %54 : vector<8x8xf32>
    %c0_38 = arith.constant 0 : index
    %c1 = arith.constant 1 : index
    %56 = vector.load %arg8[%c0_38, %c1] : memref<8x4xf32, #tpu.memory_space<vmem>>, vector<8x1xf32>
    %cst_39 = arith.constant dense<0xFF800000> : vector<8xf32>
    %57 = vector.multi_reduction <maximumf>, %55, %cst_39 [1] : vector<8x8xf32> to vector<8xf32>
    %58 = vector.shape_cast %57 : vector<8xf32> to vector<8x1xf32>
    %59 = arith.maximumf %56, %58 : vector<8x1xf32>
    %60 = arith.subf %56, %59 : vector<8x1xf32>
    %61 = math.exp %60 : vector<8x1xf32>
    %62 = vector.broadcast %59 : vector<8x1xf32> to vector<8x8xf32>
    %63 = arith.subf %55, %62 : vector<8x8xf32>
    %64 = math.exp %63 : vector<8x8xf32>
    %c0_40 = arith.constant 0 : index
    %c1_41 = arith.constant 1 : index
    %65 = vector.load %arg9[%c0_40, %c1_41] : memref<8x4xf32, #tpu.memory_space<vmem>>, vector<8x1xf32>
    %66 = arith.mulf %61, %65 : vector<8x1xf32>
    %cst_42 = arith.constant dense<0.000000e+00> : vector<8xf32>
    %67 = vector.multi_reduction <add>, %64, %cst_42 [1] : vector<8x8xf32> to vector<8xf32>
    %68 = vector.shape_cast %67 : vector<8xf32> to vector<8x1xf32>
    %69 = arith.addf %66, %68 : vector<8x1xf32>
    %c0_43 = arith.constant 0 : index
    %c1_44 = arith.constant 1 : index
    %70 = vector.load %arg9[%c0_43, %c1_44] : memref<8x4xf32, #tpu.memory_space<vmem>>, vector<8x1xf32>
    tpu.vector_store %arg9[%c0_43, %c1_44], %69 {strides = array<i32>} : memref<8x4xf32, #tpu.memory_space<vmem>>, vector<8x1xf32>,
    %c0_45 = arith.constant 0 : index
    %c32_46 = arith.constant 32 : index
    %71 = vector.load %arg10[%c0_45, %c32_46] : memref<8x128xf32, #tpu.memory_space<vmem>>, vector<8x32xf32>
    %72 = vector.broadcast %61 : vector<8x1xf32> to vector<8x32xf32>
    %73 = arith.mulf %72, %71 : vector<8x32xf32>
    %74 = arith.truncf %64 : vector<8x8xf32> to vector<8x8xbf16>
    %cst_47 = arith.constant dense<0.000000e+00> : vector<8x32xf32>
    %75 = tpu.matmul %74, %50, %cst_47 {dimension_numbers = #tpu.dot_dimension_numbers<[1], [0], [0], [1], [0, 0, 1, 1], [], []>} : vector<8x8xbf16>, vector<8x32xbf16>, vector<8x32xf32> -> vector<8x32xf32>
    %76 = arith.addf %73, %75 : vector<8x32xf32>
    %c0_48 = arith.constant 0 : index
    %c32_49 = arith.constant 32 : index
    %77 = vector.load %arg10[%c0_48, %c32_49] : memref<8x128xf32, #tpu.memory_space<vmem>>, vector<8x32xf32>
    tpu.vector_store %arg10[%c0_48, %c32_49], %76 {strides = array<i32>} : memref<8x128xf32, #tpu.memory_space<vmem>>, vector<8x32xf32>,
    %c0_50 = arith.constant 0 : index
    %c1_51 = arith.constant 1 : index
    %78 = vector.load %arg8[%c0_50, %c1_51] : memref<8x4xf32, #tpu.memory_space<vmem>>, vector<8x1xf32>
    tpu.vector_store %arg8[%c0_50, %c1_51], %59 {strides = array<i32>} : memref<8x4xf32, #tpu.memory_space<vmem>>, vector<8x1xf32>,
    %c0_52 = arith.constant 0 : index
    %c0_53 = arith.constant 0 : index
    %c64 = arith.constant 64 : index
    %79 = vector.load %arg3[%c0_52, %c0_53, %c64] : memref<1x8x128xf32, #tpu.memory_space<vmem>>, vector<1x8x32xf32>
    %80 = vector.shape_cast %79 : vector<1x8x32xf32> to vector<8x32xf32>
    %81 = arith.truncf %80 : vector<8x32xf32> to vector<8x32xbf16>
    %c0_54 = arith.constant 0 : index
    %c0_55 = arith.constant 0 : index
    %c64_56 = arith.constant 64 : index
    %82 = vector.load %arg4[%c0_54, %c0_55, %c64_56] : memref<1x8x128xf32, #tpu.memory_space<vmem>>, vector<1x8x32xf32>
    %83 = vector.shape_cast %82 : vector<1x8x32xf32> to vector<8x32xf32>
    %84 = arith.truncf %83 : vector<8x32xf32> to vector<8x32xbf16>
    %c0_57 = arith.constant 0 : index
    %c0_58 = arith.constant 0 : index
    %c64_59 = arith.constant 64 : index
    %85 = vector.load %arg5[%c0_57, %c0_58, %c64_59] : memref<1x8x128xf32, #tpu.memory_space<vmem>>, vector<1x8x32xf32>
    %86 = vector.shape_cast %85 : vector<1x8x32xf32> to vector<8x32xf32>
    %87 = arith.truncf %86 : vector<8x32xf32> to vector<8x32xbf16>
    %cst_60 = arith.constant dense<0.000000e+00> : vector<8x8xf32>
    %88 = tpu.matmul %81, %84, %cst_60 {dimension_numbers = #tpu.dot_dimension_numbers<[1], [1], [0], [0], [0, 0, 1, 0], [], []>} : vector<8x32xbf16>, vector<8x32xbf16>, vector<8x8xf32> -> vector<8x8xf32>
    %cst_61 = arith.constant 0.176776692 : f32
    %89 = vector.broadcast %cst_61 : f32 to vector<8x8xf32>
    %90 = arith.mulf %88, %89 : vector<8x8xf32>
    %91 = vector.broadcast %4 : vector<1x8xf32> to vector<8x8xf32>
    %92 = arith.addf %90, %91 : vector<8x8xf32>
    %c0_62 = arith.constant 0 : index
    %c2 = arith.constant 2 : index
    %93 = vector.load %arg8[%c0_62, %c2] : memref<8x4xf32, #tpu.memory_space<vmem>>, vector<8x1xf32>
    %cst_63 = arith.constant dense<0xFF800000> : vector<8xf32>
    %94 = vector.multi_reduction <maximumf>, %92, %cst_63 [1] : vector<8x8xf32> to vector<8xf32>
    %95 = vector.shape_cast %94 : vector<8xf32> to vector<8x1xf32>
    %96 = arith.maximumf %93, %95 : vector<8x1xf32>
    %97 = arith.subf %93, %96 : vector<8x1xf32>
    %98 = math.exp %97 : vector<8x1xf32>
    %99 = vector.broadcast %96 : vector<8x1xf32> to vector<8x8xf32>
    %100 = arith.subf %92, %99 : vector<8x8xf32>
    %101 = math.exp %100 : vector<8x8xf32>
    %c0_64 = arith.constant 0 : index
    %c2_65 = arith.constant 2 : index
    %102 = vector.load %arg9[%c0_64, %c2_65] : memref<8x4xf32, #tpu.memory_space<vmem>>, vector<8x1xf32>
    %103 = arith.mulf %98, %102 : vector<8x1xf32>
    %cst_66 = arith.constant dense<0.000000e+00> : vector<8xf32>
    %104 = vector.multi_reduction <add>, %101, %cst_66 [1] : vector<8x8xf32> to vector<8xf32>
    %105 = vector.shape_cast %104 : vector<8xf32> to vector<8x1xf32>
    %106 = arith.addf %103, %105 : vector<8x1xf32>
    %c0_67 = arith.constant 0 : index
    %c2_68 = arith.constant 2 : index
    %107 = vector.load %arg9[%c0_67, %c2_68] : memref<8x4xf32, #tpu.memory_space<vmem>>, vector<8x1xf32>
    tpu.vector_store %arg9[%c0_67, %c2_68], %106 {strides = array<i32>} : memref<8x4xf32, #tpu.memory_space<vmem>>, vector<8x1xf32>,
    %c0_69 = arith.constant 0 : index
    %c64_70 = arith.constant 64 : index
    %108 = vector.load %arg10[%c0_69, %c64_70] : memref<8x128xf32, #tpu.memory_space<vmem>>, vector<8x32xf32>
    %109 = vector.broadcast %98 : vector<8x1xf32> to vector<8x32xf32>
    %110 = arith.mulf %109, %108 : vector<8x32xf32>
    %111 = arith.truncf %101 : vector<8x8xf32> to vector<8x8xbf16>
    %cst_71 = arith.constant dense<0.000000e+00> : vector<8x32xf32>
    %112 = tpu.matmul %111, %87, %cst_71 {dimension_numbers = #tpu.dot_dimension_numbers<[1], [0], [0], [1], [0, 0, 1, 1], [], []>} : vector<8x8xbf16>, vector<8x32xbf16>, vector<8x32xf32> -> vector<8x32xf32>
    %113 = arith.addf %110, %112 : vector<8x32xf32>
    %c0_72 = arith.constant 0 : index
    %c64_73 = arith.constant 64 : index
    %114 = vector.load %arg10[%c0_72, %c64_73] : memref<8x128xf32, #tpu.memory_space<vmem>>, vector<8x32xf32>
    tpu.vector_store %arg10[%c0_72, %c64_73], %113 {strides = array<i32>} : memref<8x128xf32, #tpu.memory_space<vmem>>, vector<8x32xf32>,
    %c0_74 = arith.constant 0 : index
    %c2_75 = arith.constant 2 : index
    %115 = vector.load %arg8[%c0_74, %c2_75] : memref<8x4xf32, #tpu.memory_space<vmem>>, vector<8x1xf32>
    tpu.vector_store %arg8[%c0_74, %c2_75], %96 {strides = array<i32>} : memref<8x4xf32, #tpu.memory_space<vmem>>, vector<8x1xf32>,
    %c0_76 = arith.constant 0 : index
    %c0_77 = arith.constant 0 : index
    %c96 = arith.constant 96 : index
    %116 = vector.load %arg3[%c0_76, %c0_77, %c96] : memref<1x8x128xf32, #tpu.memory_space<vmem>>, vector<1x8x32xf32>
    %117 = vector.shape_cast %116 : vector<1x8x32xf32> to vector<8x32xf32>
    %118 = arith.truncf %117 : vector<8x32xf32> to vector<8x32xbf16>
    %c0_78 = arith.constant 0 : index
    %c0_79 = arith.constant 0 : index
    %c96_80 = arith.constant 96 : index
    %119 = vector.load %arg4[%c0_78, %c0_79, %c96_80] : memref<1x8x128xf32, #tpu.memory_space<vmem>>, vector<1x8x32xf32>
    %120 = vector.shape_cast %119 : vector<1x8x32xf32> to vector<8x32xf32>
    %121 = arith.truncf %120 : vector<8x32xf32> to vector<8x32xbf16>
    %c0_81 = arith.constant 0 : index
    %c0_82 = arith.constant 0 : index
    %c96_83 = arith.constant 96 : index
    %122 = vector.load %arg5[%c0_81, %c0_82, %c96_83] : memref<1x8x128xf32, #tpu.memory_space<vmem>>, vector<1x8x32xf32>
    %123 = vector.shape_cast %122 : vector<1x8x32xf32> to vector<8x32xf32>
    %124 = arith.truncf %123 : vector<8x32xf32> to vector<8x32xbf16>
    %cst_84 = arith.constant dense<0.000000e+00> : vector<8x8xf32>
    %125 = tpu.matmul %118, %121, %cst_84 {dimension_numbers = #tpu.dot_dimension_numbers<[1], [1], [0], [0], [0, 0, 1, 0], [], []>} : vector<8x32xbf16>, vector<8x32xbf16>, vector<8x8xf32> -> vector<8x8xf32>
    %cst_85 = arith.constant 0.176776692 : f32
    %126 = vector.broadcast %cst_85 : f32 to vector<8x8xf32>
    %127 = arith.mulf %125, %126 : vector<8x8xf32>
    %128 = vector.broadcast %4 : vector<1x8xf32> to vector<8x8xf32>
    %129 = arith.addf %127, %128 : vector<8x8xf32>
    %c0_86 = arith.constant 0 : index
    %c3 = arith.constant 3 : index
    %130 = vector.load %arg8[%c0_86, %c3] : memref<8x4xf32, #tpu.memory_space<vmem>>, vector<8x1xf32>
    %cst_87 = arith.constant dense<0xFF800000> : vector<8xf32>
    %131 = vector.multi_reduction <maximumf>, %129, %cst_87 [1] : vector<8x8xf32> to vector<8xf32>
    %132 = vector.shape_cast %131 : vector<8xf32> to vector<8x1xf32>
    %133 = arith.maximumf %130, %132 : vector<8x1xf32>
    %134 = arith.subf %130, %133 : vector<8x1xf32>
    %135 = math.exp %134 : vector<8x1xf32>
    %136 = vector.broadcast %133 : vector<8x1xf32> to vector<8x8xf32>
    %137 = arith.subf %129, %136 : vector<8x8xf32>
    %138 = math.exp %137 : vector<8x8xf32>
    %c0_88 = arith.constant 0 : index
    %c3_89 = arith.constant 3 : index
    %139 = vector.load %arg9[%c0_88, %c3_89] : memref<8x4xf32, #tpu.memory_space<vmem>>, vector<8x1xf32>
    %140 = arith.mulf %135, %139 : vector<8x1xf32>
    %cst_90 = arith.constant dense<0.000000e+00> : vector<8xf32>
    %141 = vector.multi_reduction <add>, %138, %cst_90 [1] : vector<8x8xf32> to vector<8xf32>
    %142 = vector.shape_cast %141 : vector<8xf32> to vector<8x1xf32>
    %143 = arith.addf %140, %142 : vector<8x1xf32>
    %c0_91 = arith.constant 0 : index
    %c3_92 = arith.constant 3 : index
    %144 = vector.load %arg9[%c0_91, %c3_92] : memref<8x4xf32, #tpu.memory_space<vmem>>, vector<8x1xf32>
    tpu.vector_store %arg9[%c0_91, %c3_92], %143 {strides = array<i32>} : memref<8x4xf32, #tpu.memory_space<vmem>>, vector<8x1xf32>,
    %c0_93 = arith.constant 0 : index
    %c96_94 = arith.constant 96 : index
    %145 = vector.load %arg10[%c0_93, %c96_94] : memref<8x128xf32, #tpu.memory_space<vmem>>, vector<8x32xf32>
    %146 = vector.broadcast %135 : vector<8x1xf32> to vector<8x32xf32>
    %147 = arith.mulf %146, %145 : vector<8x32xf32>
    %148 = arith.truncf %138 : vector<8x8xf32> to vector<8x8xbf16>
    %cst_95 = arith.constant dense<0.000000e+00> : vector<8x32xf32>
    %149 = tpu.matmul %148, %124, %cst_95 {dimension_numbers = #tpu.dot_dimension_numbers<[1], [0], [0], [1], [0, 0, 1, 1], [], []>} : vector<8x8xbf16>, vector<8x32xbf16>, vector<8x32xf32> -> vector<8x32xf32>
    %150 = arith.addf %147, %149 : vector<8x32xf32>
    %c0_96 = arith.constant 0 : index
    %c96_97 = arith.constant 96 : index
    %151 = vector.load %arg10[%c0_96, %c96_97] : memref<8x128xf32, #tpu.memory_space<vmem>>, vector<8x32xf32>
    tpu.vector_store %arg10[%c0_96, %c96_97], %150 {strides = array<i32>} : memref<8x128xf32, #tpu.memory_space<vmem>>, vector<8x32xf32>,
    %c0_98 = arith.constant 0 : index
    %c3_99 = arith.constant 3 : index
    %152 = vector.load %arg8[%c0_98, %c3_99] : memref<8x4xf32, #tpu.memory_space<vmem>>, vector<8x1xf32>
    tpu.vector_store %arg8[%c0_98, %c3_99], %133 {strides = array<i32>} : memref<8x4xf32, #tpu.memory_space<vmem>>, vector<8x1xf32>,
    %c0_i32_100 = arith.constant 0 : i32
    %153 = arith.cmpi eq, %arg2, %c0_i32_100 : i32
    %154 = arith.extui %153 : i1 to i32
    %c0_i32_101 = arith.constant 0 : i32
    %155 = arith.cmpi ne, %154, %c0_i32_101 : i32
    scf.if %155 {
      %c0_102 = arith.constant 0 : index
      %c0_103 = arith.constant 0 : index
      %156 = vector.load %arg9[%c0_102, %c0_103] : memref<8x4xf32, #tpu.memory_space<vmem>>, vector<8x1xf32>
      %157 = tpu.reciprocal %156 {approx = true} : vector<8x1xf32> -> vector<8x1xf32>
      %c0_104 = arith.constant 0 : index
      %c0_105 = arith.constant 0 : index
      %158 = vector.load %arg10[%c0_104, %c0_105] : memref<8x128xf32, #tpu.memory_space<vmem>>, vector<8x32xf32>
      %159 = vector.broadcast %157 : vector<8x1xf32> to vector<8x32xf32>
      %160 = arith.mulf %158, %159 : vector<8x32xf32>
      %c0_106 = arith.constant 0 : index
      %c0_107 = arith.constant 0 : index
      %c0_108 = arith.constant 0 : index
      %161 = vector.load %arg7[%c0_106, %c0_107, %c0_108] : memref<1x8x128xf32, #tpu.memory_space<vmem>>, vector<1x8x32xf32>
      %162 = vector.shape_cast %161 : vector<1x8x32xf32> to vector<8x32xf32>
      %163 = vector.shape_cast %160 : vector<8x32xf32> to vector<1x8x32xf32>
      tpu.vector_store %arg7[%c0_106, %c0_107, %c0_108], %163 {strides = array<i32>} : memref<1x8x128xf32, #tpu.memory_space<vmem>>, vector<1x8x32xf32>,
      %c0_109 = arith.constant 0 : index
      %c1_110 = arith.constant 1 : index
      %164 = vector.load %arg9[%c0_109, %c1_110] : memref<8x4xf32, #tpu.memory_space<vmem>>, vector<8x1xf32>
      %165 = tpu.reciprocal %164 {approx = true} : vector<8x1xf32> -> vector<8x1xf32>
      %c0_111 = arith.constant 0 : index
      %c32_112 = arith.constant 32 : index
      %166 = vector.load %arg10[%c0_111, %c32_112] : memref<8x128xf32, #tpu.memory_space<vmem>>, vector<8x32xf32>
      %167 = vector.broadcast %165 : vector<8x1xf32> to vector<8x32xf32>
      %168 = arith.mulf %166, %167 : vector<8x32xf32>
      %c0_113 = arith.constant 0 : index
      %c0_114 = arith.constant 0 : index
      %c32_115 = arith.constant 32 : index
      %169 = vector.load %arg7[%c0_113, %c0_114, %c32_115] : memref<1x8x128xf32, #tpu.memory_space<vmem>>, vector<1x8x32xf32>
      %170 = vector.shape_cast %169 : vector<1x8x32xf32> to vector<8x32xf32>
      %171 = vector.shape_cast %168 : vector<8x32xf32> to vector<1x8x32xf32>
      tpu.vector_store %arg7[%c0_113, %c0_114, %c32_115], %171 {strides = array<i32>} : memref<1x8x128xf32, #tpu.memory_space<vmem>>, vector<1x8x32xf32>,
      %c0_116 = arith.constant 0 : index
      %c2_117 = arith.constant 2 : index
      %172 = vector.load %arg9[%c0_116, %c2_117] : memref<8x4xf32, #tpu.memory_space<vmem>>, vector<8x1xf32>
      %173 = tpu.reciprocal %172 {approx = true} : vector<8x1xf32> -> vector<8x1xf32>
      %c0_118 = arith.constant 0 : index
      %c64_119 = arith.constant 64 : index
      %174 = vector.load %arg10[%c0_118, %c64_119] : memref<8x128xf32, #tpu.memory_space<vmem>>, vector<8x32xf32>
      %175 = vector.broadcast %173 : vector<8x1xf32> to vector<8x32xf32>
      %176 = arith.mulf %174, %175 : vector<8x32xf32>
      %c0_120 = arith.constant 0 : index
      %c0_121 = arith.constant 0 : index
      %c64_122 = arith.constant 64 : index
      %177 = vector.load %arg7[%c0_120, %c0_121, %c64_122] : memref<1x8x128xf32, #tpu.memory_space<vmem>>, vector<1x8x32xf32>
      %178 = vector.shape_cast %177 : vector<1x8x32xf32> to vector<8x32xf32>
      %179 = vector.shape_cast %176 : vector<8x32xf32> to vector<1x8x32xf32>
      tpu.vector_store %arg7[%c0_120, %c0_121, %c64_122], %179 {strides = array<i32>} : memref<1x8x128xf32, #tpu.memory_space<vmem>>, vector<1x8x32xf32>,
      %c0_123 = arith.constant 0 : index
      %c3_124 = arith.constant 3 : index
      %180 = vector.load %arg9[%c0_123, %c3_124] : memref<8x4xf32, #tpu.memory_space<vmem>>, vector<8x1xf32>
      %181 = tpu.reciprocal %180 {approx = true} : vector<8x1xf32> -> vector<8x1xf32>
      %c0_125 = arith.constant 0 : index
      %c96_126 = arith.constant 96 : index
      %182 = vector.load %arg10[%c0_125, %c96_126] : memref<8x128xf32, #tpu.memory_space<vmem>>, vector<8x32xf32>
      %183 = vector.broadcast %181 : vector<8x1xf32> to vector<8x32xf32>
      %184 = arith.mulf %182, %183 : vector<8x32xf32>
      %c0_127 = arith.constant 0 : index
      %c0_128 = arith.constant 0 : index
      %c96_129 = arith.constant 96 : index
      %185 = vector.load %arg7[%c0_127, %c0_128, %c96_129] : memref<1x8x128xf32, #tpu.memory_space<vmem>>, vector<1x8x32xf32>
      %186 = vector.shape_cast %185 : vector<1x8x32xf32> to vector<8x32xf32>
      %187 = vector.shape_cast %184 : vector<8x32xf32> to vector<1x8x32xf32>
      tpu.vector_store %arg7[%c0_127, %c0_128, %c96_129], %187 {strides = array<i32>} : memref<1x8x128xf32, #tpu.memory_space<vmem>>, vector<1x8x32xf32>,
    } else {
    }
    return
  }
  func.func @transform_0(%arg0: i32, %arg1: i32, %arg2: i32) -> (i32, i32, i32) {
    %c0_i32 = arith.constant 0 : i32
    %c0_i32_0 = arith.constant 0 : i32
    return %arg0, %arg1, %c0_i32 : i32, i32, i32
  }
  func.func @transform_1(%arg0: i32, %arg1: i32, %arg2: i32) -> (i32, i32, i32) {
    %c1_i32 = arith.constant 1 : i32
    %c0_i32 = arith.constant 0 : i32
    return %arg0, %arg2, %c1_i32 : i32, i32, i32
  }
  func.func @transform_2(%arg0: i32, %arg1: i32, %arg2: i32) -> (i32, i32, i32) {
    %c2_i32 = arith.constant 2 : i32
    %c0_i32 = arith.constant 0 : i32
    return %arg0, %arg2, %c2_i32 : i32, i32, i32
  }
  func.func @transform_3(%arg0: i32, %arg1: i32, %arg2: i32) -> (i32, i32, i32) {
    %c0_i32 = arith.constant 0 : i32
    %c0_i32_0 = arith.constant 0 : i32
    return %arg0, %c0_i32, %arg2 : i32, i32, i32
  }
  func.func @transform_4(%arg0: i32, %arg1: i32, %arg2: i32) -> (i32, i32, i32) {
    %c0_i32 = arith.constant 0 : i32
    %c0_i32_0 = arith.constant 0 : i32
    return %arg0, %arg1, %c0_i32 : i32, i32, i32
  }
}

module attributes {stable_mosaic.version = 11 : i64} {
  func.func @_matmul_bias_kernel(%arg0: i32, %arg1: i32, %arg2: i32, %arg3: memref<16x128xbf16, #tpu.memory_space<vmem>>, %arg4: memref<128x256xbf16, #tpu.memory_space<vmem>>, %arg5: memref<1x256xf32, #tpu.memory_space<vmem>>, %arg6: memref<16x256xf32, #tpu.memory_space<vmem>>, %arg7: memref<16x256xf32, #tpu.memory_space<vmem>>) attributes {dimension_semantics = [#tpu.dimension_semantics<parallel>, #tpu.dimension_semantics<parallel>, #tpu.dimension_semantics<arbitrary>], iteration_bounds = array<i64: 1, 1, 1>, scalar_prefetch = 0 : i64, scratch_operands = 1 : i64, tpu.core_type = #tpu.core_type<tc>, window_params = [{transform_indices = @transform_0, window_bounds = array<i64: 16, 128>}, {transform_indices = @transform_1, window_bounds = array<i64: 128, 256>}, {transform_indices = @transform_2, window_bounds = array<i64: 1, 256>}, {transform_indices = @transform_3, window_bounds = array<i64: 16, 256>}]} {
    %c0_i32 = arith.constant 0 : i32
    %0 = arith.cmpi eq, %arg2, %c0_i32 : i32
    %1 = arith.extui %0 : i1 to i32
    %c0_i32_0 = arith.constant 0 : i32
    %2 = arith.cmpi ne, %1, %c0_i32_0 : i32
    scf.if %2 {
      %cst_10 = arith.constant 0.000000e+00 : f32
      %12 = vector.broadcast %cst_10 : f32 to vector<16x256xf32>
      %c0_11 = arith.constant 0 : index
      %c0_12 = arith.constant 0 : index
      %13 = vector.load %arg7[%c0_11, %c0_12] : memref<16x256xf32, #tpu.memory_space<vmem>>, vector<16x256xf32>
      tpu.vector_store %arg7[%c0_11, %c0_12], %12 {strides = array<i32>} : memref<16x256xf32, #tpu.memory_space<vmem>>, vector<16x256xf32>,
    } else {
    }
    %c0 = arith.constant 0 : index
    %c0_1 = arith.constant 0 : index
    %3 = vector.load %arg7[%c0, %c0_1] : memref<16x256xf32, #tpu.memory_space<vmem>>, vector<16x256xf32>
    %c0_2 = arith.constant 0 : index
    %c0_3 = arith.constant 0 : index
    %4 = vector.load %arg3[%c0_2, %c0_3] : memref<16x128xbf16, #tpu.memory_space<vmem>>, vector<16x128xbf16>
    %c0_4 = arith.constant 0 : index
    %c0_5 = arith.constant 0 : index
    %5 = vector.load %arg4[%c0_4, %c0_5] : memref<128x256xbf16, #tpu.memory_space<vmem>>, vector<128x256xbf16>
    %cst = arith.constant dense<0.000000e+00> : vector<16x256xf32>
    %6 = tpu.matmul %4, %5, %cst {dimension_numbers = #tpu.dot_dimension_numbers<[1], [0], [0], [1], [0, 0, 1, 1], [], []>} : vector<16x128xbf16>, vector<128x256xbf16>, vector<16x256xf32> -> vector<16x256xf32>
    %7 = arith.addf %3, %6 : vector<16x256xf32>
    %c0_6 = arith.constant 0 : index
    %c0_7 = arith.constant 0 : index
    %8 = vector.load %arg7[%c0_6, %c0_7] : memref<16x256xf32, #tpu.memory_space<vmem>>, vector<16x256xf32>
    tpu.vector_store %arg7[%c0_6, %c0_7], %7 {strides = array<i32>} : memref<16x256xf32, #tpu.memory_space<vmem>>, vector<16x256xf32>,
    %c0_i32_8 = arith.constant 0 : i32
    %9 = arith.cmpi eq, %arg2, %c0_i32_8 : i32
    %10 = arith.extui %9 : i1 to i32
    %c0_i32_9 = arith.constant 0 : i32
    %11 = arith.cmpi ne, %10, %c0_i32_9 : i32
    scf.if %11 {
      %c0_10 = arith.constant 0 : index
      %c0_11 = arith.constant 0 : index
      %12 = vector.load %arg7[%c0_10, %c0_11] : memref<16x256xf32, #tpu.memory_space<vmem>>, vector<16x256xf32>
      %c0_12 = arith.constant 0 : index
      %c0_13 = arith.constant 0 : index
      %13 = vector.load %arg5[%c0_12, %c0_13] : memref<1x256xf32, #tpu.memory_space<vmem>>, vector<1x256xf32>
      %14 = vector.broadcast %13 : vector<1x256xf32> to vector<16x256xf32>
      %15 = arith.addf %12, %14 : vector<16x256xf32>
      %c0_14 = arith.constant 0 : index
      %c0_15 = arith.constant 0 : index
      %16 = vector.load %arg6[%c0_14, %c0_15] : memref<16x256xf32, #tpu.memory_space<vmem>>, vector<16x256xf32>
      tpu.vector_store %arg6[%c0_14, %c0_15], %15 {strides = array<i32>} : memref<16x256xf32, #tpu.memory_space<vmem>>, vector<16x256xf32>,
    } else {
    }
    return
  }
  func.func @transform_0(%arg0: i32, %arg1: i32, %arg2: i32) -> (i32, i32) {
    %c0_i32 = arith.constant 0 : i32
    return %arg0, %arg2 : i32, i32
  }
  func.func @transform_1(%arg0: i32, %arg1: i32, %arg2: i32) -> (i32, i32) {
    %c0_i32 = arith.constant 0 : i32
    return %arg2, %arg1 : i32, i32
  }
  func.func @transform_2(%arg0: i32, %arg1: i32, %arg2: i32) -> (i32, i32) {
    %c0_i32 = arith.constant 0 : i32
    %c0_i32_0 = arith.constant 0 : i32
    return %c0_i32, %arg1 : i32, i32
  }
  func.func @transform_3(%arg0: i32, %arg1: i32, %arg2: i32) -> (i32, i32) {
    %c0_i32 = arith.constant 0 : i32
    return %arg0, %arg1 : i32, i32
  }
}

module attributes {stable_mosaic.version = 11 : i64} {
  func.func @_matmul_bias_kernel(%arg0: i32, %arg1: i32, %arg2: i32, %arg3: memref<16x128xbf16, #tpu.memory_space<vmem>>, %arg4: memref<128x128xbf16, #tpu.memory_space<vmem>>, %arg5: memref<1x128xf32, #tpu.memory_space<vmem>>, %arg6: memref<16x128xf32, #tpu.memory_space<vmem>>, %arg7: memref<16x128xf32, #tpu.memory_space<vmem>>) attributes {dimension_semantics = [#tpu.dimension_semantics<parallel>, #tpu.dimension_semantics<parallel>, #tpu.dimension_semantics<arbitrary>], iteration_bounds = array<i64: 1, 1, 1>, scalar_prefetch = 0 : i64, scratch_operands = 1 : i64, tpu.core_type = #tpu.core_type<tc>, window_params = [{transform_indices = @transform_0, window_bounds = array<i64: 16, 128>}, {transform_indices = @transform_1, window_bounds = array<i64: 128, 128>}, {transform_indices = @transform_2, window_bounds = array<i64: 1, 128>}, {transform_indices = @transform_3, window_bounds = array<i64: 16, 128>}]} {
    %c0_i32 = arith.constant 0 : i32
    %0 = arith.cmpi eq, %arg2, %c0_i32 : i32
    %1 = arith.extui %0 : i1 to i32
    %c0_i32_0 = arith.constant 0 : i32
    %2 = arith.cmpi ne, %1, %c0_i32_0 : i32
    scf.if %2 {
      %cst_10 = arith.constant 0.000000e+00 : f32
      %12 = vector.broadcast %cst_10 : f32 to vector<16x128xf32>
      %c0_11 = arith.constant 0 : index
      %c0_12 = arith.constant 0 : index
      %13 = vector.load %arg7[%c0_11, %c0_12] : memref<16x128xf32, #tpu.memory_space<vmem>>, vector<16x128xf32>
      tpu.vector_store %arg7[%c0_11, %c0_12], %12 {strides = array<i32>} : memref<16x128xf32, #tpu.memory_space<vmem>>, vector<16x128xf32>,
    } else {
    }
    %c0 = arith.constant 0 : index
    %c0_1 = arith.constant 0 : index
    %3 = vector.load %arg7[%c0, %c0_1] : memref<16x128xf32, #tpu.memory_space<vmem>>, vector<16x128xf32>
    %c0_2 = arith.constant 0 : index
    %c0_3 = arith.constant 0 : index
    %4 = vector.load %arg3[%c0_2, %c0_3] : memref<16x128xbf16, #tpu.memory_space<vmem>>, vector<16x128xbf16>
    %c0_4 = arith.constant 0 : index
    %c0_5 = arith.constant 0 : index
    %5 = vector.load %arg4[%c0_4, %c0_5] : memref<128x128xbf16, #tpu.memory_space<vmem>>, vector<128x128xbf16>
    %cst = arith.constant dense<0.000000e+00> : vector<16x128xf32>
    %6 = tpu.matmul %4, %5, %cst {dimension_numbers = #tpu.dot_dimension_numbers<[1], [0], [0], [1], [0, 0, 1, 1], [], []>} : vector<16x128xbf16>, vector<128x128xbf16>, vector<16x128xf32> -> vector<16x128xf32>
    %7 = arith.addf %3, %6 : vector<16x128xf32>
    %c0_6 = arith.constant 0 : index
    %c0_7 = arith.constant 0 : index
    %8 = vector.load %arg7[%c0_6, %c0_7] : memref<16x128xf32, #tpu.memory_space<vmem>>, vector<16x128xf32>
    tpu.vector_store %arg7[%c0_6, %c0_7], %7 {strides = array<i32>} : memref<16x128xf32, #tpu.memory_space<vmem>>, vector<16x128xf32>,
    %c0_i32_8 = arith.constant 0 : i32
    %9 = arith.cmpi eq, %arg2, %c0_i32_8 : i32
    %10 = arith.extui %9 : i1 to i32
    %c0_i32_9 = arith.constant 0 : i32
    %11 = arith.cmpi ne, %10, %c0_i32_9 : i32
    scf.if %11 {
      %c0_10 = arith.constant 0 : index
      %c0_11 = arith.constant 0 : index
      %12 = vector.load %arg7[%c0_10, %c0_11] : memref<16x128xf32, #tpu.memory_space<vmem>>, vector<16x128xf32>
      %c0_12 = arith.constant 0 : index
      %c0_13 = arith.constant 0 : index
      %13 = vector.load %arg5[%c0_12, %c0_13] : memref<1x128xf32, #tpu.memory_space<vmem>>, vector<1x128xf32>
      %14 = vector.broadcast %13 : vector<1x128xf32> to vector<16x128xf32>
      %15 = arith.addf %12, %14 : vector<16x128xf32>
      %c0_14 = arith.constant 0 : index
      %c0_15 = arith.constant 0 : index
      %16 = vector.load %arg6[%c0_14, %c0_15] : memref<16x128xf32, #tpu.memory_space<vmem>>, vector<16x128xf32>
      tpu.vector_store %arg6[%c0_14, %c0_15], %15 {strides = array<i32>} : memref<16x128xf32, #tpu.memory_space<vmem>>, vector<16x128xf32>,
    } else {
    }
    return
  }
  func.func @transform_0(%arg0: i32, %arg1: i32, %arg2: i32) -> (i32, i32) {
    %c0_i32 = arith.constant 0 : i32
    return %arg0, %arg2 : i32, i32
  }
  func.func @transform_1(%arg0: i32, %arg1: i32, %arg2: i32) -> (i32, i32) {
    %c0_i32 = arith.constant 0 : i32
    return %arg2, %arg1 : i32, i32
  }
  func.func @transform_2(%arg0: i32, %arg1: i32, %arg2: i32) -> (i32, i32) {
    %c0_i32 = arith.constant 0 : i32
    %c0_i32_0 = arith.constant 0 : i32
    return %c0_i32, %arg1 : i32, i32
  }
  func.func @transform_3(%arg0: i32, %arg1: i32, %arg2: i32) -> (i32, i32) {
    %c0_i32 = arith.constant 0 : i32
    return %arg0, %arg1 : i32, i32
  }
}

module attributes {stable_mosaic.version = 11 : i64} {
  func.func @_attn_kernel(%arg0: i32, %arg1: i32, %arg2: i32, %arg3: memref<1x8x128xf32, #tpu.memory_space<vmem>>, %arg4: memref<1x8x128xf32, #tpu.memory_space<vmem>>, %arg5: memref<1x8x128xf32, #tpu.memory_space<vmem>>, %arg6: memref<1x8x8xf32, #tpu.memory_space<vmem>>, %arg7: memref<1x8x128xf32, #tpu.memory_space<vmem>>, %arg8: memref<8x4xf32, #tpu.memory_space<vmem>>, %arg9: memref<8x4xf32, #tpu.memory_space<vmem>>, %arg10: memref<8x128xf32, #tpu.memory_space<vmem>>) attributes {dimension_semantics = [#tpu.dimension_semantics<parallel>, #tpu.dimension_semantics<parallel>, #tpu.dimension_semantics<arbitrary>], iteration_bounds = array<i64: 2, 1, 1>, scalar_prefetch = 0 : i64, scratch_operands = 3 : i64, tpu.core_type = #tpu.core_type<tc>, window_params = [{transform_indices = @transform_0, window_bounds = array<i64: 1, 8, 128>}, {transform_indices = @transform_1, window_bounds = array<i64: 1, 8, 128>}, {transform_indices = @transform_2, window_bounds = array<i64: 1, 8, 128>}, {transform_indices = @transform_3, window_bounds = array<i64: 1, 8, 8>}, {transform_indices = @transform_4, window_bounds = array<i64: 1, 8, 128>}]} {
    %c0_i32 = arith.constant 0 : i32
    %0 = arith.cmpi eq, %arg2, %c0_i32 : i32
    %1 = arith.extui %0 : i1 to i32
    %c0_i32_0 = arith.constant 0 : i32
    %2 = arith.cmpi ne, %1, %c0_i32_0 : i32
    scf.if %2 {
      %cst_102 = arith.constant 0xFF800000 : f32
      %152 = vector.broadcast %cst_102 : f32 to vector<8x4xf32>
      %c0_103 = arith.constant 0 : index
      %c0_104 = arith.constant 0 : index
      %153 = vector.load %arg8[%c0_103, %c0_104] : memref<8x4xf32, #tpu.memory_space<vmem>>, vector<8x4xf32>
      tpu.vector_store %arg8[%c0_103, %c0_104], %152 {strides = array<i32>} : memref<8x4xf32, #tpu.memory_space<vmem>>, vector<8x4xf32>,
      %cst_105 = arith.constant 0.000000e+00 : f32
      %154 = vector.broadcast %cst_105 : f32 to vector<8x4xf32>
      %c0_106 = arith.constant 0 : index
      %c0_107 = arith.constant 0 : index
      %155 = vector.load %arg9[%c0_106, %c0_107] : memref<8x4xf32, #tpu.memory_space<vmem>>, vector<8x4xf32>
      tpu.vector_store %arg9[%c0_106, %c0_107], %154 {strides = array<i32>} : memref<8x4xf32, #tpu.memory_space<vmem>>, vector<8x4xf32>,
      %cst_108 = arith.constant 0.000000e+00 : f32
      %156 = vector.broadcast %cst_108 : f32 to vector<8x128xf32>
      %c0_109 = arith.constant 0 : index
      %c0_110 = arith.constant 0 : index
      %157 = vector.load %arg10[%c0_109, %c0_110] : memref<8x128xf32, #tpu.memory_space<vmem>>, vector<8x128xf32>
      tpu.vector_store %arg10[%c0_109, %c0_110], %156 {strides = array<i32>} : memref<8x128xf32, #tpu.memory_space<vmem>>, vector<8x128xf32>,
    } else {
    }
    %c0 = arith.constant 0 : index
    %c0_1 = arith.constant 0 : index
    %c0_2 = arith.constant 0 : index
    %3 = vector.load %arg6[%c0, %c0_1, %c0_2] : memref<1x8x8xf32, #tpu.memory_space<vmem>>, vector<1x8x8xf32>
    %4 = vector.shape_cast %3 : vector<1x8x8xf32> to vector<8x8xf32>
    %c0_3 = arith.constant 0 : index
    %c0_4 = arith.constant 0 : index
    %c0_5 = arith.constant 0 : index
    %5 = vector.load %arg3[%c0_3, %c0_4, %c0_5] : memref<1x8x128xf32, #tpu.memory_space<vmem>>, vector<1x8x32xf32>
    %6 = vector.shape_cast %5 : vector<1x8x32xf32> to vector<8x32xf32>
    %7 = arith.truncf %6 : vector<8x32xf32> to vector<8x32xbf16>
    %c0_6 = arith.constant 0 : index
    %c0_7 = arith.constant 0 : index
    %c0_8 = arith.constant 0 : index
    %8 = vector.load %arg4[%c0_6, %c0_7, %c0_8] : memref<1x8x128xf32, #tpu.memory_space<vmem>>, vector<1x8x32xf32>
    %9 = vector.shape_cast %8 : vector<1x8x32xf32> to vector<8x32xf32>
    %10 = arith.truncf %9 : vector<8x32xf32> to vector<8x32xbf16>
    %c0_9 = arith.constant 0 : index
    %c0_10 = arith.constant 0 : index
    %c0_11 = arith.constant 0 : index
    %11 = vector.load %arg5[%c0_9, %c0_10, %c0_11] : memref<1x8x128xf32, #tpu.memory_space<vmem>>, vector<1x8x32xf32>
    %12 = vector.shape_cast %11 : vector<1x8x32xf32> to vector<8x32xf32>
    %13 = arith.truncf %12 : vector<8x32xf32> to vector<8x32xbf16>
    %cst = arith.constant dense<0.000000e+00> : vector<8x8xf32>
    %14 = tpu.matmul %7, %10, %cst {dimension_numbers = #tpu.dot_dimension_numbers<[1], [1], [0], [0], [0, 0, 1, 0], [], []>} : vector<8x32xbf16>, vector<8x32xbf16>, vector<8x8xf32> -> vector<8x8xf32>
    %cst_12 = arith.constant 0.176776692 : f32
    %15 = vector.broadcast %cst_12 : f32 to vector<8x8xf32>
    %16 = arith.mulf %14, %15 : vector<8x8xf32>
    %17 = arith.addf %16, %4 : vector<8x8xf32>
    %c0_13 = arith.constant 0 : index
    %c0_14 = arith.constant 0 : index
    %18 = vector.load %arg8[%c0_13, %c0_14] : memref<8x4xf32, #tpu.memory_space<vmem>>, vector<8x1xf32>
    %cst_15 = arith.constant dense<0xFF800000> : vector<8xf32>
    %19 = vector.multi_reduction <maximumf>, %17, %cst_15 [1] : vector<8x8xf32> to vector<8xf32>
    %20 = vector.shape_cast %19 : vector<8xf32> to vector<8x1xf32>
    %21 = arith.maximumf %18, %20 : vector<8x1xf32>
    %22 = arith.subf %18, %21 : vector<8x1xf32>
    %23 = math.exp %22 : vector<8x1xf32>
    %24 = vector.broadcast %21 : vector<8x1xf32> to vector<8x8xf32>
    %25 = arith.subf %17, %24 : vector<8x8xf32>
    %26 = math.exp %25 : vector<8x8xf32>
    %c0_16 = arith.constant 0 : index
    %c0_17 = arith.constant 0 : index
    %27 = vector.load %arg9[%c0_16, %c0_17] : memref<8x4xf32, #tpu.memory_space<vmem>>, vector<8x1xf32>
    %28 = arith.mulf %23, %27 : vector<8x1xf32>
    %cst_18 = arith.constant dense<0.000000e+00> : vector<8xf32>
    %29 = vector.multi_reduction <add>, %26, %cst_18 [1] : vector<8x8xf32> to vector<8xf32>
    %30 = vector.shape_cast %29 : vector<8xf32> to vector<8x1xf32>
    %31 = arith.addf %28, %30 : vector<8x1xf32>
    %c0_19 = arith.constant 0 : index
    %c0_20 = arith.constant 0 : index
    %32 = vector.load %arg9[%c0_19, %c0_20] : memref<8x4xf32, #tpu.memory_space<vmem>>, vector<8x1xf32>
    tpu.vector_store %arg9[%c0_19, %c0_20], %31 {strides = array<i32>} : memref<8x4xf32, #tpu.memory_space<vmem>>, vector<8x1xf32>,
    %c0_21 = arith.constant 0 : index
    %c0_22 = arith.constant 0 : index
    %33 = vector.load %arg10[%c0_21, %c0_22] : memref<8x128xf32, #tpu.memory_space<vmem>>, vector<8x32xf32>
    %34 = vector.broadcast %23 : vector<8x1xf32> to vector<8x32xf32>
    %35 = arith.mulf %34, %33 : vector<8x32xf32>
    %36 = arith.truncf %26 : vector<8x8xf32> to vector<8x8xbf16>
    %cst_23 = arith.constant dense<0.000000e+00> : vector<8x32xf32>
    %37 = tpu.matmul %36, %13, %cst_23 {dimension_numbers = #tpu.dot_dimension_numbers<[1], [0], [0], [1], [0, 0, 1, 1], [], []>} : vector<8x8xbf16>, vector<8x32xbf16>, vector<8x32xf32> -> vector<8x32xf32>
    %38 = arith.addf %35, %37 : vector<8x32xf32>
    %c0_24 = arith.constant 0 : index
    %c0_25 = arith.constant 0 : index
    %39 = vector.load %arg10[%c0_24, %c0_25] : memref<8x128xf32, #tpu.memory_space<vmem>>, vector<8x32xf32>
    tpu.vector_store %arg10[%c0_24, %c0_25], %38 {strides = array<i32>} : memref<8x128xf32, #tpu.memory_space<vmem>>, vector<8x32xf32>,
    %c0_26 = arith.constant 0 : index
    %c0_27 = arith.constant 0 : index
    %40 = vector.load %arg8[%c0_26, %c0_27] : memref<8x4xf32, #tpu.memory_space<vmem>>, vector<8x1xf32>
    tpu.vector_store %arg8[%c0_26, %c0_27], %21 {strides = array<i32>} : memref<8x4xf32, #tpu.memory_space<vmem>>, vector<8x1xf32>,
    %c0_28 = arith.constant 0 : index
    %c0_29 = arith.constant 0 : index
    %c32 = arith.constant 32 : index
    %41 = vector.load %arg3[%c0_28, %c0_29, %c32] : memref<1x8x128xf32, #tpu.memory_space<vmem>>, vector<1x8x32xf32>
    %42 = vector.shape_cast %41 : vector<1x8x32xf32> to vector<8x32xf32>
    %43 = arith.truncf %42 : vector<8x32xf32> to vector<8x32xbf16>
    %c0_30 = arith.constant 0 : index
    %c0_31 = arith.constant 0 : index
    %c32_32 = arith.constant 32 : index
    %44 = vector.load %arg4[%c0_30, %c0_31, %c32_32] : memref<1x8x128xf32, #tpu.memory_space<vmem>>, vector<1x8x32xf32>
    %45 = vector.shape_cast %44 : vector<1x8x32xf32> to vector<8x32xf32>
    %46 = arith.truncf %45 : vector<8x32xf32> to vector<8x32xbf16>
    %c0_33 = arith.constant 0 : index
    %c0_34 = arith.constant 0 : index
    %c32_35 = arith.constant 32 : index
    %47 = vector.load %arg5[%c0_33, %c0_34, %c32_35] : memref<1x8x128xf32, #tpu.memory_space<vmem>>, vector<1x8x32xf32>
    %48 = vector.shape_cast %47 : vector<1x8x32xf32> to vector<8x32xf32>
    %49 = arith.truncf %48 : vector<8x32xf32> to vector<8x32xbf16>
    %cst_36 = arith.constant dense<0.000000e+00> : vector<8x8xf32>
    %50 = tpu.matmul %43, %46, %cst_36 {dimension_numbers = #tpu.dot_dimension_numbers<[1], [1], [0], [0], [0, 0, 1, 0], [], []>} : vector<8x32xbf16>, vector<8x32xbf16>, vector<8x8xf32> -> vector<8x8xf32>
    %cst_37 = arith.constant 0.176776692 : f32
    %51 = vector.broadcast %cst_37 : f32 to vector<8x8xf32>
    %52 = arith.mulf %50, %51 : vector<8x8xf32>
    %53 = arith.addf %52, %4 : vector<8x8xf32>
    %c0_38 = arith.constant 0 : index
    %c1 = arith.constant 1 : index
    %54 = vector.load %arg8[%c0_38, %c1] : memref<8x4xf32, #tpu.memory_space<vmem>>, vector<8x1xf32>
    %cst_39 = arith.constant dense<0xFF800000> : vector<8xf32>
    %55 = vector.multi_reduction <maximumf>, %53, %cst_39 [1] : vector<8x8xf32> to vector<8xf32>
    %56 = vector.shape_cast %55 : vector<8xf32> to vector<8x1xf32>
    %57 = arith.maximumf %54, %56 : vector<8x1xf32>
    %58 = arith.subf %54, %57 : vector<8x1xf32>
    %59 = math.exp %58 : vector<8x1xf32>
    %60 = vector.broadcast %57 : vector<8x1xf32> to vector<8x8xf32>
    %61 = arith.subf %53, %60 : vector<8x8xf32>
    %62 = math.exp %61 : vector<8x8xf32>
    %c0_40 = arith.constant 0 : index
    %c1_41 = arith.constant 1 : index
    %63 = vector.load %arg9[%c0_40, %c1_41] : memref<8x4xf32, #tpu.memory_space<vmem>>, vector<8x1xf32>
    %64 = arith.mulf %59, %63 : vector<8x1xf32>
    %cst_42 = arith.constant dense<0.000000e+00> : vector<8xf32>
    %65 = vector.multi_reduction <add>, %62, %cst_42 [1] : vector<8x8xf32> to vector<8xf32>
    %66 = vector.shape_cast %65 : vector<8xf32> to vector<8x1xf32>
    %67 = arith.addf %64, %66 : vector<8x1xf32>
    %c0_43 = arith.constant 0 : index
    %c1_44 = arith.constant 1 : index
    %68 = vector.load %arg9[%c0_43, %c1_44] : memref<8x4xf32, #tpu.memory_space<vmem>>, vector<8x1xf32>
    tpu.vector_store %arg9[%c0_43, %c1_44], %67 {strides = array<i32>} : memref<8x4xf32, #tpu.memory_space<vmem>>, vector<8x1xf32>,
    %c0_45 = arith.constant 0 : index
    %c32_46 = arith.constant 32 : index
    %69 = vector.load %arg10[%c0_45, %c32_46] : memref<8x128xf32, #tpu.memory_space<vmem>>, vector<8x32xf32>
    %70 = vector.broadcast %59 : vector<8x1xf32> to vector<8x32xf32>
    %71 = arith.mulf %70, %69 : vector<8x32xf32>
    %72 = arith.truncf %62 : vector<8x8xf32> to vector<8x8xbf16>
    %cst_47 = arith.constant dense<0.000000e+00> : vector<8x32xf32>
    %73 = tpu.matmul %72, %49, %cst_47 {dimension_numbers = #tpu.dot_dimension_numbers<[1], [0], [0], [1], [0, 0, 1, 1], [], []>} : vector<8x8xbf16>, vector<8x32xbf16>, vector<8x32xf32> -> vector<8x32xf32>
    %74 = arith.addf %71, %73 : vector<8x32xf32>
    %c0_48 = arith.constant 0 : index
    %c32_49 = arith.constant 32 : index
    %75 = vector.load %arg10[%c0_48, %c32_49] : memref<8x128xf32, #tpu.memory_space<vmem>>, vector<8x32xf32>
    tpu.vector_store %arg10[%c0_48, %c32_49], %74 {strides = array<i32>} : memref<8x128xf32, #tpu.memory_space<vmem>>, vector<8x32xf32>,
    %c0_50 = arith.constant 0 : index
    %c1_51 = arith.constant 1 : index
    %76 = vector.load %arg8[%c0_50, %c1_51] : memref<8x4xf32, #tpu.memory_space<vmem>>, vector<8x1xf32>
    tpu.vector_store %arg8[%c0_50, %c1_51], %57 {strides = array<i32>} : memref<8x4xf32, #tpu.memory_space<vmem>>, vector<8x1xf32>,
    %c0_52 = arith.constant 0 : index
    %c0_53 = arith.constant 0 : index
    %c64 = arith.constant 64 : index
    %77 = vector.load %arg3[%c0_52, %c0_53, %c64] : memref<1x8x128xf32, #tpu.memory_space<vmem>>, vector<1x8x32xf32>
    %78 = vector.shape_cast %77 : vector<1x8x32xf32> to vector<8x32xf32>
    %79 = arith.truncf %78 : vector<8x32xf32> to vector<8x32xbf16>
    %c0_54 = arith.constant 0 : index
    %c0_55 = arith.constant 0 : index
    %c64_56 = arith.constant 64 : index
    %80 = vector.load %arg4[%c0_54, %c0_55, %c64_56] : memref<1x8x128xf32, #tpu.memory_space<vmem>>, vector<1x8x32xf32>
    %81 = vector.shape_cast %80 : vector<1x8x32xf32> to vector<8x32xf32>
    %82 = arith.truncf %81 : vector<8x32xf32> to vector<8x32xbf16>
    %c0_57 = arith.constant 0 : index
    %c0_58 = arith.constant 0 : index
    %c64_59 = arith.constant 64 : index
    %83 = vector.load %arg5[%c0_57, %c0_58, %c64_59] : memref<1x8x128xf32, #tpu.memory_space<vmem>>, vector<1x8x32xf32>
    %84 = vector.shape_cast %83 : vector<1x8x32xf32> to vector<8x32xf32>
    %85 = arith.truncf %84 : vector<8x32xf32> to vector<8x32xbf16>
    %cst_60 = arith.constant dense<0.000000e+00> : vector<8x8xf32>
    %86 = tpu.matmul %79, %82, %cst_60 {dimension_numbers = #tpu.dot_dimension_numbers<[1], [1], [0], [0], [0, 0, 1, 0], [], []>} : vector<8x32xbf16>, vector<8x32xbf16>, vector<8x8xf32> -> vector<8x8xf32>
    %cst_61 = arith.constant 0.176776692 : f32
    %87 = vector.broadcast %cst_61 : f32 to vector<8x8xf32>
    %88 = arith.mulf %86, %87 : vector<8x8xf32>
    %89 = arith.addf %88, %4 : vector<8x8xf32>
    %c0_62 = arith.constant 0 : index
    %c2 = arith.constant 2 : index
    %90 = vector.load %arg8[%c0_62, %c2] : memref<8x4xf32, #tpu.memory_space<vmem>>, vector<8x1xf32>
    %cst_63 = arith.constant dense<0xFF800000> : vector<8xf32>
    %91 = vector.multi_reduction <maximumf>, %89, %cst_63 [1] : vector<8x8xf32> to vector<8xf32>
    %92 = vector.shape_cast %91 : vector<8xf32> to vector<8x1xf32>
    %93 = arith.maximumf %90, %92 : vector<8x1xf32>
    %94 = arith.subf %90, %93 : vector<8x1xf32>
    %95 = math.exp %94 : vector<8x1xf32>
    %96 = vector.broadcast %93 : vector<8x1xf32> to vector<8x8xf32>
    %97 = arith.subf %89, %96 : vector<8x8xf32>
    %98 = math.exp %97 : vector<8x8xf32>
    %c0_64 = arith.constant 0 : index
    %c2_65 = arith.constant 2 : index
    %99 = vector.load %arg9[%c0_64, %c2_65] : memref<8x4xf32, #tpu.memory_space<vmem>>, vector<8x1xf32>
    %100 = arith.mulf %95, %99 : vector<8x1xf32>
    %cst_66 = arith.constant dense<0.000000e+00> : vector<8xf32>
    %101 = vector.multi_reduction <add>, %98, %cst_66 [1] : vector<8x8xf32> to vector<8xf32>
    %102 = vector.shape_cast %101 : vector<8xf32> to vector<8x1xf32>
    %103 = arith.addf %100, %102 : vector<8x1xf32>
    %c0_67 = arith.constant 0 : index
    %c2_68 = arith.constant 2 : index
    %104 = vector.load %arg9[%c0_67, %c2_68] : memref<8x4xf32, #tpu.memory_space<vmem>>, vector<8x1xf32>
    tpu.vector_store %arg9[%c0_67, %c2_68], %103 {strides = array<i32>} : memref<8x4xf32, #tpu.memory_space<vmem>>, vector<8x1xf32>,
    %c0_69 = arith.constant 0 : index
    %c64_70 = arith.constant 64 : index
    %105 = vector.load %arg10[%c0_69, %c64_70] : memref<8x128xf32, #tpu.memory_space<vmem>>, vector<8x32xf32>
    %106 = vector.broadcast %95 : vector<8x1xf32> to vector<8x32xf32>
    %107 = arith.mulf %106, %105 : vector<8x32xf32>
    %108 = arith.truncf %98 : vector<8x8xf32> to vector<8x8xbf16>
    %cst_71 = arith.constant dense<0.000000e+00> : vector<8x32xf32>
    %109 = tpu.matmul %108, %85, %cst_71 {dimension_numbers = #tpu.dot_dimension_numbers<[1], [0], [0], [1], [0, 0, 1, 1], [], []>} : vector<8x8xbf16>, vector<8x32xbf16>, vector<8x32xf32> -> vector<8x32xf32>
    %110 = arith.addf %107, %109 : vector<8x32xf32>
    %c0_72 = arith.constant 0 : index
    %c64_73 = arith.constant 64 : index
    %111 = vector.load %arg10[%c0_72, %c64_73] : memref<8x128xf32, #tpu.memory_space<vmem>>, vector<8x32xf32>
    tpu.vector_store %arg10[%c0_72, %c64_73], %110 {strides = array<i32>} : memref<8x128xf32, #tpu.memory_space<vmem>>, vector<8x32xf32>,
    %c0_74 = arith.constant 0 : index
    %c2_75 = arith.constant 2 : index
    %112 = vector.load %arg8[%c0_74, %c2_75] : memref<8x4xf32, #tpu.memory_space<vmem>>, vector<8x1xf32>
    tpu.vector_store %arg8[%c0_74, %c2_75], %93 {strides = array<i32>} : memref<8x4xf32, #tpu.memory_space<vmem>>, vector<8x1xf32>,
    %c0_76 = arith.constant 0 : index
    %c0_77 = arith.constant 0 : index
    %c96 = arith.constant 96 : index
    %113 = vector.load %arg3[%c0_76, %c0_77, %c96] : memref<1x8x128xf32, #tpu.memory_space<vmem>>, vector<1x8x32xf32>
    %114 = vector.shape_cast %113 : vector<1x8x32xf32> to vector<8x32xf32>
    %115 = arith.truncf %114 : vector<8x32xf32> to vector<8x32xbf16>
    %c0_78 = arith.constant 0 : index
    %c0_79 = arith.constant 0 : index
    %c96_80 = arith.constant 96 : index
    %116 = vector.load %arg4[%c0_78, %c0_79, %c96_80] : memref<1x8x128xf32, #tpu.memory_space<vmem>>, vector<1x8x32xf32>
    %117 = vector.shape_cast %116 : vector<1x8x32xf32> to vector<8x32xf32>
    %118 = arith.truncf %117 : vector<8x32xf32> to vector<8x32xbf16>
    %c0_81 = arith.constant 0 : index
    %c0_82 = arith.constant 0 : index
    %c96_83 = arith.constant 96 : index
    %119 = vector.load %arg5[%c0_81, %c0_82, %c96_83] : memref<1x8x128xf32, #tpu.memory_space<vmem>>, vector<1x8x32xf32>
    %120 = vector.shape_cast %119 : vector<1x8x32xf32> to vector<8x32xf32>
    %121 = arith.truncf %120 : vector<8x32xf32> to vector<8x32xbf16>
    %cst_84 = arith.constant dense<0.000000e+00> : vector<8x8xf32>
    %122 = tpu.matmul %115, %118, %cst_84 {dimension_numbers = #tpu.dot_dimension_numbers<[1], [1], [0], [0], [0, 0, 1, 0], [], []>} : vector<8x32xbf16>, vector<8x32xbf16>, vector<8x8xf32> -> vector<8x8xf32>
    %cst_85 = arith.constant 0.176776692 : f32
    %123 = vector.broadcast %cst_85 : f32 to vector<8x8xf32>
    %124 = arith.mulf %122, %123 : vector<8x8xf32>
    %125 = arith.addf %124, %4 : vector<8x8xf32>
    %c0_86 = arith.constant 0 : index
    %c3 = arith.constant 3 : index
    %126 = vector.load %arg8[%c0_86, %c3] : memref<8x4xf32, #tpu.memory_space<vmem>>, vector<8x1xf32>
    %cst_87 = arith.constant dense<0xFF800000> : vector<8xf32>
    %127 = vector.multi_reduction <maximumf>, %125, %cst_87 [1] : vector<8x8xf32> to vector<8xf32>
    %128 = vector.shape_cast %127 : vector<8xf32> to vector<8x1xf32>
    %129 = arith.maximumf %126, %128 : vector<8x1xf32>
    %130 = arith.subf %126, %129 : vector<8x1xf32>
    %131 = math.exp %130 : vector<8x1xf32>
    %132 = vector.broadcast %129 : vector<8x1xf32> to vector<8x8xf32>
    %133 = arith.subf %125, %132 : vector<8x8xf32>
    %134 = math.exp %133 : vector<8x8xf32>
    %c0_88 = arith.constant 0 : index
    %c3_89 = arith.constant 3 : index
    %135 = vector.load %arg9[%c0_88, %c3_89] : memref<8x4xf32, #tpu.memory_space<vmem>>, vector<8x1xf32>
    %136 = arith.mulf %131, %135 : vector<8x1xf32>
    %cst_90 = arith.constant dense<0.000000e+00> : vector<8xf32>
    %137 = vector.multi_reduction <add>, %134, %cst_90 [1] : vector<8x8xf32> to vector<8xf32>
    %138 = vector.shape_cast %137 : vector<8xf32> to vector<8x1xf32>
    %139 = arith.addf %136, %138 : vector<8x1xf32>
    %c0_91 = arith.constant 0 : index
    %c3_92 = arith.constant 3 : index
    %140 = vector.load %arg9[%c0_91, %c3_92] : memref<8x4xf32, #tpu.memory_space<vmem>>, vector<8x1xf32>
    tpu.vector_store %arg9[%c0_91, %c3_92], %139 {strides = array<i32>} : memref<8x4xf32, #tpu.memory_space<vmem>>, vector<8x1xf32>,
    %c0_93 = arith.constant 0 : index
    %c96_94 = arith.constant 96 : index
    %141 = vector.load %arg10[%c0_93, %c96_94] : memref<8x128xf32, #tpu.memory_space<vmem>>, vector<8x32xf32>
    %142 = vector.broadcast %131 : vector<8x1xf32> to vector<8x32xf32>
    %143 = arith.mulf %142, %141 : vector<8x32xf32>
    %144 = arith.truncf %134 : vector<8x8xf32> to vector<8x8xbf16>
    %cst_95 = arith.constant dense<0.000000e+00> : vector<8x32xf32>
    %145 = tpu.matmul %144, %121, %cst_95 {dimension_numbers = #tpu.dot_dimension_numbers<[1], [0], [0], [1], [0, 0, 1, 1], [], []>} : vector<8x8xbf16>, vector<8x32xbf16>, vector<8x32xf32> -> vector<8x32xf32>
    %146 = arith.addf %143, %145 : vector<8x32xf32>
    %c0_96 = arith.constant 0 : index
    %c96_97 = arith.constant 96 : index
    %147 = vector.load %arg10[%c0_96, %c96_97] : memref<8x128xf32, #tpu.memory_space<vmem>>, vector<8x32xf32>
    tpu.vector_store %arg10[%c0_96, %c96_97], %146 {strides = array<i32>} : memref<8x128xf32, #tpu.memory_space<vmem>>, vector<8x32xf32>,
    %c0_98 = arith.constant 0 : index
    %c3_99 = arith.constant 3 : index
    %148 = vector.load %arg8[%c0_98, %c3_99] : memref<8x4xf32, #tpu.memory_space<vmem>>, vector<8x1xf32>
    tpu.vector_store %arg8[%c0_98, %c3_99], %129 {strides = array<i32>} : memref<8x4xf32, #tpu.memory_space<vmem>>, vector<8x1xf32>,
    %c0_i32_100 = arith.constant 0 : i32
    %149 = arith.cmpi eq, %arg2, %c0_i32_100 : i32
    %150 = arith.extui %149 : i1 to i32
    %c0_i32_101 = arith.constant 0 : i32
    %151 = arith.cmpi ne, %150, %c0_i32_101 : i32
    scf.if %151 {
      %c0_102 = arith.constant 0 : index
      %c0_103 = arith.constant 0 : index
      %152 = vector.load %arg9[%c0_102, %c0_103] : memref<8x4xf32, #tpu.memory_space<vmem>>, vector<8x1xf32>
      %153 = tpu.reciprocal %152 {approx = true} : vector<8x1xf32> -> vector<8x1xf32>
      %c0_104 = arith.constant 0 : index
      %c0_105 = arith.constant 0 : index
      %154 = vector.load %arg10[%c0_104, %c0_105] : memref<8x128xf32, #tpu.memory_space<vmem>>, vector<8x32xf32>
      %155 = vector.broadcast %153 : vector<8x1xf32> to vector<8x32xf32>
      %156 = arith.mulf %154, %155 : vector<8x32xf32>
      %c0_106 = arith.constant 0 : index
      %c0_107 = arith.constant 0 : index
      %c0_108 = arith.constant 0 : index
      %157 = vector.load %arg7[%c0_106, %c0_107, %c0_108] : memref<1x8x128xf32, #tpu.memory_space<vmem>>, vector<1x8x32xf32>
      %158 = vector.shape_cast %157 : vector<1x8x32xf32> to vector<8x32xf32>
      %159 = vector.shape_cast %156 : vector<8x32xf32> to vector<1x8x32xf32>
      tpu.vector_store %arg7[%c0_106, %c0_107, %c0_108], %159 {strides = array<i32>} : memref<1x8x128xf32, #tpu.memory_space<vmem>>, vector<1x8x32xf32>,
      %c0_109 = arith.constant 0 : index
      %c1_110 = arith.constant 1 : index
      %160 = vector.load %arg9[%c0_109, %c1_110] : memref<8x4xf32, #tpu.memory_space<vmem>>, vector<8x1xf32>
      %161 = tpu.reciprocal %160 {approx = true} : vector<8x1xf32> -> vector<8x1xf32>
      %c0_111 = arith.constant 0 : index
      %c32_112 = arith.constant 32 : index
      %162 = vector.load %arg10[%c0_111, %c32_112] : memref<8x128xf32, #tpu.memory_space<vmem>>, vector<8x32xf32>
      %163 = vector.broadcast %161 : vector<8x1xf32> to vector<8x32xf32>
      %164 = arith.mulf %162, %163 : vector<8x32xf32>
      %c0_113 = arith.constant 0 : index
      %c0_114 = arith.constant 0 : index
      %c32_115 = arith.constant 32 : index
      %165 = vector.load %arg7[%c0_113, %c0_114, %c32_115] : memref<1x8x128xf32, #tpu.memory_space<vmem>>, vector<1x8x32xf32>
      %166 = vector.shape_cast %165 : vector<1x8x32xf32> to vector<8x32xf32>
      %167 = vector.shape_cast %164 : vector<8x32xf32> to vector<1x8x32xf32>
      tpu.vector_store %arg7[%c0_113, %c0_114, %c32_115], %167 {strides = array<i32>} : memref<1x8x128xf32, #tpu.memory_space<vmem>>, vector<1x8x32xf32>,
      %c0_116 = arith.constant 0 : index
      %c2_117 = arith.constant 2 : index
      %168 = vector.load %arg9[%c0_116, %c2_117] : memref<8x4xf32, #tpu.memory_space<vmem>>, vector<8x1xf32>
      %169 = tpu.reciprocal %168 {approx = true} : vector<8x1xf32> -> vector<8x1xf32>
      %c0_118 = arith.constant 0 : index
      %c64_119 = arith.constant 64 : index
      %170 = vector.load %arg10[%c0_118, %c64_119] : memref<8x128xf32, #tpu.memory_space<vmem>>, vector<8x32xf32>
      %171 = vector.broadcast %169 : vector<8x1xf32> to vector<8x32xf32>
      %172 = arith.mulf %170, %171 : vector<8x32xf32>
      %c0_120 = arith.constant 0 : index
      %c0_121 = arith.constant 0 : index
      %c64_122 = arith.constant 64 : index
      %173 = vector.load %arg7[%c0_120, %c0_121, %c64_122] : memref<1x8x128xf32, #tpu.memory_space<vmem>>, vector<1x8x32xf32>
      %174 = vector.shape_cast %173 : vector<1x8x32xf32> to vector<8x32xf32>
      %175 = vector.shape_cast %172 : vector<8x32xf32> to vector<1x8x32xf32>
      tpu.vector_store %arg7[%c0_120, %c0_121, %c64_122], %175 {strides = array<i32>} : memref<1x8x128xf32, #tpu.memory_space<vmem>>, vector<1x8x32xf32>,
      %c0_123 = arith.constant 0 : index
      %c3_124 = arith.constant 3 : index
      %176 = vector.load %arg9[%c0_123, %c3_124] : memref<8x4xf32, #tpu.memory_space<vmem>>, vector<8x1xf32>
      %177 = tpu.reciprocal %176 {approx = true} : vector<8x1xf32> -> vector<8x1xf32>
      %c0_125 = arith.constant 0 : index
      %c96_126 = arith.constant 96 : index
      %178 = vector.load %arg10[%c0_125, %c96_126] : memref<8x128xf32, #tpu.memory_space<vmem>>, vector<8x32xf32>
      %179 = vector.broadcast %177 : vector<8x1xf32> to vector<8x32xf32>
      %180 = arith.mulf %178, %179 : vector<8x32xf32>
      %c0_127 = arith.constant 0 : index
      %c0_128 = arith.constant 0 : index
      %c96_129 = arith.constant 96 : index
      %181 = vector.load %arg7[%c0_127, %c0_128, %c96_129] : memref<1x8x128xf32, #tpu.memory_space<vmem>>, vector<1x8x32xf32>
      %182 = vector.shape_cast %181 : vector<1x8x32xf32> to vector<8x32xf32>
      %183 = vector.shape_cast %180 : vector<8x32xf32> to vector<1x8x32xf32>
      tpu.vector_store %arg7[%c0_127, %c0_128, %c96_129], %183 {strides = array<i32>} : memref<1x8x128xf32, #tpu.memory_space<vmem>>, vector<1x8x32xf32>,
    } else {
    }
    return
  }
  func.func @transform_0(%arg0: i32, %arg1: i32, %arg2: i32) -> (i32, i32, i32) {
    %c0_i32 = arith.constant 0 : i32
    %c0_i32_0 = arith.constant 0 : i32
    return %arg0, %arg1, %c0_i32 : i32, i32, i32
  }
  func.func @transform_1(%arg0: i32, %arg1: i32, %arg2: i32) -> (i32, i32, i32) {
    %c1_i32 = arith.constant 1 : i32
    %c0_i32 = arith.constant 0 : i32
    return %arg0, %arg2, %c1_i32 : i32, i32, i32
  }
  func.func @transform_2(%arg0: i32, %arg1: i32, %arg2: i32) -> (i32, i32, i32) {
    %c2_i32 = arith.constant 2 : i32
    %c0_i32 = arith.constant 0 : i32
    return %arg0, %arg2, %c2_i32 : i32, i32, i32
  }
  func.func @transform_3(%arg0: i32, %arg1: i32, %arg2: i32) -> (i32, i32, i32) {
    %c0_i32 = arith.constant 0 : i32
    %c0_i32_0 = arith.constant 0 : i32
    return %c0_i32, %arg1, %arg2 : i32, i32, i32
  }
  func.func @transform_4(%arg0: i32, %arg1: i32, %arg2: i32) -> (i32, i32, i32) {
    %c0_i32 = arith.constant 0 : i32
    %c0_i32_0 = arith.constant 0 : i32
    return %arg0, %arg1, %c0_i32 : i32, i32, i32
  }
}

module attributes {stable_mosaic.version = 11 : i64} {
  func.func @_attn_kernel(%arg0: i32, %arg1: i32, %arg2: i32, %arg3: memref<1x8x128xf32, #tpu.memory_space<vmem>>, %arg4: memref<1x8x128xf32, #tpu.memory_space<vmem>>, %arg5: memref<1x8x128xf32, #tpu.memory_space<vmem>>, %arg6: memref<1x1x8xf32, #tpu.memory_space<vmem>>, %arg7: memref<1x8x128xf32, #tpu.memory_space<vmem>>, %arg8: memref<8x4xf32, #tpu.memory_space<vmem>>, %arg9: memref<8x4xf32, #tpu.memory_space<vmem>>, %arg10: memref<8x128xf32, #tpu.memory_space<vmem>>) attributes {dimension_semantics = [#tpu.dimension_semantics<parallel>, #tpu.dimension_semantics<parallel>, #tpu.dimension_semantics<arbitrary>], iteration_bounds = array<i64: 2, 1, 1>, scalar_prefetch = 0 : i64, scratch_operands = 3 : i64, tpu.core_type = #tpu.core_type<tc>, window_params = [{transform_indices = @transform_0, window_bounds = array<i64: 1, 8, 128>}, {transform_indices = @transform_1, window_bounds = array<i64: 1, 8, 128>}, {transform_indices = @transform_2, window_bounds = array<i64: 1, 8, 128>}, {transform_indices = @transform_3, window_bounds = array<i64: 1, 1, 8>}, {transform_indices = @transform_4, window_bounds = array<i64: 1, 8, 128>}]} {
    %c0_i32 = arith.constant 0 : i32
    %0 = arith.cmpi eq, %arg2, %c0_i32 : i32
    %1 = arith.extui %0 : i1 to i32
    %c0_i32_0 = arith.constant 0 : i32
    %2 = arith.cmpi ne, %1, %c0_i32_0 : i32
    scf.if %2 {
      %cst_102 = arith.constant 0xFF800000 : f32
      %156 = vector.broadcast %cst_102 : f32 to vector<8x4xf32>
      %c0_103 = arith.constant 0 : index
      %c0_104 = arith.constant 0 : index
      %157 = vector.load %arg8[%c0_103, %c0_104] : memref<8x4xf32, #tpu.memory_space<vmem>>, vector<8x4xf32>
      tpu.vector_store %arg8[%c0_103, %c0_104], %156 {strides = array<i32>} : memref<8x4xf32, #tpu.memory_space<vmem>>, vector<8x4xf32>,
      %cst_105 = arith.constant 0.000000e+00 : f32
      %158 = vector.broadcast %cst_105 : f32 to vector<8x4xf32>
      %c0_106 = arith.constant 0 : index
      %c0_107 = arith.constant 0 : index
      %159 = vector.load %arg9[%c0_106, %c0_107] : memref<8x4xf32, #tpu.memory_space<vmem>>, vector<8x4xf32>
      tpu.vector_store %arg9[%c0_106, %c0_107], %158 {strides = array<i32>} : memref<8x4xf32, #tpu.memory_space<vmem>>, vector<8x4xf32>,
      %cst_108 = arith.constant 0.000000e+00 : f32
      %160 = vector.broadcast %cst_108 : f32 to vector<8x128xf32>
      %c0_109 = arith.constant 0 : index
      %c0_110 = arith.constant 0 : index
      %161 = vector.load %arg10[%c0_109, %c0_110] : memref<8x128xf32, #tpu.memory_space<vmem>>, vector<8x128xf32>
      tpu.vector_store %arg10[%c0_109, %c0_110], %160 {strides = array<i32>} : memref<8x128xf32, #tpu.memory_space<vmem>>, vector<8x128xf32>,
    } else {
    }
    %c0 = arith.constant 0 : index
    %c0_1 = arith.constant 0 : index
    %c0_2 = arith.constant 0 : index
    %3 = vector.load %arg6[%c0, %c0_1, %c0_2] : memref<1x1x8xf32, #tpu.memory_space<vmem>>, vector<1x1x8xf32>
    %4 = vector.shape_cast %3 : vector<1x1x8xf32> to vector<1x8xf32>
    %c0_3 = arith.constant 0 : index
    %c0_4 = arith.constant 0 : index
    %c0_5 = arith.constant 0 : index
    %5 = vector.load %arg3[%c0_3, %c0_4, %c0_5] : memref<1x8x128xf32, #tpu.memory_space<vmem>>, vector<1x8x32xf32>
    %6 = vector.shape_cast %5 : vector<1x8x32xf32> to vector<8x32xf32>
    %7 = arith.truncf %6 : vector<8x32xf32> to vector<8x32xbf16>
    %c0_6 = arith.constant 0 : index
    %c0_7 = arith.constant 0 : index
    %c0_8 = arith.constant 0 : index
    %8 = vector.load %arg4[%c0_6, %c0_7, %c0_8] : memref<1x8x128xf32, #tpu.memory_space<vmem>>, vector<1x8x32xf32>
    %9 = vector.shape_cast %8 : vector<1x8x32xf32> to vector<8x32xf32>
    %10 = arith.truncf %9 : vector<8x32xf32> to vector<8x32xbf16>
    %c0_9 = arith.constant 0 : index
    %c0_10 = arith.constant 0 : index
    %c0_11 = arith.constant 0 : index
    %11 = vector.load %arg5[%c0_9, %c0_10, %c0_11] : memref<1x8x128xf32, #tpu.memory_space<vmem>>, vector<1x8x32xf32>
    %12 = vector.shape_cast %11 : vector<1x8x32xf32> to vector<8x32xf32>
    %13 = arith.truncf %12 : vector<8x32xf32> to vector<8x32xbf16>
    %cst = arith.constant dense<0.000000e+00> : vector<8x8xf32>
    %14 = tpu.matmul %7, %10, %cst {dimension_numbers = #tpu.dot_dimension_numbers<[1], [1], [0], [0], [0, 0, 1, 0], [], []>} : vector<8x32xbf16>, vector<8x32xbf16>, vector<8x8xf32> -> vector<8x8xf32>
    %cst_12 = arith.constant 0.176776692 : f32
    %15 = vector.broadcast %cst_12 : f32 to vector<8x8xf32>
    %16 = arith.mulf %14, %15 : vector<8x8xf32>
    %17 = vector.broadcast %4 : vector<1x8xf32> to vector<8x8xf32>
    %18 = arith.addf %16, %17 : vector<8x8xf32>
    %c0_13 = arith.constant 0 : index
    %c0_14 = arith.constant 0 : index
    %19 = vector.load %arg8[%c0_13, %c0_14] : memref<8x4xf32, #tpu.memory_space<vmem>>, vector<8x1xf32>
    %cst_15 = arith.constant dense<0xFF800000> : vector<8xf32>
    %20 = vector.multi_reduction <maximumf>, %18, %cst_15 [1] : vector<8x8xf32> to vector<8xf32>
    %21 = vector.shape_cast %20 : vector<8xf32> to vector<8x1xf32>
    %22 = arith.maximumf %19, %21 : vector<8x1xf32>
    %23 = arith.subf %19, %22 : vector<8x1xf32>
    %24 = math.exp %23 : vector<8x1xf32>
    %25 = vector.broadcast %22 : vector<8x1xf32> to vector<8x8xf32>
    %26 = arith.subf %18, %25 : vector<8x8xf32>
    %27 = math.exp %26 : vector<8x8xf32>
    %c0_16 = arith.constant 0 : index
    %c0_17 = arith.constant 0 : index
    %28 = vector.load %arg9[%c0_16, %c0_17] : memref<8x4xf32, #tpu.memory_space<vmem>>, vector<8x1xf32>
    %29 = arith.mulf %24, %28 : vector<8x1xf32>
    %cst_18 = arith.constant dense<0.000000e+00> : vector<8xf32>
    %30 = vector.multi_reduction <add>, %27, %cst_18 [1] : vector<8x8xf32> to vector<8xf32>
    %31 = vector.shape_cast %30 : vector<8xf32> to vector<8x1xf32>
    %32 = arith.addf %29, %31 : vector<8x1xf32>
    %c0_19 = arith.constant 0 : index
    %c0_20 = arith.constant 0 : index
    %33 = vector.load %arg9[%c0_19, %c0_20] : memref<8x4xf32, #tpu.memory_space<vmem>>, vector<8x1xf32>
    tpu.vector_store %arg9[%c0_19, %c0_20], %32 {strides = array<i32>} : memref<8x4xf32, #tpu.memory_space<vmem>>, vector<8x1xf32>,
    %c0_21 = arith.constant 0 : index
    %c0_22 = arith.constant 0 : index
    %34 = vector.load %arg10[%c0_21, %c0_22] : memref<8x128xf32, #tpu.memory_space<vmem>>, vector<8x32xf32>
    %35 = vector.broadcast %24 : vector<8x1xf32> to vector<8x32xf32>
    %36 = arith.mulf %35, %34 : vector<8x32xf32>
    %37 = arith.truncf %27 : vector<8x8xf32> to vector<8x8xbf16>
    %cst_23 = arith.constant dense<0.000000e+00> : vector<8x32xf32>
    %38 = tpu.matmul %37, %13, %cst_23 {dimension_numbers = #tpu.dot_dimension_numbers<[1], [0], [0], [1], [0, 0, 1, 1], [], []>} : vector<8x8xbf16>, vector<8x32xbf16>, vector<8x32xf32> -> vector<8x32xf32>
    %39 = arith.addf %36, %38 : vector<8x32xf32>
    %c0_24 = arith.constant 0 : index
    %c0_25 = arith.constant 0 : index
    %40 = vector.load %arg10[%c0_24, %c0_25] : memref<8x128xf32, #tpu.memory_space<vmem>>, vector<8x32xf32>
    tpu.vector_store %arg10[%c0_24, %c0_25], %39 {strides = array<i32>} : memref<8x128xf32, #tpu.memory_space<vmem>>, vector<8x32xf32>,
    %c0_26 = arith.constant 0 : index
    %c0_27 = arith.constant 0 : index
    %41 = vector.load %arg8[%c0_26, %c0_27] : memref<8x4xf32, #tpu.memory_space<vmem>>, vector<8x1xf32>
    tpu.vector_store %arg8[%c0_26, %c0_27], %22 {strides = array<i32>} : memref<8x4xf32, #tpu.memory_space<vmem>>, vector<8x1xf32>,
    %c0_28 = arith.constant 0 : index
    %c0_29 = arith.constant 0 : index
    %c32 = arith.constant 32 : index
    %42 = vector.load %arg3[%c0_28, %c0_29, %c32] : memref<1x8x128xf32, #tpu.memory_space<vmem>>, vector<1x8x32xf32>
    %43 = vector.shape_cast %42 : vector<1x8x32xf32> to vector<8x32xf32>
    %44 = arith.truncf %43 : vector<8x32xf32> to vector<8x32xbf16>
    %c0_30 = arith.constant 0 : index
    %c0_31 = arith.constant 0 : index
    %c32_32 = arith.constant 32 : index
    %45 = vector.load %arg4[%c0_30, %c0_31, %c32_32] : memref<1x8x128xf32, #tpu.memory_space<vmem>>, vector<1x8x32xf32>
    %46 = vector.shape_cast %45 : vector<1x8x32xf32> to vector<8x32xf32>
    %47 = arith.truncf %46 : vector<8x32xf32> to vector<8x32xbf16>
    %c0_33 = arith.constant 0 : index
    %c0_34 = arith.constant 0 : index
    %c32_35 = arith.constant 32 : index
    %48 = vector.load %arg5[%c0_33, %c0_34, %c32_35] : memref<1x8x128xf32, #tpu.memory_space<vmem>>, vector<1x8x32xf32>
    %49 = vector.shape_cast %48 : vector<1x8x32xf32> to vector<8x32xf32>
    %50 = arith.truncf %49 : vector<8x32xf32> to vector<8x32xbf16>
    %cst_36 = arith.constant dense<0.000000e+00> : vector<8x8xf32>
    %51 = tpu.matmul %44, %47, %cst_36 {dimension_numbers = #tpu.dot_dimension_numbers<[1], [1], [0], [0], [0, 0, 1, 0], [], []>} : vector<8x32xbf16>, vector<8x32xbf16>, vector<8x8xf32> -> vector<8x8xf32>
    %cst_37 = arith.constant 0.176776692 : f32
    %52 = vector.broadcast %cst_37 : f32 to vector<8x8xf32>
    %53 = arith.mulf %51, %52 : vector<8x8xf32>
    %54 = vector.broadcast %4 : vector<1x8xf32> to vector<8x8xf32>
    %55 = arith.addf %53, %54 : vector<8x8xf32>
    %c0_38 = arith.constant 0 : index
    %c1 = arith.constant 1 : index
    %56 = vector.load %arg8[%c0_38, %c1] : memref<8x4xf32, #tpu.memory_space<vmem>>, vector<8x1xf32>
    %cst_39 = arith.constant dense<0xFF800000> : vector<8xf32>
    %57 = vector.multi_reduction <maximumf>, %55, %cst_39 [1] : vector<8x8xf32> to vector<8xf32>
    %58 = vector.shape_cast %57 : vector<8xf32> to vector<8x1xf32>
    %59 = arith.maximumf %56, %58 : vector<8x1xf32>
    %60 = arith.subf %56, %59 : vector<8x1xf32>
    %61 = math.exp %60 : vector<8x1xf32>
    %62 = vector.broadcast %59 : vector<8x1xf32> to vector<8x8xf32>
    %63 = arith.subf %55, %62 : vector<8x8xf32>
    %64 = math.exp %63 : vector<8x8xf32>
    %c0_40 = arith.constant 0 : index
    %c1_41 = arith.constant 1 : index
    %65 = vector.load %arg9[%c0_40, %c1_41] : memref<8x4xf32, #tpu.memory_space<vmem>>, vector<8x1xf32>
    %66 = arith.mulf %61, %65 : vector<8x1xf32>
    %cst_42 = arith.constant dense<0.000000e+00> : vector<8xf32>
    %67 = vector.multi_reduction <add>, %64, %cst_42 [1] : vector<8x8xf32> to vector<8xf32>
    %68 = vector.shape_cast %67 : vector<8xf32> to vector<8x1xf32>
    %69 = arith.addf %66, %68 : vector<8x1xf32>
    %c0_43 = arith.constant 0 : index
    %c1_44 = arith.constant 1 : index
    %70 = vector.load %arg9[%c0_43, %c1_44] : memref<8x4xf32, #tpu.memory_space<vmem>>, vector<8x1xf32>
    tpu.vector_store %arg9[%c0_43, %c1_44], %69 {strides = array<i32>} : memref<8x4xf32, #tpu.memory_space<vmem>>, vector<8x1xf32>,
    %c0_45 = arith.constant 0 : index
    %c32_46 = arith.constant 32 : index
    %71 = vector.load %arg10[%c0_45, %c32_46] : memref<8x128xf32, #tpu.memory_space<vmem>>, vector<8x32xf32>
    %72 = vector.broadcast %61 : vector<8x1xf32> to vector<8x32xf32>
    %73 = arith.mulf %72, %71 : vector<8x32xf32>
    %74 = arith.truncf %64 : vector<8x8xf32> to vector<8x8xbf16>
    %cst_47 = arith.constant dense<0.000000e+00> : vector<8x32xf32>
    %75 = tpu.matmul %74, %50, %cst_47 {dimension_numbers = #tpu.dot_dimension_numbers<[1], [0], [0], [1], [0, 0, 1, 1], [], []>} : vector<8x8xbf16>, vector<8x32xbf16>, vector<8x32xf32> -> vector<8x32xf32>
    %76 = arith.addf %73, %75 : vector<8x32xf32>
    %c0_48 = arith.constant 0 : index
    %c32_49 = arith.constant 32 : index
    %77 = vector.load %arg10[%c0_48, %c32_49] : memref<8x128xf32, #tpu.memory_space<vmem>>, vector<8x32xf32>
    tpu.vector_store %arg10[%c0_48, %c32_49], %76 {strides = array<i32>} : memref<8x128xf32, #tpu.memory_space<vmem>>, vector<8x32xf32>,
    %c0_50 = arith.constant 0 : index
    %c1_51 = arith.constant 1 : index
    %78 = vector.load %arg8[%c0_50, %c1_51] : memref<8x4xf32, #tpu.memory_space<vmem>>, vector<8x1xf32>
    tpu.vector_store %arg8[%c0_50, %c1_51], %59 {strides = array<i32>} : memref<8x4xf32, #tpu.memory_space<vmem>>, vector<8x1xf32>,
    %c0_52 = arith.constant 0 : index
    %c0_53 = arith.constant 0 : index
    %c64 = arith.constant 64 : index
    %79 = vector.load %arg3[%c0_52, %c0_53, %c64] : memref<1x8x128xf32, #tpu.memory_space<vmem>>, vector<1x8x32xf32>
    %80 = vector.shape_cast %79 : vector<1x8x32xf32> to vector<8x32xf32>
    %81 = arith.truncf %80 : vector<8x32xf32> to vector<8x32xbf16>
    %c0_54 = arith.constant 0 : index
    %c0_55 = arith.constant 0 : index
    %c64_56 = arith.constant 64 : index
    %82 = vector.load %arg4[%c0_54, %c0_55, %c64_56] : memref<1x8x128xf32, #tpu.memory_space<vmem>>, vector<1x8x32xf32>
    %83 = vector.shape_cast %82 : vector<1x8x32xf32> to vector<8x32xf32>
    %84 = arith.truncf %83 : vector<8x32xf32> to vector<8x32xbf16>
    %c0_57 = arith.constant 0 : index
    %c0_58 = arith.constant 0 : index
    %c64_59 = arith.constant 64 : index
    %85 = vector.load %arg5[%c0_57, %c0_58, %c64_59] : memref<1x8x128xf32, #tpu.memory_space<vmem>>, vector<1x8x32xf32>
    %86 = vector.shape_cast %85 : vector<1x8x32xf32> to vector<8x32xf32>
    %87 = arith.truncf %86 : vector<8x32xf32> to vector<8x32xbf16>
    %cst_60 = arith.constant dense<0.000000e+00> : vector<8x8xf32>
    %88 = tpu.matmul %81, %84, %cst_60 {dimension_numbers = #tpu.dot_dimension_numbers<[1], [1], [0], [0], [0, 0, 1, 0], [], []>} : vector<8x32xbf16>, vector<8x32xbf16>, vector<8x8xf32> -> vector<8x8xf32>
    %cst_61 = arith.constant 0.176776692 : f32
    %89 = vector.broadcast %cst_61 : f32 to vector<8x8xf32>
    %90 = arith.mulf %88, %89 : vector<8x8xf32>
    %91 = vector.broadcast %4 : vector<1x8xf32> to vector<8x8xf32>
    %92 = arith.addf %90, %91 : vector<8x8xf32>
    %c0_62 = arith.constant 0 : index
    %c2 = arith.constant 2 : index
    %93 = vector.load %arg8[%c0_62, %c2] : memref<8x4xf32, #tpu.memory_space<vmem>>, vector<8x1xf32>
    %cst_63 = arith.constant dense<0xFF800000> : vector<8xf32>
    %94 = vector.multi_reduction <maximumf>, %92, %cst_63 [1] : vector<8x8xf32> to vector<8xf32>
    %95 = vector.shape_cast %94 : vector<8xf32> to vector<8x1xf32>
    %96 = arith.maximumf %93, %95 : vector<8x1xf32>
    %97 = arith.subf %93, %96 : vector<8x1xf32>
    %98 = math.exp %97 : vector<8x1xf32>
    %99 = vector.broadcast %96 : vector<8x1xf32> to vector<8x8xf32>
    %100 = arith.subf %92, %99 : vector<8x8xf32>
    %101 = math.exp %100 : vector<8x8xf32>
    %c0_64 = arith.constant 0 : index
    %c2_65 = arith.constant 2 : index
    %102 = vector.load %arg9[%c0_64, %c2_65] : memref<8x4xf32, #tpu.memory_space<vmem>>, vector<8x1xf32>
    %103 = arith.mulf %98, %102 : vector<8x1xf32>
    %cst_66 = arith.constant dense<0.000000e+00> : vector<8xf32>
    %104 = vector.multi_reduction <add>, %101, %cst_66 [1] : vector<8x8xf32> to vector<8xf32>
    %105 = vector.shape_cast %104 : vector<8xf32> to vector<8x1xf32>
    %106 = arith.addf %103, %105 : vector<8x1xf32>
    %c0_67 = arith.constant 0 : index
    %c2_68 = arith.constant 2 : index
    %107 = vector.load %arg9[%c0_67, %c2_68] : memref<8x4xf32, #tpu.memory_space<vmem>>, vector<8x1xf32>
    tpu.vector_store %arg9[%c0_67, %c2_68], %106 {strides = array<i32>} : memref<8x4xf32, #tpu.memory_space<vmem>>, vector<8x1xf32>,
    %c0_69 = arith.constant 0 : index
    %c64_70 = arith.constant 64 : index
    %108 = vector.load %arg10[%c0_69, %c64_70] : memref<8x128xf32, #tpu.memory_space<vmem>>, vector<8x32xf32>
    %109 = vector.broadcast %98 : vector<8x1xf32> to vector<8x32xf32>
    %110 = arith.mulf %109, %108 : vector<8x32xf32>
    %111 = arith.truncf %101 : vector<8x8xf32> to vector<8x8xbf16>
    %cst_71 = arith.constant dense<0.000000e+00> : vector<8x32xf32>
    %112 = tpu.matmul %111, %87, %cst_71 {dimension_numbers = #tpu.dot_dimension_numbers<[1], [0], [0], [1], [0, 0, 1, 1], [], []>} : vector<8x8xbf16>, vector<8x32xbf16>, vector<8x32xf32> -> vector<8x32xf32>
    %113 = arith.addf %110, %112 : vector<8x32xf32>
    %c0_72 = arith.constant 0 : index
    %c64_73 = arith.constant 64 : index
    %114 = vector.load %arg10[%c0_72, %c64_73] : memref<8x128xf32, #tpu.memory_space<vmem>>, vector<8x32xf32>
    tpu.vector_store %arg10[%c0_72, %c64_73], %113 {strides = array<i32>} : memref<8x128xf32, #tpu.memory_space<vmem>>, vector<8x32xf32>,
    %c0_74 = arith.constant 0 : index
    %c2_75 = arith.constant 2 : index
    %115 = vector.load %arg8[%c0_74, %c2_75] : memref<8x4xf32, #tpu.memory_space<vmem>>, vector<8x1xf32>
    tpu.vector_store %arg8[%c0_74, %c2_75], %96 {strides = array<i32>} : memref<8x4xf32, #tpu.memory_space<vmem>>, vector<8x1xf32>,
    %c0_76 = arith.constant 0 : index
    %c0_77 = arith.constant 0 : index
    %c96 = arith.constant 96 : index
    %116 = vector.load %arg3[%c0_76, %c0_77, %c96] : memref<1x8x128xf32, #tpu.memory_space<vmem>>, vector<1x8x32xf32>
    %117 = vector.shape_cast %116 : vector<1x8x32xf32> to vector<8x32xf32>
    %118 = arith.truncf %117 : vector<8x32xf32> to vector<8x32xbf16>
    %c0_78 = arith.constant 0 : index
    %c0_79 = arith.constant 0 : index
    %c96_80 = arith.constant 96 : index
    %119 = vector.load %arg4[%c0_78, %c0_79, %c96_80] : memref<1x8x128xf32, #tpu.memory_space<vmem>>, vector<1x8x32xf32>
    %120 = vector.shape_cast %119 : vector<1x8x32xf32> to vector<8x32xf32>
    %121 = arith.truncf %120 : vector<8x32xf32> to vector<8x32xbf16>
    %c0_81 = arith.constant 0 : index
    %c0_82 = arith.constant 0 : index
    %c96_83 = arith.constant 96 : index
    %122 = vector.load %arg5[%c0_81, %c0_82, %c96_83] : memref<1x8x128xf32, #tpu.memory_space<vmem>>, vector<1x8x32xf32>
    %123 = vector.shape_cast %122 : vector<1x8x32xf32> to vector<8x32xf32>
    %124 = arith.truncf %123 : vector<8x32xf32> to vector<8x32xbf16>
    %cst_84 = arith.constant dense<0.000000e+00> : vector<8x8xf32>
    %125 = tpu.matmul %118, %121, %cst_84 {dimension_numbers = #tpu.dot_dimension_numbers<[1], [1], [0], [0], [0, 0, 1, 0], [], []>} : vector<8x32xbf16>, vector<8x32xbf16>, vector<8x8xf32> -> vector<8x8xf32>
    %cst_85 = arith.constant 0.176776692 : f32
    %126 = vector.broadcast %cst_85 : f32 to vector<8x8xf32>
    %127 = arith.mulf %125, %126 : vector<8x8xf32>
    %128 = vector.broadcast %4 : vector<1x8xf32> to vector<8x8xf32>
    %129 = arith.addf %127, %128 : vector<8x8xf32>
    %c0_86 = arith.constant 0 : index
    %c3 = arith.constant 3 : index
    %130 = vector.load %arg8[%c0_86, %c3] : memref<8x4xf32, #tpu.memory_space<vmem>>, vector<8x1xf32>
    %cst_87 = arith.constant dense<0xFF800000> : vector<8xf32>
    %131 = vector.multi_reduction <maximumf>, %129, %cst_87 [1] : vector<8x8xf32> to vector<8xf32>
    %132 = vector.shape_cast %131 : vector<8xf32> to vector<8x1xf32>
    %133 = arith.maximumf %130, %132 : vector<8x1xf32>
    %134 = arith.subf %130, %133 : vector<8x1xf32>
    %135 = math.exp %134 : vector<8x1xf32>
    %136 = vector.broadcast %133 : vector<8x1xf32> to vector<8x8xf32>
    %137 = arith.subf %129, %136 : vector<8x8xf32>
    %138 = math.exp %137 : vector<8x8xf32>
    %c0_88 = arith.constant 0 : index
    %c3_89 = arith.constant 3 : index
    %139 = vector.load %arg9[%c0_88, %c3_89] : memref<8x4xf32, #tpu.memory_space<vmem>>, vector<8x1xf32>
    %140 = arith.mulf %135, %139 : vector<8x1xf32>
    %cst_90 = arith.constant dense<0.000000e+00> : vector<8xf32>
    %141 = vector.multi_reduction <add>, %138, %cst_90 [1] : vector<8x8xf32> to vector<8xf32>
    %142 = vector.shape_cast %141 : vector<8xf32> to vector<8x1xf32>
    %143 = arith.addf %140, %142 : vector<8x1xf32>
    %c0_91 = arith.constant 0 : index
    %c3_92 = arith.constant 3 : index
    %144 = vector.load %arg9[%c0_91, %c3_92] : memref<8x4xf32, #tpu.memory_space<vmem>>, vector<8x1xf32>
    tpu.vector_store %arg9[%c0_91, %c3_92], %143 {strides = array<i32>} : memref<8x4xf32, #tpu.memory_space<vmem>>, vector<8x1xf32>,
    %c0_93 = arith.constant 0 : index
    %c96_94 = arith.constant 96 : index
    %145 = vector.load %arg10[%c0_93, %c96_94] : memref<8x128xf32, #tpu.memory_space<vmem>>, vector<8x32xf32>
    %146 = vector.broadcast %135 : vector<8x1xf32> to vector<8x32xf32>
    %147 = arith.mulf %146, %145 : vector<8x32xf32>
    %148 = arith.truncf %138 : vector<8x8xf32> to vector<8x8xbf16>
    %cst_95 = arith.constant dense<0.000000e+00> : vector<8x32xf32>
    %149 = tpu.matmul %148, %124, %cst_95 {dimension_numbers = #tpu.dot_dimension_numbers<[1], [0], [0], [1], [0, 0, 1, 1], [], []>} : vector<8x8xbf16>, vector<8x32xbf16>, vector<8x32xf32> -> vector<8x32xf32>
    %150 = arith.addf %147, %149 : vector<8x32xf32>
    %c0_96 = arith.constant 0 : index
    %c96_97 = arith.constant 96 : index
    %151 = vector.load %arg10[%c0_96, %c96_97] : memref<8x128xf32, #tpu.memory_space<vmem>>, vector<8x32xf32>
    tpu.vector_store %arg10[%c0_96, %c96_97], %150 {strides = array<i32>} : memref<8x128xf32, #tpu.memory_space<vmem>>, vector<8x32xf32>,
    %c0_98 = arith.constant 0 : index
    %c3_99 = arith.constant 3 : index
    %152 = vector.load %arg8[%c0_98, %c3_99] : memref<8x4xf32, #tpu.memory_space<vmem>>, vector<8x1xf32>
    tpu.vector_store %arg8[%c0_98, %c3_99], %133 {strides = array<i32>} : memref<8x4xf32, #tpu.memory_space<vmem>>, vector<8x1xf32>,
    %c0_i32_100 = arith.constant 0 : i32
    %153 = arith.cmpi eq, %arg2, %c0_i32_100 : i32
    %154 = arith.extui %153 : i1 to i32
    %c0_i32_101 = arith.constant 0 : i32
    %155 = arith.cmpi ne, %154, %c0_i32_101 : i32
    scf.if %155 {
      %c0_102 = arith.constant 0 : index
      %c0_103 = arith.constant 0 : index
      %156 = vector.load %arg9[%c0_102, %c0_103] : memref<8x4xf32, #tpu.memory_space<vmem>>, vector<8x1xf32>
      %157 = tpu.reciprocal %156 {approx = true} : vector<8x1xf32> -> vector<8x1xf32>
      %c0_104 = arith.constant 0 : index
      %c0_105 = arith.constant 0 : index
      %158 = vector.load %arg10[%c0_104, %c0_105] : memref<8x128xf32, #tpu.memory_space<vmem>>, vector<8x32xf32>
      %159 = vector.broadcast %157 : vector<8x1xf32> to vector<8x32xf32>
      %160 = arith.mulf %158, %159 : vector<8x32xf32>
      %c0_106 = arith.constant 0 : index
      %c0_107 = arith.constant 0 : index
      %c0_108 = arith.constant 0 : index
      %161 = vector.load %arg7[%c0_106, %c0_107, %c0_108] : memref<1x8x128xf32, #tpu.memory_space<vmem>>, vector<1x8x32xf32>
      %162 = vector.shape_cast %161 : vector<1x8x32xf32> to vector<8x32xf32>
      %163 = vector.shape_cast %160 : vector<8x32xf32> to vector<1x8x32xf32>
      tpu.vector_store %arg7[%c0_106, %c0_107, %c0_108], %163 {strides = array<i32>} : memref<1x8x128xf32, #tpu.memory_space<vmem>>, vector<1x8x32xf32>,
      %c0_109 = arith.constant 0 : index
      %c1_110 = arith.constant 1 : index
      %164 = vector.load %arg9[%c0_109, %c1_110] : memref<8x4xf32, #tpu.memory_space<vmem>>, vector<8x1xf32>
      %165 = tpu.reciprocal %164 {approx = true} : vector<8x1xf32> -> vector<8x1xf32>
      %c0_111 = arith.constant 0 : index
      %c32_112 = arith.constant 32 : index
      %166 = vector.load %arg10[%c0_111, %c32_112] : memref<8x128xf32, #tpu.memory_space<vmem>>, vector<8x32xf32>
      %167 = vector.broadcast %165 : vector<8x1xf32> to vector<8x32xf32>
      %168 = arith.mulf %166, %167 : vector<8x32xf32>
      %c0_113 = arith.constant 0 : index
      %c0_114 = arith.constant 0 : index
      %c32_115 = arith.constant 32 : index
      %169 = vector.load %arg7[%c0_113, %c0_114, %c32_115] : memref<1x8x128xf32, #tpu.memory_space<vmem>>, vector<1x8x32xf32>
      %170 = vector.shape_cast %169 : vector<1x8x32xf32> to vector<8x32xf32>
      %171 = vector.shape_cast %168 : vector<8x32xf32> to vector<1x8x32xf32>
      tpu.vector_store %arg7[%c0_113, %c0_114, %c32_115], %171 {strides = array<i32>} : memref<1x8x128xf32, #tpu.memory_space<vmem>>, vector<1x8x32xf32>,
      %c0_116 = arith.constant 0 : index
      %c2_117 = arith.constant 2 : index
      %172 = vector.load %arg9[%c0_116, %c2_117] : memref<8x4xf32, #tpu.memory_space<vmem>>, vector<8x1xf32>
      %173 = tpu.reciprocal %172 {approx = true} : vector<8x1xf32> -> vector<8x1xf32>
      %c0_118 = arith.constant 0 : index
      %c64_119 = arith.constant 64 : index
      %174 = vector.load %arg10[%c0_118, %c64_119] : memref<8x128xf32, #tpu.memory_space<vmem>>, vector<8x32xf32>
      %175 = vector.broadcast %173 : vector<8x1xf32> to vector<8x32xf32>
      %176 = arith.mulf %174, %175 : vector<8x32xf32>
      %c0_120 = arith.constant 0 : index
      %c0_121 = arith.constant 0 : index
      %c64_122 = arith.constant 64 : index
      %177 = vector.load %arg7[%c0_120, %c0_121, %c64_122] : memref<1x8x128xf32, #tpu.memory_space<vmem>>, vector<1x8x32xf32>
      %178 = vector.shape_cast %177 : vector<1x8x32xf32> to vector<8x32xf32>
      %179 = vector.shape_cast %176 : vector<8x32xf32> to vector<1x8x32xf32>
      tpu.vector_store %arg7[%c0_120, %c0_121, %c64_122], %179 {strides = array<i32>} : memref<1x8x128xf32, #tpu.memory_space<vmem>>, vector<1x8x32xf32>,
      %c0_123 = arith.constant 0 : index
      %c3_124 = arith.constant 3 : index
      %180 = vector.load %arg9[%c0_123, %c3_124] : memref<8x4xf32, #tpu.memory_space<vmem>>, vector<8x1xf32>
      %181 = tpu.reciprocal %180 {approx = true} : vector<8x1xf32> -> vector<8x1xf32>
      %c0_125 = arith.constant 0 : index
      %c96_126 = arith.constant 96 : index
      %182 = vector.load %arg10[%c0_125, %c96_126] : memref<8x128xf32, #tpu.memory_space<vmem>>, vector<8x32xf32>
      %183 = vector.broadcast %181 : vector<8x1xf32> to vector<8x32xf32>
      %184 = arith.mulf %182, %183 : vector<8x32xf32>
      %c0_127 = arith.constant 0 : index
      %c0_128 = arith.constant 0 : index
      %c96_129 = arith.constant 96 : index
      %185 = vector.load %arg7[%c0_127, %c0_128, %c96_129] : memref<1x8x128xf32, #tpu.memory_space<vmem>>, vector<1x8x32xf32>
      %186 = vector.shape_cast %185 : vector<1x8x32xf32> to vector<8x32xf32>
      %187 = vector.shape_cast %184 : vector<8x32xf32> to vector<1x8x32xf32>
      tpu.vector_store %arg7[%c0_127, %c0_128, %c96_129], %187 {strides = array<i32>} : memref<1x8x128xf32, #tpu.memory_space<vmem>>, vector<1x8x32xf32>,
    } else {
    }
    return
  }
  func.func @transform_0(%arg0: i32, %arg1: i32, %arg2: i32) -> (i32, i32, i32) {
    %c0_i32 = arith.constant 0 : i32
    %c0_i32_0 = arith.constant 0 : i32
    return %arg0, %arg1, %c0_i32 : i32, i32, i32
  }
  func.func @transform_1(%arg0: i32, %arg1: i32, %arg2: i32) -> (i32, i32, i32) {
    %c0_i32 = arith.constant 0 : i32
    %c0_i32_0 = arith.constant 0 : i32
    return %arg0, %arg2, %c0_i32 : i32, i32, i32
  }
  func.func @transform_2(%arg0: i32, %arg1: i32, %arg2: i32) -> (i32, i32, i32) {
    %c1_i32 = arith.constant 1 : i32
    %c0_i32 = arith.constant 0 : i32
    return %arg0, %arg2, %c1_i32 : i32, i32, i32
  }
  func.func @transform_3(%arg0: i32, %arg1: i32, %arg2: i32) -> (i32, i32, i32) {
    %c0_i32 = arith.constant 0 : i32
    %c0_i32_0 = arith.constant 0 : i32
    return %arg0, %c0_i32, %arg2 : i32, i32, i32
  }
  func.func @transform_4(%arg0: i32, %arg1: i32, %arg2: i32) -> (i32, i32, i32) {
    %c0_i32 = arith.constant 0 : i32
    %c0_i32_0 = arith.constant 0 : i32
    return %arg0, %arg1, %c0_i32 : i32, i32, i32
  }
}

</mosaic_0001>

<bundles_post_ra>
// kernel: transformer_forward.27
= control target key start
LH: loop header
LB: loop body
LE: loop exit
PB: predicated region body
PF: predicated region fallthrough
CT: control target
= control target key end

     0   :  { %v244_v0 = vmov 0.0   ;;  %vm245_vm0 = vmmov 0   ;;  %s332_s1 = inlined_call_operand.vmem [shape: bf16[128,128], index: 1, kind: input, shape index: {}]   ;;  %s333_s0 = inlined_call_operand.vmem [shape: f32[16,128], index: 0, kind: input, shape index: {}]   ;;  %s334_s2 = inlined_call_operand.vmem [shape: f32[1,128], index: 2, kind: input, shape index: {}]   ;;  %s335_s3 = inlined_call_operand.vmem [shape: f32[16,128], index: 3, kind: input, shape index: {}]   ;;  %s336_s4 = inlined_call_operand.vmem [shape: f32[1,128], index: 4, kind: input, shape index: {}]   ;;  %s337_s5 = inlined_call_operand.vmem [shape: f32[1,128], index: 5, kind: input, shape index: {}]   ;;  %s338_s6 = inlined_call_operand.vmem [shape: f32[16,128], index: 6, kind: output, shape index: {}]  }
   0x1   :  { %210 = vmatprep.subr.bf16.mxu0 %v244_v0  ;;  %v232_v1 = vld [vmem:[%s332_s1 + $0x38] sm:$0xff]   ;;  %226 = vmatprep.mubr.msk.bf16.mxu0 %vm245_vm0, %v244_v0  ;;  %v233_v2 = vld [vmem:[%s332_s1 + $0x30] sm:$0xff]   ;;  %v234_v3 = vld [vmem:[%s332_s1 + $0x28] sm:$0xff]  }
   0x2   :  { %211 = vmatpush3.bf16.msra.mxu0 %v232_v1  ;;  %v235_v4 = vld [vmem:[%s332_s1 + $0x20] sm:$0xff]   ;;  %v236_v5 = vld [vmem:[%s332_s1 + $0x18] sm:$0xff]   ;;  %v237_v6 = vld [vmem:[%s332_s1 + $0x10] sm:$0xff]  }
   0x3   :  { %212 = vmatprep.subr.bf16.mxu0 %v244_v0  ;;  %v238_v7 = vld [vmem:[%s332_s1 + $0x8] sm:$0xff]   ;;  %v239_v8 = vld [vmem:[%s332_s1] sm:$0xff]  }
   0x4   :  { %v24_v9 = vld [vmem:[%s333_s0] sm:$0xff]  ;;  %v25_v10 = vld [vmem:[%s333_s0 + $0x8] sm:$0xff] }
   0x5   :  { %v26_v11 = vpack.c.bf16 %v25_v10, %v24_v9  ;;  %v190_v12 = vld [vmem:[%s334_s2] ss:$0 sm:$0xff]  ;;  %v140_v19 = vld [vmem:[%s335_s3 + $0x8] sm:$0xff] }
   0x6   :  { %213 = vmatpush3.bf16.msra.mxu0 %v233_v2  ;;  %v139_v14 = vld [vmem:[%s335_s3] sm:$0xff] }
   0x7   :  { %214 = vmatprep.subr.bf16.mxu0 %v244_v0  ;;  %v199_v38 = vld [vmem:[%s336_s4] ss:$0 sm:$0xff] }
   0x8   :  { %v200_v40 = vld [vmem:[%s337_s5] ss:$0 sm:$0xff] }
   0xa   :  { %215 = vmatpush3.bf16.msra.mxu0 %v234_v3 }
   0xb   :  { %216 = vmatprep.subr.bf16.mxu0 %v244_v0 }
   0xe   :  { %217 = vmatpush3.bf16.msra.mxu0 %v235_v4 }
   0xf   :  { %218 = vmatprep.subr.bf16.mxu0 %v244_v0 }
  0x12   :  { %219 = vmatpush3.bf16.msra.mxu0 %v236_v5 }
  0x13   :  { %220 = vmatprep.subr.bf16.mxu0 %v244_v0 }
  0x16   :  { %221 = vmatpush3.bf16.msra.mxu0 %v237_v6 }
  0x17   :  { %222 = vmatprep.subr.bf16.mxu0 %v244_v0 }
  0x1a   :  { %223 = vmatpush3.bf16.msra.mxu0 %v238_v7 }
  0x1b   :  { %224 = vmatprep.subr.bf16.mxu0 %v244_v0 }
  0x1e   :  { %225 = vmatpush3.bf16.msra.mxu0 %v239_v8 }
  0x21   :  { %227 = vmatmul.mubr.bf16.vlgmr.msra.gmra.mxu0 %v26_v11 }
  0xe1   :  { %v132_v13 = vpop.f32.mrf.mxu0 }
  0xe2   :  { %v133_v15 = vadd.f32 %v190_v12, %v132_v13 }
  0xe3   :  { %v228_v16 = vpop.f32.mrf.mxu0 }
  0xe4   :  { %v141_v17 = vadd.f32 %v139_v14, %v133_v15 }
  0xe5   :  { %v135_v18 = vpop.f32.mrf.mxu0 }
  0xe6   :  { %v136_v20 = vadd.f32 %v190_v12, %v135_v18  ;;  %143 = vadd.xlane.f32.xlu0 %v141_v17 }
  0xe7   :  { %v229_v21 = vpop.f32.mrf.mxu0 }
  0xe8   :  { %v142_v22 = vadd.f32 %v140_v19, %v136_v20 }
  0xea   :  { %145 = vadd.xlane.f32.xlu0 %v142_v22 }
 0x16f   :  { %v144_v23 = vpop.xlane.xlu0 %143 }
 0x170   :  { %v148_v24 = vmul.f32 0.0078125, %v144_v23 }
 0x172   :  { %v150_v25 = vsub.f32 %v141_v17, %v148_v24 }
 0x173   :  { %v146_v26 = vpop.xlane.xlu0 %145 }
 0x174   :  { %v149_v27 = vmul.f32 0.0078125, %v146_v26  ;;  %v152_v28 = vmul.f32 %v150_v25, %v150_v25 }
 0x176   :  { %v151_v29 = vsub.f32 %v142_v22, %v149_v27  ;;  %154 = vadd.xlane.f32.xlu1 %v152_v28 }
 0x178   :  { %v153_v30 = vmul.f32 %v151_v29, %v151_v29 }
 0x17a   :  { %156 = vadd.xlane.f32.xlu1 %v153_v30 }
 0x1ff   :  { %v155_v31 = vpop.xlane.xlu1 %154 }
 0x200   :  { %v158_v32 = vmul.f32 0.0078125, %v155_v31 }
 0x202   :  { %v160_v33 = vadd.f32 1e-05, %v158_v32 }
 0x203   :  { %v157_v34 = vpop.xlane.xlu1 %156 }
 0x204   :  { %240 = vrsqrt.f32 %v160_v33  ;;  %v159_v35 = vmul.f32 0.0078125, %v157_v34 }
 0x206   :  { %v161_v36 = vadd.f32 1e-05, %v159_v35 }
 0x208   :  { %242 = vrsqrt.f32 %v161_v36 }
 0x211   :  { %v241_v37 = vpop.eup %240 }
 0x212   :  { %v164_v39 = vmul.f32 %v241_v37, %v150_v25 }
 0x214   :  { %v173_v41 = vmul.f32 %v199_v38, %v164_v39 }
 0x215   :  { %v243_v42 = vpop.eup %242 }
 0x216   :  { %v182_v43 = vadd.f32 %v200_v40, %v173_v41  ;;  %v165_v44 = vmul.f32 %v243_v42, %v151_v29 }
 0x218   :  { %184 = vst [vmem:[%s338_s6] sm:$0xff] %v182_v43  ;;  %v174_v45 = vmul.f32 %v199_v38, %v165_v44 }
 0x21a   :  { %v183_v46 = vadd.f32 %v200_v40, %v174_v45 }
 0x21c   :  { %185 = vst [vmem:[%s338_s6 + $0x8] sm:$0xff] %v183_v46 }

// kernel: transformer_forward.25
= control target key start
LH: loop header
LB: loop body
LE: loop exit
PB: predicated region body
PF: predicated region fallthrough
CT: control target
= control target key end

     0   :  { %v427_v0 = vmov 0.0   ;;  %vm428_vm0 = vmmov 0   ;;  %v429_v3 = vmov 0   ;;  %v306_v27 = vlaneseq  ;;  %s546_s1 = inlined_call_operand.vmem [shape: bf16[128,384], index: 1, kind: input, shape index: {}]   ;;  %s547_s0 = inlined_call_operand.vmem [shape: bf16[16,128], index: 0, kind: input, shape index: {}]   ;;  %s548_s2 = inlined_call_operand.vmem [shape: f32[1,384], index: 2, kind: input, shape index: {}]   ;;  %s549_s3 = inlined_call_operand.vmem [shape: f32[16,384], index: 3, kind: output, shape index: {}]  }
   0x1   :  { %371 = vmatprep.subr.bf16.mxu1 %v427_v0  ;;  %v394_v1 = vld [vmem:[%s546_s1 + $0xac] ss:$12 sps:$4 sm:$0xff]   ;;  %387 = vmatprep.mubr.msk.bf16.mxu1 %vm428_vm0, %v427_v0  ;;  %v396_v2 = vld [vmem:[%s546_s1 + $0xb0] ss:$12 sps:$4 sm:$0xff]   ;;  %v397_v4 = vld [vmem:[%s546_s1 + $0xa8] ss:$12 sps:$4 sm:$0xff]  }
   0x2   :  { %231 = vmatprep.mubr.bf16.mxu0 %v429_v3  ;;  %199 = vmatprep.subr.bf16.mxu0 %v394_v1  ;;  %v398_v5 = vld [vmem:[%s546_s1 + $0x94] ss:$12 sps:$4 sm:$0xff]   ;;  %v400_v6 = vld [vmem:[%s546_s1 + $0x98] ss:$12 sps:$4 sm:$0xff]   ;;  %v401_v7 = vld [vmem:[%s546_s1 + $0x90] ss:$12 sps:$4 sm:$0xff]  }
   0x3   :  { %372 = vmatpush3.bf16.msra.mxu1 %v396_v2  ;;  %200 = vmatpush1.bf16.msra.mxu0 %v397_v4  ;;  %v402_v8 = vld [vmem:[%s546_s1 + $0x7c] ss:$12 sps:$4 sm:$0xff]   ;;  %v404_v9 = vld [vmem:[%s546_s1 + $0x80] ss:$12 sps:$4 sm:$0xff]   ;;  %v405_v10 = vld [vmem:[%s546_s1 + $0x78] ss:$12 sps:$4 sm:$0xff]  }
   0x4   :  { %373 = vmatprep.subr.bf16.mxu1 %v427_v0  ;;  %201 = vmatprep.subr.bf16.mxu0 %v398_v5  ;;  %v406_v11 = vld [vmem:[%s546_s1 + $0x64] ss:$12 sps:$4 sm:$0xff]   ;;  %v408_v12 = vld [vmem:[%s546_s1 + $0x68] ss:$12 sps:$4 sm:$0xff]   ;;  %v409_v13 = vld [vmem:[%s546_s1 + $0x60] ss:$12 sps:$4 sm:$0xff]  }
   0x5   :  { %v410_v14 = vld [vmem:[%s546_s1 + $0x4c] ss:$12 sps:$4 sm:$0xff]   ;;  %v412_v15 = vld [vmem:[%s546_s1 + $0x50] ss:$12 sps:$4 sm:$0xff]   ;;  %v413_v16 = vld [vmem:[%s546_s1 + $0x48] ss:$12 sps:$4 sm:$0xff]  }
   0x6   :  { %v414_v17 = vld [vmem:[%s546_s1 + $0x34] ss:$12 sps:$4 sm:$0xff]   ;;  %v416_v18 = vld [vmem:[%s546_s1 + $0x38] ss:$12 sps:$4 sm:$0xff]   ;;  %v417_v19 = vld [vmem:[%s546_s1 + $0x30] ss:$12 sps:$4 sm:$0xff]  }
   0x7   :  { %374 = vmatpush3.bf16.msra.mxu1 %v400_v6  ;;  %202 = vmatpush1.bf16.msra.mxu0 %v401_v7  ;;  %v418_v20 = vld [vmem:[%s546_s1 + $0x1c] ss:$12 sps:$4 sm:$0xff]   ;;  %v420_v21 = vld [vmem:[%s546_s1 + $0x20] ss:$12 sps:$4 sm:$0xff]   ;;  %v421_v22 = vld [vmem:[%s546_s1 + $0x18] ss:$12 sps:$4 sm:$0xff]  }
   0x8   :  { %375 = vmatprep.subr.bf16.mxu1 %v427_v0  ;;  %203 = vmatprep.subr.bf16.mxu0 %v402_v8  ;;  %v422_v23 = vld [vmem:[%s546_s1 + $0x4] ss:$12 sps:$4 sm:$0xff]   ;;  %v424_v24 = vld [vmem:[%s546_s1 + $0x8] ss:$12 sps:$4 sm:$0xff]   ;;  %v425_v25 = vld [vmem:[%s546_s1] ss:$12 sps:$4 sm:$0xff]  }
   0x9   :  { %v426_v26 = vld [vmem:[%s547_s0] sm:$0xff]   ;;  %v307_v28 = vshrl.u32 %v306_v27, 7 }
   0xa   :  { %v304_v31 = vld [vmem:[%s548_s2] sm:$0x7] }
   0xb   :  { %376 = vmatpush3.bf16.msra.mxu1 %v404_v9  ;;  %204 = vmatpush1.bf16.msra.mxu0 %v405_v10  ;;  %v316_v29 = vsub.s32 2, %v307_v28  ;;  %v308_v30 = vsub.s32 0, %v307_v28  ;;  %v312_v32 = vsub.s32 1, %v307_v28 }
   0xc   :  { %377 = vmatprep.subr.bf16.mxu1 %v427_v0  ;;  %205 = vmatprep.subr.bf16.mxu0 %v406_v11 }
   0xd   :  { %v317_v33 = vrot.slane %v304_v31, %v316_v29  ;;  %v309_v34 = vrot.slane %v304_v31, %v308_v30  ;;  %v313_v36 = vrot.slane %v304_v31, %v312_v32 }
   0xf   :  { %378 = vmatpush3.bf16.msra.mxu1 %v408_v12  ;;  %206 = vmatpush1.bf16.msra.mxu0 %v409_v13 }
  0x10   :  { %379 = vmatprep.subr.bf16.mxu1 %v427_v0  ;;  %207 = vmatprep.subr.bf16.mxu0 %v410_v14 }
  0x13   :  { %380 = vmatpush3.bf16.msra.mxu1 %v412_v15  ;;  %208 = vmatpush1.bf16.msra.mxu0 %v413_v16 }
  0x14   :  { %381 = vmatprep.subr.bf16.mxu1 %v427_v0  ;;  %209 = vmatprep.subr.bf16.mxu0 %v414_v17 }
  0x17   :  { %382 = vmatpush3.bf16.msra.mxu1 %v416_v18  ;;  %210 = vmatpush1.bf16.msra.mxu0 %v417_v19 }
  0x18   :  { %383 = vmatprep.subr.bf16.mxu1 %v427_v0  ;;  %211 = vmatprep.subr.bf16.mxu0 %v418_v20 }
  0x1b   :  { %384 = vmatpush3.bf16.msra.mxu1 %v420_v21  ;;  %212 = vmatpush1.bf16.msra.mxu0 %v421_v22 }
  0x1c   :  { %385 = vmatprep.subr.bf16.mxu1 %v427_v0  ;;  %213 = vmatprep.subr.bf16.mxu0 %v422_v23 }
  0x1f   :  { %386 = vmatpush3.bf16.msra.mxu1 %v424_v24  ;;  %214 = vmatpush1.bf16.msra.mxu0 %v425_v25 }
  0x22   :  { %388 = vmatmul.mubr.bf16.vlgmr.msra.gmra.mxu1 %v426_v26  ;;  %232 = vmatmul.mubr.bf16.vlgmr.msra.gmra.mxu0 %v426_v26 }
  0xe2   :  { %v276_v35 = vpop.f32.mrf.mxu1  ;;  %v233_v38 = vpop.f32.mrf.mxu0 }
  0xe3   :  { %v323_v37 = vadd.f32 %v317_v33, %v276_v35  ;;  %v321_v39 = vadd.f32 %v309_v34, %v233_v38 }
  0xe4   :  { %v389_v40 = vpop.f32.mrf.mxu1  ;;  %v235_v41 = vpop.f32.mrf.mxu0 }
  0xe5   :  { %329 = vst [vmem:[%s549_s3 + $0x10] sm:$0xff] %v323_v37  ;;  %327 = vst [vmem:[%s549_s3] sm:$0xff] %v321_v39  ;;  %v322_v42 = vadd.f32 %v313_v36, %v235_v41 }
  0xe6   :  { %v279_v43 = vpop.f32.mrf.mxu1  ;;  %v237_v45 = vpop.f32.mrf.mxu0 }
  0xe7   :  { %v326_v44 = vadd.f32 %v317_v33, %v279_v43  ;;  %328 = vst [vmem:[%s549_s3 + $0x8] sm:$0xff] %v322_v42  ;;  %v324_v46 = vadd.f32 %v309_v34, %v237_v45 }
  0xe8   :  { %v390_v47 = vpop.f32.mrf.mxu1  ;;  %v239_v48 = vpop.f32.mrf.mxu0 }
  0xe9   :  { %332 = vst [vmem:[%s549_s3 + $0x28] sm:$0xff] %v326_v44  ;;  %330 = vst [vmem:[%s549_s3 + $0x18] sm:$0xff] %v324_v46  ;;  %v325_v49 = vadd.f32 %v313_v36, %v239_v48 }
  0xeb   :  { %331 = vst [vmem:[%s549_s3 + $0x20] sm:$0xff] %v325_v49 }

// kernel: transformer_forward.28
= control target key start
LH: loop header
LB: loop body
LE: loop exit
PB: predicated region body
PF: predicated region fallthrough
CT: control target
= control target key end

     0   :  { %v535_v1 = vmov 0   ;;  %v54_v36 = vlaneseq  ;;  %s696_s1 = inlined_call_operand.vmem [shape: bf16[128,256], index: 1, kind: input, shape index: {}]   ;;  %s697_s3 = inlined_call_operand.vmem [shape: bf16[256,128], index: 3, kind: input, shape index: {}]   ;;  %s698_s0 = inlined_call_operand.vmem [shape: f32[16,128], index: 0, kind: input, shape index: {}]   ;;  %s699_s2 = inlined_call_operand.vmem [shape: f32[1,256], index: 2, kind: input, shape index: {}]   ;;  %s700_s4 = inlined_call_operand.vmem [shape: f32[1,128], index: 4, kind: input, shape index: {}]   ;;  %s701_s5 = inlined_call_operand.vmem [shape: f32[1,128], index: 5, kind: input, shape index: {}]   ;;  %s702_s6 = inlined_call_operand.vmem [shape: f32[1,128], index: 6, kind: input, shape index: {}]   ;;  %s703_s7 = inlined_call_operand.vmem [shape: f32[16,128], index: 7, kind: output, shape index: {}]  }
   0x1   :  { %v491_v0 = vld [vmem:[%s696_s1 + $0x74] ss:$8 sps:$4 sm:$0xff]   ;;  %176 = vmatprep.mubr.bf16.mxu0 %v535_v1  ;;  %v493_v2 = vld [vmem:[%s696_s1 + $0x70] ss:$8 sps:$4 sm:$0xff]   ;;  %v494_v3 = vld [vmem:[%s696_s1 + $0x64] ss:$8 sps:$4 sm:$0xff]  }
   0x2   :  { %144 = vmatprep.subr.bf16.mxu0 %v491_v0  ;;  %v496_v4 = vld [vmem:[%s696_s1 + $0x60] ss:$8 sps:$4 sm:$0xff]   ;;  %v497_v5 = vld [vmem:[%s696_s1 + $0x54] ss:$8 sps:$4 sm:$0xff]   ;;  %v499_v6 = vld [vmem:[%s696_s1 + $0x50] ss:$8 sps:$4 sm:$0xff]  }
   0x3   :  { %145 = vmatpush1.bf16.msra.mxu0 %v493_v2  ;;  %v500_v7 = vld [vmem:[%s696_s1 + $0x44] ss:$8 sps:$4 sm:$0xff]   ;;  %v502_v8 = vld [vmem:[%s696_s1 + $0x40] ss:$8 sps:$4 sm:$0xff]   ;;  %v503_v9 = vld [vmem:[%s696_s1 + $0x34] ss:$8 sps:$4 sm:$0xff]  }
   0x4   :  { %146 = vmatprep.subr.bf16.mxu0 %v494_v3  ;;  %v515_v10 = vld [vmem:[%s697_s3 + $0x78] sm:$0xff]   ;;  %v506_v13 = vld [vmem:[%s696_s1 + $0x24] ss:$8 sps:$4 sm:$0xff]   ;;  %v517_v14 = vld [vmem:[%s697_s3 + $0x70] sm:$0xff]   ;;  %v55_v37 = vshrl.u32 %v54_v36, 7 }
   0x5   :  { %v505_v11 = vld [vmem:[%s696_s1 + $0x30] ss:$8 sps:$4 sm:$0xff]   ;;  %468 = vmatprep.subr.bf16.mxu1 %v515_v10  ;;  %v519_v16 = vld [vmem:[%s697_s3 + $0x68] sm:$0xff]   ;;  %v509_v18 = vld [vmem:[%s696_s1 + $0x14] ss:$8 sps:$4 sm:$0xff]  }
   0x6   :  { %v516_v12 = vld [vmem:[%s697_s3 + $0x38] sm:$0xff]   ;;  %v518_v15 = vld [vmem:[%s697_s3 + $0x30] sm:$0xff]   ;;  %v508_v17 = vld [vmem:[%s696_s1 + $0x20] ss:$8 sps:$4 sm:$0xff]   ;;  %v60_v38 = vsub.s32 1, %v55_v37  ;;  %v56_v39 = vsub.s32 0, %v55_v37 }
   0x7   :  { %147 = vmatpush1.bf16.msra.mxu0 %v496_v4  ;;  %469 = vmatpush3.bf16.msra.mxu1 %v516_v12  ;;  %v520_v19 = vld [vmem:[%s697_s3 + $0x28] sm:$0xff]   ;;  %v521_v20 = vld [vmem:[%s697_s3 + $0x60] sm:$0xff]   ;;  %v511_v21 = vld [vmem:[%s696_s1 + $0x10] ss:$8 sps:$4 sm:$0xff]  }
   0x8   :  { %148 = vmatprep.subr.bf16.mxu0 %v497_v5  ;;  %470 = vmatprep.subr.bf16.mxu1 %v517_v14  ;;  %v522_v22 = vld [vmem:[%s697_s3 + $0x20] sm:$0xff]   ;;  %v523_v24 = vld [vmem:[%s697_s3 + $0x58] sm:$0xff]   ;;  %v34_v27 = vld [vmem:[%s698_s0 + $0x8] sm:$0xff] }
   0x9   :  { %v512_v23 = vld [vmem:[%s696_s1 + $0x4] ss:$8 sps:$4 sm:$0xff]   ;;  %v514_v25 = vld [vmem:[%s696_s1] ss:$8 sps:$4 sm:$0xff]   ;;  %v524_v28 = vld [vmem:[%s697_s3 + $0x18] sm:$0xff]  }
   0xa   :  { %v33_v26 = vld [vmem:[%s698_s0] sm:$0xff]  ;;  %v525_v30 = vld [vmem:[%s697_s3 + $0x50] sm:$0xff]   ;;  %v527_v32 = vld [vmem:[%s697_s3 + $0x48] sm:$0xff]  }
   0xb   :  { %149 = vmatpush1.bf16.msra.mxu0 %v499_v6  ;;  %471 = vmatpush3.bf16.msra.mxu1 %v518_v15  ;;  %v35_v29 = vpack.c.bf16 %v34_v27, %v33_v26  ;;  %v526_v31 = vld [vmem:[%s697_s3 + $0x10] sm:$0xff]   ;;  %v528_v33 = vld [vmem:[%s697_s3 + $0x8] sm:$0xff]   ;;  %v529_v34 = vld [vmem:[%s697_s3 + $0x40] sm:$0xff]  }
   0xc   :  { %150 = vmatprep.subr.bf16.mxu0 %v500_v7  ;;  %472 = vmatprep.subr.bf16.mxu1 %v519_v16  ;;  %v530_v35 = vld [vmem:[%s697_s3] sm:$0xff]  }
   0xd   :  { %v52_v40 = vld [vmem:[%s699_s2] sm:$0x3] }
   0xe   :  { %v61_v42 = vrot.slane %v52_v40, %v60_v38  ;;  %v57_v43 = vrot.slane %v52_v40, %v56_v39  ;;  %v465_v61 = vld [vmem:[%s700_s4] ss:$0 sm:$0xff] }
   0xf   :  { %151 = vmatpush1.bf16.msra.mxu0 %v502_v8  ;;  %473 = vmatpush3.bf16.msra.mxu1 %v520_v19  ;;  %v466_v19 = vld [vmem:[%s701_s5] ss:$0 sm:$0xff] }
  0x10   :  { %152 = vmatprep.subr.bf16.mxu0 %v503_v9  ;;  %474 = vmatprep.subr.bf16.mxu1 %v521_v20 }
  0x13   :  { %153 = vmatpush1.bf16.msra.mxu0 %v505_v11  ;;  %475 = vmatpush3.bf16.msra.mxu1 %v522_v22 }
  0x14   :  { %154 = vmatprep.subr.bf16.mxu0 %v506_v13  ;;  %476 = vmatprep.subr.bf16.mxu1 %v523_v24 }
  0x17   :  { %155 = vmatpush1.bf16.msra.mxu0 %v508_v17  ;;  %477 = vmatpush3.bf16.msra.mxu1 %v524_v28 }
  0x18   :  { %156 = vmatprep.subr.bf16.mxu0 %v509_v18  ;;  %478 = vmatprep.subr.bf16.mxu1 %v525_v30 }
  0x1b   :  { %157 = vmatpush1.bf16.msra.mxu0 %v511_v21  ;;  %479 = vmatpush3.bf16.msra.mxu1 %v526_v31  ;;  %v467_v21 = vld [vmem:[%s702_s6] ss:$0 sm:$0xff] }
  0x1c   :  { %158 = vmatprep.subr.bf16.mxu0 %v512_v23  ;;  %480 = vmatprep.subr.bf16.mxu1 %v527_v32 }
  0x1f   :  { %159 = vmatpush1.bf16.msra.mxu0 %v514_v25  ;;  %481 = vmatpush3.bf16.msra.mxu1 %v528_v33 }
  0x20   :  { %482 = vmatprep.subr.bf16.mxu1 %v529_v34 }
  0x22   :  { %177 = vmatmul.mubr.bf16.vlgmr.msra.gmra.mxu0 %v35_v29 }
  0x23   :  { %483 = vmatpush3.bf16.msra.mxu1 %v530_v35 }
  0xe2   :  { %v178_v41 = vpop.f32.mrf.mxu0 }
  0xe3   :  { %v179_v48 = vadd.f32 %v178_v41, %v57_v43 }
  0xe4   :  { %v180_v44 = vpop.f32.mrf.mxu0 }
  0xe5   :  { %v181_v46 = vadd.f32 %v180_v44, %v61_v42  ;;  %v187_v54 = vmax.f32 %v179_v48, 0.0 }
  0xe6   :  { %v182_v45 = vpop.f32.mrf.mxu0 }
  0xe7   :  { %v183_v47 = vadd.f32 %v182_v45, %v57_v43  ;;  %v188_v52 = vmax.f32 %v181_v46, 0.0 }
  0xe8   :  { %v184_v49 = vpop.f32.mrf.mxu0 }
  0xe9   :  { %v185_v50 = vadd.f32 %v184_v49, %v61_v42  ;;  %v189_v51 = vmax.f32 %v183_v47, 0.0 }
  0xeb   :  { %v190_v53 = vmax.f32 %v185_v50, 0.0  ;;  %v193_v56 = vpack.c.bf16 %v189_v51, %v187_v54 }
  0xed   :  { %v194_v55 = vpack.c.bf16 %v190_v53, %v188_v52 }
  0xef   :  { %355 = vmatprep.mubr.bf16.mxu1 %v194_v55 }
  0xf0   :  { %356 = vmatmul.mubr.bf16.vlgmr.msra.gmra.mxu1 %v193_v56 }
 0x1b0   :  { %v484_v57 = vpop.f32.mrf.mxu1 }
 0x1b2   :  { %v485_v58 = vpop.f32.mrf.mxu1 }
 0x1b3   :  { %v486_v59 = vadd.f32 %v485_v58, %v484_v57 }
 0x1b4   :  { %v487_v60 = vpop.f32.mrf.mxu1 }
 0x1b5   :  { %v375_v62 = vadd.f32 %v486_v59, %v33_v26 }
 0x1b6   :  { %v488_v63 = vpop.f32.mrf.mxu1 }
 0x1b7   :  { %v489_v0 = vadd.f32 %v488_v63, %v487_v60  ;;  %v384_v1 = vadd.f32 %v465_v61, %v375_v62 }
 0x1b9   :  { %v376_v2 = vadd.f32 %v489_v0, %v34_v27  ;;  %386 = vadd.xlane.f32.xlu0 %v384_v1 }
 0x1bb   :  { %v385_v3 = vadd.f32 %v465_v61, %v376_v2 }
 0x1bd   :  { %388 = vadd.xlane.f32.xlu0 %v385_v3 }
 0x242   :  { %v387_v4 = vpop.xlane.xlu0 %386 }
 0x243   :  { %v391_v5 = vmul.f32 0.0078125, %v387_v4 }
 0x245   :  { %v393_v6 = vsub.f32 %v384_v1, %v391_v5 }
 0x246   :  { %v389_v7 = vpop.xlane.xlu0 %388 }
 0x247   :  { %v392_v8 = vmul.f32 0.0078125, %v389_v7  ;;  %v395_v9 = vmul.f32 %v393_v6, %v393_v6 }
 0x249   :  { %v394_v10 = vsub.f32 %v385_v3, %v392_v8  ;;  %397 = vadd.xlane.f32.xlu1 %v395_v9 }
 0x24b   :  { %v396_v11 = vmul.f32 %v394_v10, %v394_v10 }
 0x24d   :  { %399 = vadd.xlane.f32.xlu1 %v396_v11 }
 0x2d2   :  { %v398_v12 = vpop.xlane.xlu1 %397 }
 0x2d3   :  { %v401_v13 = vmul.f32 0.0078125, %v398_v12 }
 0x2d5   :  { %v403_v14 = vadd.f32 1e-05, %v401_v13 }
 0x2d6   :  { %v400_v15 = vpop.xlane.xlu1 %399 }
 0x2d7   :  { %531 = vrsqrt.f32 %v403_v14  ;;  %v402_v16 = vmul.f32 0.0078125, %v400_v15 }
 0x2d9   :  { %v404_v17 = vadd.f32 1e-05, %v402_v16 }
 0x2db   :  { %533 = vrsqrt.f32 %v404_v17 }
 0x2e4   :  { %v532_v18 = vpop.eup %531 }
 0x2e5   :  { %v407_v20 = vmul.f32 %v532_v18, %v393_v6 }
 0x2e7   :  { %v416_v22 = vmul.f32 %v466_v19, %v407_v20 }
 0x2e8   :  { %v534_v23 = vpop.eup %533 }
 0x2e9   :  { %v425_v24 = vadd.f32 %v467_v21, %v416_v22  ;;  %v408_v25 = vmul.f32 %v534_v23, %v394_v10 }
 0x2eb   :  { %427 = vst [vmem:[%s703_s7] sm:$0xff] %v425_v24  ;;  %v417_v26 = vmul.f32 %v466_v19, %v408_v25 }
 0x2ed   :  { %v426_v27 = vadd.f32 %v467_v21, %v417_v26 }
 0x2ef   :  { %428 = vst [vmem:[%s703_s7 + $0x8] sm:$0xff] %v426_v27 }

// kernel: transformer_forward.26
= control target key start
LH: loop header
LB: loop body
LE: loop exit
PB: predicated region body
PF: predicated region fallthrough
CT: control target
= control target key end

     0   :  { %s1340_s15 = smov 0   ;;  %s1342_s16 = smov 0   ;;  %s1543_s0 = inlined_call_operand.vmem [shape: f32[2,8,384], index: 0, kind: input, shape index: {}, may-alias: {0,1,2}]   ;;  %s1544_s1 = inlined_call_operand.vmem [shape: f32[2,8,384], index: 1, kind: input, shape index: {}, may-alias: {0,1,2}]   ;;  %s1545_s2 = inlined_call_operand.vmem [shape: f32[2,8,384], index: 2, kind: input, shape index: {}, may-alias: {0,1,2}]   ;;  %s1546_s3 = inlined_call_operand.vmem [shape: f32[2,1,8], index: 3, kind: input, shape index: {}]   ;;  %s1547_s4 = inlined_call_operand.vmem [shape: f32[2,8,128], index: 4, kind: output, shape index: {}]  }
   0x1   :  { %s1344_s17 = smov 0  }
   0x2 LB: > { %s33_s18 = sadd.s32 1, %s1299_s16  ;;  %p1127_p0 = scmp.ge.s32.totalorder %s1303_s17, 1  ;;  %s1303_s17 = sphi %s1344_s17, %s14_s17   ;;  %s1299_s16 = sphi %s1342_s16, %s1549_s16   ;;  %s1295_s15 = sphi %s1340_s15, %s1548_s15  }
   0x3   : > { %p35_p1 = scmp.ge.s32.totalorder %s33_s18, 2  ;;  %p236_p2 = scmp.lt.s32.totalorder %s1303_s17, 3 }
   0x5   : > { %s1551_s18 = smov (%p35_p1, %s33_s18), 0  ;;  %p237_p3 = pnand %p1127_p0, %p236_p2 }
   0x6   : > { %p294_p4 = scmp.lt.s32.totalorder (!%p237_p3), %s1295_s15, 1  ;;  %s1309_s29 = smov (!%p237_p3), 96  }
   0x7   : > { %240 = sbr.rel (%p237_p3) target bundleno = 1350 (0x546), region = 36  ;;  %s1310_s30 = smov (!%p237_p3), 64  }
   0x8   : > { %s1311_s5 = smov (!%p237_p3), 32  }
   0xc   : > { %v1305_v0 = vmov 0.0   ;;  %vm1306_vm0 = vmmov 0   ;;  %s1553_s15 = smov (!%p294_p4, %s1295_s15), 1  ;;  %vm352_vm1 = vcmask 261120   ;;  %vm341_vm2 = vcmask 31744  }
   0xd   : > { %1167 = vmatprep.subr.bf16.mxu0 %v1305_v0  ;;  %344 = vst [vmem:[#allocation4] sm:$0xff] %v1305_v0  ;;  %1169 = vmatprep.mubr.msk.bf16.mxu0 %vm1306_vm0, %v1305_v0  ;;  %s1368_s19 = smul.u32 24, %s1553_s15  ;;  %v1307_v6 = vmov -inf   ;;  %343 = vst.msk [vmem:[#allocation3] sm:$0xff] %vm341_vm2, %v1305_v0  ;;  %s328_s28 = scalar_lea.vmem %s1546_s3, %s1553_s15  ;;  %vm408_vm3 = vcmask 64512   ;;  %v1308_v15 = vmov 0  }
   0xe   : > { %1173 = vmatprep.subr.bf16.mxu1 %v1305_v0  ;;  %1175 = vmatprep.mubr.msk.bf16.mxu1 %vm1306_vm0, %v1305_v0  ;;  %342 = vst.msk [vmem:[#allocation2] sm:$0xff] %vm341_vm2, %v1307_v6  ;;  %v1388_v8 = vld [vmem:[%s328_s28] ss:$0 sm:$0xff]  ;;  %vm430_vm4 = vcmask 7168   ;;  %vm443_vm5 = vcmask 1043456   ;;  %v1312_v57 = vmov 1  }
   0xf   : > { %s1055_s22 = scalar_lea.vmem %s1544_s1, %s1368_s19  ;;  %s302_s25 = scalar_lea.vmem %s1543_s0, %s1368_s19  ;;  %1250 = vset.pattern.permute.xlu0 %v1308_v15  ;;  %1251 = vset.pattern.permute.xlu1 %v1312_v57  ;;  %v1313_v63 = vmov 2   ;;  %vm572_vm6 = vcmask 15368   ;;  %vm721_vm7 = vcmask 23568   ;;  %vm870_vm8 = vcmask 31768  }
  0x10   : > { %v1132_v1 = vld [vmem:[%s1055_s22 + $0x8] sm:$0xff]  ;;  %v346_v4 = vld [vmem:[%s302_s25] sm:$0xff]  ;;  %s1061_s8 = scalar_lea.vmem %s1545_s2, %s1368_s19  ;;  %vm636_vm9 = vcmask 523520   ;;  %vm785_vm10 = vcmask 785920   ;;  %vm934_vm11 = vcmask 1048320   ;;  %s1131_s9 = sshll.u32 %s1553_s15, 3 }
  0x11   : > { %v349_v2 = vpack.c.bf16 %v1132_v1, %v1132_v1  ;;  %v347_v5 = vpack.c.bf16 %v346_v4, %v346_v4  ;;  %v1133_v20 = vld [vmem:[%s1061_s8 + $0x10] sm:$0xff]  ;;  %s335_s12 = scalar_lea.vmem %s1547_s4, %s1131_s9 }
  0x12   : > { %v1413_v21 = vpack.c.bf16 %v1133_v20, %v1133_v20 }
  0x13   : > { %v357_v3 = vsel %vm352_vm1, %v349_v2, 0  ;;  %500 = vrot.lane.b32.xlu1 %v349_v2, %s1309_s29 }
  0x14   : > { %1168 = vmatpush3.bf16.xpose.msra.mxu0 %v357_v3  ;;  %v445_v22 = vsel %vm443_vm5, %v1413_v21, 0 }
  0x15   : > { %1185 = vmatprep.subr.bf16.mxu0 %v1305_v0  ;;  %v1399_v16 = vld [vmem:[#allocation2] sm:$0xff]  ;;  %1174 = vmatpush3.bf16.msra.mxu1 %v445_v22 }
  0x16   : > { %1179 = vmatprep.subr.bf16.mxu1 %v1305_v0 }
  0x17   : > { %497 = vrot.lane.b32.xlu1 %v347_v5, %s1309_s29 }
  0x1b   : > { %1170 = vmatmul.mubr.msk.bf16.vlgmr.msra.gmra.mxu0 %vm352_vm1, %v347_v5  ;;  %649 = vrot.lane.b32.xlu1 %v349_v2, %s1310_s30 }
  0x1c   : > { %1187 = vmatprep.mubr.msk.bf16.mxu0 %vm1306_vm0, %v1305_v0 }
  0x1f   : > { %646 = vrot.lane.b32.xlu1 %v347_v5, %s1310_s30 }
  0x23   : > { %798 = vrot.lane.b32.xlu1 %v349_v2, %s1311_s5 }
  0x27   : > { %795 = vrot.lane.b32.xlu1 %v347_v5, %s1311_s5 }
  0x85   : > { %v501_v26 = vpop.permute.xlu1 %500 }
  0x86   : > { %v506_v29 = vsel %vm352_vm1, %v501_v26, 0 }
  0x89   : > { %v498_v27 = vpop.permute.xlu1 %497 }
  0x8d   : > { %v650_v31 = vpop.permute.xlu1 %649 }
  0x8e   : > { %v655_v33 = vsel %vm352_vm1, %v650_v31, 0 }
  0x91   : > { %v647_v32 = vpop.permute.xlu1 %646 }
  0x95   : > { %v799_v34 = vpop.permute.xlu1 %798 }
  0x96   : > { %v804_v35 = vsel %vm352_vm1, %v799_v34, 0 }
  0x99   : > { %v796_v36 = vpop.permute.xlu1 %795 }
  0xdb   : > { %v393_v7 = vpop.f32.mrf.mxu0 }
  0xdc   : > { %v399_v9 = vmul.f32 0.17677669, %v393_v7  ;;  %v1314_v7 = vmov 3  }
  0xdd   : > { %v1171_v10 = vpop.f32.mrf.mxu0 }
  0xde   : > { %v406_v11 = vadd.f32 %v1388_v8, %v399_v9 }
  0xdf   : > { %v396_v12 = vpop.f32.mrf.mxu0 }
  0xe0   : > { %v409_v13 = vsel %vm408_vm3, %v406_v11, -inf }
  0xe1   : > { %410 = vmax.xlane.f32.xlu0 %v409_v13  ;;  %v1172_v14 = vpop.f32.mrf.mxu0 }
 0x16a   : > { %v411_v17 = vpop.xlane.xlu0 %410 }
 0x16b   : > { %v1402_v18 = vmax.f32 %v1399_v16, %v411_v17 }
 0x16d   : > { %v413_v19 = vsub.f32 %v1399_v16, %v1402_v18  ;;  %489 = vst.msk [vmem:[#allocation2] sm:$0xff] %vm430_vm4, %v1402_v18  ;;  %418 = vperm.xlu0 %1250, %v1402_v18  }
 0x16f   : > { %v414_v1 = vmul.f32 1.442695, %v413_v19 }
 0x171   : > { %1252 = vset.pattern.permute.xlu0 %v1313_v63 }
 0x174   : > { %v550_v3 = vld [vmem:[#allocation2] sm:$0xff] }
 0x1e8   : > { %v419_v23 = vpop.permute.xlu0 %418 }
 0x1e9   : > { %v421_v24 = vsub.f32 %v406_v11, %v419_v23 }
 0x1eb   : > { %v422_v25 = vmul.f32 1.442695, %v421_v24 }
 0x1ed   : > { %1263 = vpow2.f32 %v422_v25 }
 0x1ee   : > { %1265 = vpow2.f32 %v414_v1 }
 0x1fa   : > { %v1418_v28 = vpop.eup %1263 }
 0x1fb   : > { %v439_v30 = vpack.c.bf16 %v1418_v28, %v1418_v28  ;;  %v1464_v11 = vpop.eup %1265  ;;  %v426_v18 = vsel %vm408_vm3, %v1418_v28, 0.0 }
 0x1fd   : > { %1176 = vmatmul.mubr.msk.bf16.vlgmr.msra.gmra.mxu1 %vm408_vm3, %v439_v30 }
 0x1fe   : > { %1180 = vmatpush3.bf16.xpose.msra.mxu1 %v506_v29  ;;  %1181 = vmatprep.mubr.msk.bf16.mxu1 %vm1306_vm0, %v1305_v0 }
 0x1ff   : > { %1191 = vmatprep.subr.bf16.mxu1 %v1305_v0 }
 0x205   : > { %1182 = vmatmul.mubr.msk.bf16.vlgmr.msra.gmra.mxu1 %vm352_vm1, %v498_v27 }
 0x206   : > { %1192 = vmatpush3.bf16.xpose.msra.mxu1 %v655_v33  ;;  %1193 = vmatprep.mubr.msk.bf16.mxu1 %vm1306_vm0, %v1305_v0 }
 0x207   : > { %1203 = vmatprep.subr.bf16.mxu1 %v1305_v0 }
 0x20d   : > { %1194 = vmatmul.mubr.msk.bf16.vlgmr.msra.gmra.mxu1 %vm352_vm1, %v647_v32 }
 0x20e   : > { %1204 = vmatpush3.bf16.xpose.msra.mxu1 %v804_v35  ;;  %1205 = vmatprep.mubr.msk.bf16.mxu1 %vm1306_vm0, %v1305_v0 }
 0x215   : > { %1206 = vmatmul.mubr.msk.bf16.vlgmr.msra.gmra.mxu1 %vm352_vm1, %v796_v36 }
 0x2bd   : > { %v1437_v37 = vpop.f32.mrf.mxu1 }
 0x2bf   : > { %v1177_v38 = vpop.f32.mrf.mxu1 }
 0x2c1   : > { %v484_v39 = vpop.f32.mrf.mxu1 }
 0x2c3   : > { %v1178_v40 = vpop.f32.mrf.mxu1 }
 0x2c5   : > { %v542_v41 = vpop.f32.mrf.mxu1 }
 0x2c6   : > { %v548_v42 = vmul.f32 0.17677669, %v542_v41 }
 0x2c7   : > { %v1183_v43 = vpop.f32.mrf.mxu1 }
 0x2c8   : > { %v1440_v44 = vadd.f32 %v1388_v8, %v548_v42 }
 0x2c9   : > { %v545_v45 = vpop.f32.mrf.mxu1 }
 0x2ca   : > { %v551_v46 = vsel %vm408_vm3, %v1440_v44, -inf }
 0x2cb   : > { %552 = vmax.xlane.f32.xlu1 %v551_v46  ;;  %v1184_v47 = vpop.f32.mrf.mxu1 }
 0x2cd   : > { %v691_v48 = vpop.f32.mrf.mxu1 }
 0x2ce   : > { %v697_v49 = vmul.f32 0.17677669, %v691_v48 }
 0x2cf   : > { %v1195_v50 = vpop.f32.mrf.mxu1 }
 0x2d0   : > { %v1445_v51 = vadd.f32 %v1388_v8, %v697_v49  ;;  %v424_v49 = vld [vmem:[#allocation3] sm:$0xff] }
 0x2d1   : > { %v694_v52 = vpop.f32.mrf.mxu1  ;;  %v425_v50 = vmul.f32 %v1464_v11, %v424_v49 }
 0x2d2   : > { %v700_v53 = vsel %vm408_vm3, %v1445_v51, -inf }
 0x2d3   : > { %701 = vmax.xlane.f32.xlu0 %v700_v53  ;;  %v1196_v54 = vpop.f32.mrf.mxu1 }
 0x2d5   : > { %v840_v55 = vpop.f32.mrf.mxu1 }
 0x2d6   : > { %v846_v56 = vmul.f32 0.17677669, %v840_v55 }
 0x2d7   : > { %v1207_v58 = vpop.f32.mrf.mxu1 }
 0x2d8   : > { %v1451_v59 = vadd.f32 %v1388_v8, %v846_v56 }
 0x2d9   : > { %v843_v60 = vpop.f32.mrf.mxu1 }
 0x2da   : > { %v849_v61 = vsel %vm408_vm3, %v1451_v59, -inf }
 0x2db   : > { %v1208_v62 = vpop.f32.mrf.mxu1  ;;  %850 = vmax.xlane.f32.xlu1 %v849_v61 }
 0x354   : > { %v553_v2 = vpop.xlane.xlu1 %552 }
 0x355   : > { %v554_v4 = vmax.f32 %v550_v3, %v553_v2 }
 0x357   : > { %v555_v5 = vsub.f32 %v550_v3, %v554_v4  ;;  %638 = vst.msk [vmem:[#allocation2] sm:$0xff] %vm572_vm6, %v554_v4  ;;  %560 = vperm.xlu1 %1251, %v554_v4  }
 0x359   : > { %v556_v17 = vmul.f32 1.442695, %v555_v5 }
 0x35b   : > { %583 = vrot.lane.b32.xlu1 %v1413_v21, %s1309_s29  ;;  %1267 = vpow2.f32 %v556_v17 }
 0x35c   : > { %v702_v6 = vpop.xlane.xlu0 %701  ;;  %1253 = vset.pattern.permute.xlu1 %v1314_v7 }
 0x35e   : > { %v699_v8 = vld [vmem:[#allocation2] sm:$0xff] }
 0x35f   : > { %v703_v9 = vmax.f32 %v699_v8, %v702_v6 }
 0x361   : > { %v704_v10 = vsub.f32 %v699_v8, %v703_v9  ;;  %787 = vst.msk [vmem:[#allocation2] sm:$0xff] %vm721_vm7, %v703_v9  ;;  %709 = vperm.xlu0 %1252, %v703_v9  }
 0x363   : > { %v705_v41 = vmul.f32 1.442695, %v704_v10 }
 0x364   : > { %v851_v12 = vpop.xlane.xlu1 %850 }
 0x365   : > { %1254 = vset.pattern.permute.xlu0 %v1308_v15 }
 0x366   : > { %435 = vperm.xlu0 %1254, %v1464_v11  }
 0x368   : > { %v1468_v13 = vld [vmem:[#allocation2] sm:$0xff]  ;;  %v1268_v19 = vpop.eup %1267 }
 0x369   : > { %v1471_v14 = vmax.f32 %v1468_v13, %v851_v12 }
 0x36a   : > { %1257 = vset.pattern.permute.xlu0 %v1314_v7 }
 0x36b   : > { %v853_v16 = vsub.f32 %v1468_v13, %v1471_v14  ;;  %936 = vst.msk [vmem:[#allocation2] sm:$0xff] %vm870_vm8, %v1471_v14  ;;  %858 = vperm.xlu1 %1253, %v1471_v14  }
 0x36d   : > { %v854_v56 = vmul.f32 1.442695, %v853_v16 }
 0x36f   : > { %732 = vrot.lane.b32.xlu1 %v1413_v21, %s1310_s30 }
 0x370   : > { %1255 = vset.pattern.permute.xlu1 %v1312_v57 }
 0x373   : > { %881 = vrot.lane.b32.xlu1 %v1413_v21, %s1311_s5 }
 0x397   : > { %427 = vadd.xlane.f32.xlu1 %v426_v18 }
 0x3a8   : > { %577 = vperm.xlu1 %1255, %v1268_v19  }
 0x3ac   : > { %1256 = vset.pattern.permute.xlu1 %v1313_v63 }
 0x3d2   : > { %v561_v20 = vpop.permute.xlu1 %560 }
 0x3d3   : > { %v563_v22 = vsub.f32 %v1440_v44, %v561_v20 }
 0x3d5   : > { %v564_v23 = vmul.f32 1.442695, %v563_v22 }
 0x3d6   : > { %v584_v24 = vpop.permute.xlu1 %583 }
 0x3d7   : > { %1269 = vpow2.f32 %v564_v23  ;;  %v589_v25 = vsel %vm443_vm5, %v584_v24, 0 }
 0x3d8   : > { %1186 = vmatpush3.bf16.msra.mxu0 %v589_v25 }
 0x3d9   : > { %1197 = vmatprep.subr.bf16.mxu0 %v1305_v0 }
 0x3dc   : > { %v710_v21 = vpop.permute.xlu0 %709 }
 0x3dd   : > { %v712_v26 = vsub.f32 %v1445_v51, %v710_v21 }
 0x3df   : > { %v713_v27 = vmul.f32 1.442695, %v712_v26 }
 0x3e1   : > { %1271 = vpow2.f32 %v713_v27  ;;  %v436_v28 = vpop.permute.xlu0 %435 }
 0x3e2   : > { %v438_v29 = vmul.f32 0.0, %v436_v28 }
 0x3e4   : > { %v1270_v30 = vpop.eup %1269  ;;  %v487_v31 = vadd.f32 %v1437_v37, %v438_v29 }
 0x3e5   : > { %v568_v32 = vsel %vm408_vm3, %v1270_v30, 0.0  ;;  %v581_v33 = vpack.c.bf16 %v1270_v30, %v1270_v30 }
 0x3e6   : > { %488 = vst.msk [vmem:[#allocation4] sm:$0xff] %vm352_vm1, %v487_v31  ;;  %v859_v34 = vpop.permute.xlu1 %858  ;;  %569 = vadd.xlane.f32.xlu0 %v568_v32 }
 0x3e7   : > { %v861_v35 = vsub.f32 %v1451_v59, %v859_v34  ;;  %1188 = vmatmul.mubr.msk.bf16.vlgmr.msra.gmra.mxu0 %vm408_vm3, %v581_v33 }
 0x3e8   : > { %1199 = vmatprep.mubr.msk.bf16.mxu0 %vm1306_vm0, %v1305_v0 }
 0x3e9   : > { %v862_v36 = vmul.f32 1.442695, %v861_v35 }
 0x3ea   : > { %v733_v38 = vpop.permute.xlu1 %732 }
 0x3eb   : > { %1273 = vpow2.f32 %v862_v36  ;;  %v738_v39 = vsel %vm443_vm5, %v733_v38, 0 }
 0x3ec   : > { %1198 = vmatpush3.bf16.msra.mxu0 %v738_v39  ;;  %1275 = vpow2.f32 %v705_v41 }
 0x3ed   : > { %1209 = vmatprep.subr.bf16.mxu0 %v1305_v0  ;;  %1277 = vpow2.f32 %v854_v56  ;;  %v574_v20 = vld [vmem:[#allocation4] sm:$0xff] }
 0x3ee   : > { %v1272_v37 = vpop.eup %1271  ;;  %v882_v40 = vpop.permute.xlu1 %881 }
 0x3ef   : > { %v717_v42 = vsel %vm408_vm3, %v1272_v37, 0.0  ;;  %v730_v43 = vpack.c.bf16 %v1272_v37, %v1272_v37  ;;  %v887_v44 = vsel %vm443_vm5, %v882_v40, 0 }
 0x3f0   : > { %718 = vadd.xlane.f32.xlu1 %v717_v42 }
 0x3f1   : > { %1200 = vmatmul.mubr.msk.bf16.vlgmr.msra.gmra.mxu0 %vm408_vm3, %v730_v43 }
 0x3f2   : > { %1210 = vmatpush3.bf16.msra.mxu0 %v887_v44  ;;  %1211 = vmatprep.mubr.msk.bf16.mxu0 %vm1306_vm0, %v1305_v0 }
 0x3f8   : > { %v1274_v45 = vpop.eup %1273 }
 0x3f9   : > { %v866_v46 = vsel %vm408_vm3, %v1274_v45, 0.0  ;;  %v879_v47 = vpack.c.bf16 %v1274_v45, %v1274_v45  ;;  %v1276_v48 = vpop.eup %1275 }
 0x3fa   : > { %867 = vadd.xlane.f32.xlu0 %v866_v46  ;;  %v1278_v62 = vpop.eup %1277 }
 0x3fb   : > { %1212 = vmatmul.mubr.msk.bf16.vlgmr.msra.gmra.mxu0 %vm408_vm3, %v879_v47 }
 0x401   : > { %726 = vperm.xlu1 %1256, %v1276_v48  }
 0x405   : > { %1258 = vset.pattern.permute.xlu1 %v1308_v15 }
 0x420   : > { %v428_v51 = vpop.xlane.xlu1 %427 }
 0x421   : > { %v429_v52 = vadd.f32 %v428_v51, %v425_v50 }
 0x423   : > { %431 = vst.msk [vmem:[#allocation3] sm:$0xff] %vm430_vm4, %v429_v52 }
 0x424   : > { %v578_v58 = vpop.permute.xlu1 %577 }
 0x425   : > { %v580_v22 = vmul.f32 %v578_v58, %v574_v20 }
 0x42a   : > { %v566_v0 = vld [vmem:[#allocation3] sm:$0xff] }
 0x42b   : > { %v567_v53 = vmul.f32 %v1268_v19, %v566_v0 }
 0x46f   : > { %v570_v54 = vpop.xlane.xlu0 %569 }
 0x470   : > { %v571_v55 = vadd.f32 %v570_v54, %v567_v53 }
 0x472   : > { %573 = vst.msk [vmem:[#allocation3] sm:$0xff] %vm572_vm6, %v571_v55 }
 0x479   : > { %v715_v15 = vld [vmem:[#allocation3] sm:$0xff]  ;;  %v719_v60 = vpop.xlane.xlu1 %718 }
 0x47a   : > { %v716_v59 = vmul.f32 %v1276_v48, %v715_v15 }
 0x47c   : > { %v720_v61 = vadd.f32 %v719_v60, %v716_v59 }
 0x47d   : > { %v727_v25 = vpop.permute.xlu1 %726 }
 0x47e   : > { %722 = vst.msk [vmem:[#allocation3] sm:$0xff] %vm721_vm7, %v720_v61 }
 0x483   : > { %v868_v3 = vpop.xlane.xlu0 %867 }
 0x485   : > { %v864_v1 = vld [vmem:[#allocation3] sm:$0xff] }
 0x486   : > { %v865_v2 = vmul.f32 %v1278_v62, %v864_v1 }
 0x488   : > { %v869_v4 = vadd.f32 %v868_v3, %v865_v2 }
 0x48a   : > { %871 = vst.msk [vmem:[#allocation3] sm:$0xff] %vm870_vm8, %v869_v4 }
 0x491   : > { %v940_v5 = vld [vmem:[#allocation3] sm:$0xff] }
 0x492   : > { %1279 = vrcp.f32 %v940_v5 }
 0x49f   : > { %v1280_v6 = vpop.eup %1279 }
 0x4a0   : > { %945 = vperm.xlu1 %1258, %v1280_v6  }
 0x4a4   : > { %1260 = vset.pattern.permute.xlu1 %v1313_v63 }
 0x4a5   : > { %965 = vperm.xlu1 %1260, %v1280_v6  }
 0x4a7   : > { %v625_v8 = vpop.f32.mrf.mxu0 }
 0x4a8   : > { %632 = vrot.lane.b32.xlu0 %v625_v8, %s1311_s5 }
 0x4a9   : > { %1261 = vset.pattern.permute.xlu1 %v1314_v7  ;;  %v1189_v9 = vpop.f32.mrf.mxu0 }
 0x4aa   : > { %975 = vperm.xlu1 %1261, %v1280_v6  }
 0x4ab   : > { %v628_v10 = vpop.f32.mrf.mxu0 }
 0x4ad   : > { %v1190_v11 = vpop.f32.mrf.mxu0 }
 0x4b1   : > { %v774_v12 = vpop.f32.mrf.mxu0 }
 0x4b2   : > { %781 = vrot.lane.b32.xlu0 %v774_v12, %s1310_s30 }
 0x4b3   : > { %v1201_v13 = vpop.f32.mrf.mxu0 }
 0x4b5   : > { %v777_v14 = vpop.f32.mrf.mxu0 }
 0x4b6   : > { %875 = vperm.xlu0 %1257, %v1278_v62  }
 0x4b7   : > { %v1202_v16 = vpop.f32.mrf.mxu0 }
 0x4ba   : > { %1259 = vset.pattern.permute.xlu0 %v1312_v57 }
 0x4bb   : > { %v923_v63 = vpop.f32.mrf.mxu0 }
 0x4bc   : > { %930 = vrot.lane.b32.xlu0 %v923_v63, %s1309_s29 }
 0x4bd   : > { %v1213_v17 = vpop.f32.mrf.mxu0 }
 0x4bf   : > { %v926_v18 = vpop.f32.mrf.mxu0 }
 0x4c0   : > { %955 = vperm.xlu0 %1259, %v1280_v6  }
 0x4c1   : > { %v1214_v19 = vpop.f32.mrf.mxu0 }
 0x4c4   : > { %1262 = vset.pattern.permute.xlu0 %v1314_v7 }
 0x51a   : > { %v633_v23 = vpop.permute.xlu0 %632 }
 0x51b   : > { %v635_v24 = vadd.f32 %v633_v23, %v580_v22  ;;  %v946_v31 = vpop.permute.xlu1 %945 }
 0x51d   : > { %637 = vst.msk [vmem:[#allocation4] sm:$0xff] %vm636_vm9, %v635_v24 }
 0x520   : > { %v966_v33 = vpop.permute.xlu1 %965 }
 0x524   : > { %v723_v21 = vld [vmem:[#allocation4] sm:$0xff]  ;;  %v782_v26 = vpop.permute.xlu0 %781 }
 0x525   : > { %v729_v57 = vmul.f32 %v727_v25, %v723_v21  ;;  %v976_v39 = vpop.permute.xlu1 %975 }
 0x527   : > { %v784_v27 = vadd.f32 %v782_v26, %v729_v57 }
 0x529   : > { %786 = vst.msk [vmem:[#allocation4] sm:$0xff] %vm785_vm10, %v784_v27 }
 0x530   : > { %v872_v28 = vld [vmem:[#allocation4] sm:$0xff] }
 0x531   : > { %v876_v29 = vpop.permute.xlu0 %875 }
 0x532   : > { %v878_v30 = vmul.f32 %v876_v29, %v872_v28 }
 0x535   : > { %v931_v7 = vpop.permute.xlu0 %930 }
 0x536   : > { %v933_v32 = vadd.f32 %v931_v7, %v878_v30 }
 0x538   : > { %935 = vst.msk [vmem:[#allocation4] sm:$0xff] %vm934_vm11, %v933_v32 }
 0x53b   : > { %v956_v35 = vpop.permute.xlu0 %955 }
 0x53f   : > { %v942_v34 = vld [vmem:[#allocation4] sm:$0xff] }
 0x540   : > { %v948_v36 = vmul.f32 %v946_v31, %v942_v34  ;;  %v958_v38 = vmul.f32 %v956_v35, %v942_v34  ;;  %v968_v37 = vmul.f32 %v966_v33, %v942_v34  ;;  %v978_v40 = vmul.f32 %v976_v39, %v942_v34 }
 0x542   : > { %949 = vst.msk [vmem:[%s335_s12] sm:$0xff] %vm352_vm1, %v948_v36 }
 0x543   : > { %959 = vst.msk [vmem:[%s335_s12] sm:$0xff] %vm636_vm9, %v958_v38 }
 0x544   : > { %969 = vst.msk [vmem:[%s335_s12] sm:$0xff] %vm785_vm10, %v968_v37 }
 0x545   : > { %979 = vst.msk [vmem:[%s335_s12] sm:$0xff] %vm934_vm11, %v978_v40 }
 0x546 PF: > { %s14_s17 = sadd.s32 1, %s1303_s17   ;;  %s1548_s15 = smov %s1299_s16 }
 0x547   : > { %p11_p5 = scmp.ge.s32.totalorder %s14_s17, 4   ;;  %s1549_s16 = smov %s1551_s18 }
 0x549   :  { %13 = sbr.rel (!%p11_p5) target bundleno = 2 (0x2), region = 83 }

// kernel: transformer_forward.36
= control target key start
LH: loop header
LB: loop body
LE: loop exit
PB: predicated region body
PF: predicated region fallthrough
CT: control target
= control target key end

     0   :  { %v210_v0 = vmov 0.0   ;;  %vm211_vm0 = vmmov 0   ;;  %s268_s1 = inlined_call_operand.vmem [shape: bf16[128,128], index: 1, kind: input, shape index: {}]   ;;  %s269_s0 = inlined_call_operand.vmem [shape: bf16[16,128], index: 0, kind: input, shape index: {}]   ;;  %s270_s2 = inlined_call_operand.vmem [shape: f32[1,128], index: 2, kind: input, shape index: {}]   ;;  %s271_s3 = inlined_call_operand.vmem [shape: f32[16,128], index: 3, kind: output, shape index: {}]  }
   0x1   :  { %179 = vmatprep.subr.bf16.mxu0 %v210_v0  ;;  %v201_v1 = vld [vmem:[%s268_s1 + $0x38] sm:$0xff]   ;;  %195 = vmatprep.mubr.msk.bf16.mxu0 %vm211_vm0, %v210_v0  ;;  %v202_v2 = vld [vmem:[%s268_s1 + $0x30] sm:$0xff]   ;;  %v203_v3 = vld [vmem:[%s268_s1 + $0x28] sm:$0xff]  }
   0x2   :  { %180 = vmatpush3.bf16.msra.mxu0 %v201_v1  ;;  %v204_v4 = vld [vmem:[%s268_s1 + $0x20] sm:$0xff]   ;;  %v205_v5 = vld [vmem:[%s268_s1 + $0x18] sm:$0xff]   ;;  %v206_v6 = vld [vmem:[%s268_s1 + $0x10] sm:$0xff]  }
   0x3   :  { %181 = vmatprep.subr.bf16.mxu0 %v210_v0  ;;  %v207_v7 = vld [vmem:[%s268_s1 + $0x8] sm:$0xff]   ;;  %v208_v8 = vld [vmem:[%s268_s1] sm:$0xff]  }
   0x4   :  { %v209_v9 = vld [vmem:[%s269_s0] sm:$0xff]  }
   0x5   :  { %v169_v10 = vld [vmem:[%s270_s2] ss:$0 sm:$0xff] }
   0x6   :  { %182 = vmatpush3.bf16.msra.mxu0 %v202_v2 }
   0x7   :  { %183 = vmatprep.subr.bf16.mxu0 %v210_v0 }
   0xa   :  { %184 = vmatpush3.bf16.msra.mxu0 %v203_v3 }
   0xb   :  { %185 = vmatprep.subr.bf16.mxu0 %v210_v0 }
   0xe   :  { %186 = vmatpush3.bf16.msra.mxu0 %v204_v4 }
   0xf   :  { %187 = vmatprep.subr.bf16.mxu0 %v210_v0 }
  0x12   :  { %188 = vmatpush3.bf16.msra.mxu0 %v205_v5 }
  0x13   :  { %189 = vmatprep.subr.bf16.mxu0 %v210_v0 }
  0x16   :  { %190 = vmatpush3.bf16.msra.mxu0 %v206_v6 }
  0x17   :  { %191 = vmatprep.subr.bf16.mxu0 %v210_v0 }
  0x1a   :  { %192 = vmatpush3.bf16.msra.mxu0 %v207_v7 }
  0x1b   :  { %193 = vmatprep.subr.bf16.mxu0 %v210_v0 }
  0x1e   :  { %194 = vmatpush3.bf16.msra.mxu0 %v208_v8 }
  0x21   :  { %196 = vmatmul.mubr.bf16.vlgmr.msra.gmra.mxu0 %v209_v9 }
  0xe1   :  { %v129_v11 = vpop.f32.mrf.mxu0 }
  0xe2   :  { %v152_v12 = vadd.f32 %v169_v10, %v129_v11 }
  0xe3   :  { %v197_v13 = vpop.f32.mrf.mxu0 }
  0xe4   :  { %154 = vst [vmem:[%s271_s3] sm:$0xff] %v152_v12 }
  0xe5   :  { %v132_v14 = vpop.f32.mrf.mxu0 }
  0xe6   :  { %v153_v15 = vadd.f32 %v169_v10, %v132_v14 }
  0xe7   :  { %v198_v16 = vpop.f32.mrf.mxu0 }
  0xe8   :  { %155 = vst [vmem:[%s271_s3 + $0x8] sm:$0xff] %v153_v15 }

// kernel: transformer_forward.37
= control target key start
LH: loop header
LB: loop body
LE: loop exit
PB: predicated region body
PF: predicated region fallthrough
CT: control target
= control target key end

     0   :  { %v256_v1 = vmov 0   ;;  %v191_v18 = vlaneseq  ;;  %s343_s1 = inlined_call_operand.vmem [shape: bf16[128,256], index: 1, kind: input, shape index: {}]   ;;  %s344_s0 = inlined_call_operand.vmem [shape: bf16[16,128], index: 0, kind: input, shape index: {}]   ;;  %s345_s2 = inlined_call_operand.vmem [shape: f32[1,256], index: 2, kind: input, shape index: {}]   ;;  %s346_s3 = inlined_call_operand.vmem [shape: f32[16,256], index: 3, kind: output, shape index: {}]  }
   0x1   :  { %v231_v0 = vld [vmem:[%s343_s1 + $0x74] ss:$8 sps:$4 sm:$0xff]   ;;  %163 = vmatprep.mubr.bf16.mxu0 %v256_v1  ;;  %v233_v2 = vld [vmem:[%s343_s1 + $0x70] ss:$8 sps:$4 sm:$0xff]   ;;  %v234_v3 = vld [vmem:[%s343_s1 + $0x64] ss:$8 sps:$4 sm:$0xff]  }
   0x2   :  { %131 = vmatprep.subr.bf16.mxu0 %v231_v0  ;;  %v236_v4 = vld [vmem:[%s343_s1 + $0x60] ss:$8 sps:$4 sm:$0xff]   ;;  %v237_v5 = vld [vmem:[%s343_s1 + $0x54] ss:$8 sps:$4 sm:$0xff]   ;;  %v239_v6 = vld [vmem:[%s343_s1 + $0x50] ss:$8 sps:$4 sm:$0xff]  }
   0x3   :  { %132 = vmatpush1.bf16.msra.mxu0 %v233_v2  ;;  %v240_v7 = vld [vmem:[%s343_s1 + $0x44] ss:$8 sps:$4 sm:$0xff]   ;;  %v242_v8 = vld [vmem:[%s343_s1 + $0x40] ss:$8 sps:$4 sm:$0xff]   ;;  %v243_v9 = vld [vmem:[%s343_s1 + $0x34] ss:$8 sps:$4 sm:$0xff]  }
   0x4   :  { %133 = vmatprep.subr.bf16.mxu0 %v234_v3  ;;  %v245_v10 = vld [vmem:[%s343_s1 + $0x30] ss:$8 sps:$4 sm:$0xff]   ;;  %v246_v11 = vld [vmem:[%s343_s1 + $0x24] ss:$8 sps:$4 sm:$0xff]   ;;  %v248_v12 = vld [vmem:[%s343_s1 + $0x20] ss:$8 sps:$4 sm:$0xff]  }
   0x5   :  { %v249_v13 = vld [vmem:[%s343_s1 + $0x14] ss:$8 sps:$4 sm:$0xff]   ;;  %v251_v14 = vld [vmem:[%s343_s1 + $0x10] ss:$8 sps:$4 sm:$0xff]   ;;  %v252_v15 = vld [vmem:[%s343_s1 + $0x4] ss:$8 sps:$4 sm:$0xff]  }
   0x6   :  { %v254_v16 = vld [vmem:[%s343_s1] ss:$8 sps:$4 sm:$0xff]   ;;  %v192_v19 = vshrl.u32 %v191_v18, 7 }
   0x7   :  { %134 = vmatpush1.bf16.msra.mxu0 %v236_v4  ;;  %v255_v17 = vld [vmem:[%s344_s0] sm:$0xff]  }
   0x8   :  { %135 = vmatprep.subr.bf16.mxu0 %v237_v5  ;;  %v193_v20 = vsub.s32 0, %v192_v19  ;;  %v189_v21 = vld [vmem:[%s345_s2] sm:$0x3]  ;;  %v197_v22 = vsub.s32 1, %v192_v19 }
   0xa   :  { %v194_v23 = vrot.slane %v189_v21, %v193_v20  ;;  %v198_v24 = vrot.slane %v189_v21, %v197_v22 }
   0xb   :  { %136 = vmatpush1.bf16.msra.mxu0 %v239_v6 }
   0xc   :  { %137 = vmatprep.subr.bf16.mxu0 %v240_v7 }
   0xf   :  { %138 = vmatpush1.bf16.msra.mxu0 %v242_v8 }
  0x10   :  { %139 = vmatprep.subr.bf16.mxu0 %v243_v9 }
  0x13   :  { %140 = vmatpush1.bf16.msra.mxu0 %v245_v10 }
  0x14   :  { %141 = vmatprep.subr.bf16.mxu0 %v246_v11 }
  0x17   :  { %142 = vmatpush1.bf16.msra.mxu0 %v248_v12 }
  0x18   :  { %143 = vmatprep.subr.bf16.mxu0 %v249_v13 }
  0x1b   :  { %144 = vmatpush1.bf16.msra.mxu0 %v251_v14 }
  0x1c   :  { %145 = vmatprep.subr.bf16.mxu0 %v252_v15 }
  0x1f   :  { %146 = vmatpush1.bf16.msra.mxu0 %v254_v16 }
  0x22   :  { %164 = vmatmul.mubr.bf16.vlgmr.msra.gmra.mxu0 %v255_v17 }
  0xe2   :  { %v165_v25 = vpop.f32.mrf.mxu0 }
  0xe3   :  { %v201_v26 = vadd.f32 %v194_v23, %v165_v25 }
  0xe4   :  { %v167_v27 = vpop.f32.mrf.mxu0 }
  0xe5   :  { %205 = vst [vmem:[%s346_s3] sm:$0xff] %v201_v26  ;;  %v202_v28 = vadd.f32 %v198_v24, %v167_v27 }
  0xe6   :  { %v169_v29 = vpop.f32.mrf.mxu0 }
  0xe7   :  { %206 = vst [vmem:[%s346_s3 + $0x8] sm:$0xff] %v202_v28  ;;  %v203_v30 = vadd.f32 %v194_v23, %v169_v29 }
  0xe8   :  { %v171_v31 = vpop.f32.mrf.mxu0 }
  0xe9   :  { %207 = vst [vmem:[%s346_s3 + $0x10] sm:$0xff] %v203_v30  ;;  %v204_v32 = vadd.f32 %v198_v24, %v171_v31 }
  0xeb   :  { %208 = vst [vmem:[%s346_s3 + $0x18] sm:$0xff] %v204_v32 }

// kernel: transformer_forward.34
= control target key start
LH: loop header
LB: loop body
LE: loop exit
PB: predicated region body
PF: predicated region fallthrough
CT: control target
= control target key end

     0   :  { %s1344_s15 = smov 0   ;;  %s1346_s16 = smov 0   ;;  %s1546_s0 = inlined_call_operand.vmem [shape: f32[2,8,384], index: 0, kind: input, shape index: {}, may-alias: {0,1,2}]   ;;  %s1547_s1 = inlined_call_operand.vmem [shape: f32[2,8,384], index: 1, kind: input, shape index: {}, may-alias: {0,1,2}]   ;;  %s1548_s2 = inlined_call_operand.vmem [shape: f32[2,8,384], index: 2, kind: input, shape index: {}, may-alias: {0,1,2}]   ;;  %s1549_s3 = inlined_call_operand.vmem [shape: f32[1,8,8], index: 3, kind: input, shape index: {}]   ;;  %s1550_s4 = inlined_call_operand.vmem [shape: f32[2,8,128], index: 4, kind: output, shape index: {}]  }
   0x1   :  { %s1348_s17 = smov 0  }
   0x2 LB: > { %s33_s18 = sadd.s32 1, %s1303_s16  ;;  %p1132_p0 = scmp.ge.s32.totalorder %s1307_s17, 1  ;;  %s1307_s17 = sphi %s1348_s17, %s14_s17   ;;  %s1303_s16 = sphi %s1346_s16, %s1552_s16   ;;  %s1299_s15 = sphi %s1344_s15, %s1551_s15  }
   0x3   : > { %p35_p1 = scmp.ge.s32.totalorder %s33_s18, 2  ;;  %p237_p2 = scmp.lt.s32.totalorder %s1307_s17, 3 }
   0x5   : > { %s1554_s18 = smov (%p35_p1, %s33_s18), 0  ;;  %p238_p3 = pnand %p1132_p0, %p237_p2 }
   0x6   : > { %p296_p4 = scmp.lt.s32.totalorder (!%p238_p3), %s1299_s15, 1  ;;  %s1313_s28 = smov (!%p238_p3), 96  }
   0x7   : > { %241 = sbr.rel (%p238_p3) target bundleno = 1350 (0x546), region = 36  ;;  %s1314_s29 = smov (!%p238_p3), 64  }
   0x8   : > { %s1315_s30 = smov (!%p238_p3), 32  }
   0xc   : > { %v1309_v0 = vmov 0.0   ;;  %vm1310_vm0 = vmmov 0   ;;  %s1556_s15 = smov (!%p296_p4, %s1299_s15), 1  ;;  %vm355_vm1 = vcmask 261120   ;;  %vm344_vm2 = vcmask 31744   ;;  %v1391_v8 = vld [vmem:[%s1549_s3] sm:$0xff] }
   0xd   : > { %1171 = vmatprep.subr.bf16.mxu0 %v1309_v0  ;;  %347 = vst [vmem:[#allocation4] sm:$0xff] %v1309_v0  ;;  %1173 = vmatprep.mubr.msk.bf16.mxu0 %vm1310_vm0, %v1309_v0  ;;  %s1372_s19 = smul.u32 24, %s1556_s15  ;;  %v1311_v6 = vmov -inf   ;;  %346 = vst.msk [vmem:[#allocation3] sm:$0xff] %vm344_vm2, %v1309_v0  ;;  %vm405_vm3 = vcmask 64512   ;;  %v1312_v15 = vmov 0  }
   0xe   : > { %1177 = vmatprep.subr.bf16.mxu1 %v1309_v0  ;;  %1179 = vmatprep.mubr.msk.bf16.mxu1 %vm1310_vm0, %v1309_v0  ;;  %345 = vst.msk [vmem:[#allocation2] sm:$0xff] %vm344_vm2, %v1311_v6  ;;  %vm427_vm4 = vcmask 7168   ;;  %vm440_vm5 = vcmask 1043456   ;;  %v1316_v57 = vmov 1   ;;  %v1317_v63 = vmov 2   ;;  %s1136_s8 = sshll.u32 %s1556_s15, 3 }
   0xf   : > { %s1054_s22 = scalar_lea.vmem %s1547_s1, %s1372_s19  ;;  %s304_s25 = scalar_lea.vmem %s1546_s0, %s1372_s19  ;;  %1254 = vset.pattern.permute.xlu0 %v1312_v15  ;;  %1255 = vset.pattern.permute.xlu1 %v1316_v57  ;;  %vm569_vm6 = vcmask 15368   ;;  %vm718_vm7 = vcmask 23568   ;;  %vm867_vm8 = vcmask 31768   ;;  %vm633_vm9 = vcmask 523520  }
  0x10   : > { %v1137_v1 = vld [vmem:[%s1054_s22 + $0x8] sm:$0xff]  ;;  %v349_v4 = vld [vmem:[%s304_s25] sm:$0xff]  ;;  %s1060_s7 = scalar_lea.vmem %s1548_s2, %s1372_s19  ;;  %vm782_vm10 = vcmask 785920   ;;  %vm931_vm11 = vcmask 1048320   ;;  %s338_s11 = scalar_lea.vmem %s1550_s4, %s1136_s8 }
  0x11   : > { %v352_v2 = vpack.c.bf16 %v1137_v1, %v1137_v1  ;;  %v350_v5 = vpack.c.bf16 %v349_v4, %v349_v4  ;;  %v1138_v20 = vld [vmem:[%s1060_s7 + $0x10] sm:$0xff] }
  0x12   : > { %v1416_v21 = vpack.c.bf16 %v1138_v20, %v1138_v20 }
  0x13   : > { %v360_v3 = vsel %vm355_vm1, %v352_v2, 0  ;;  %497 = vrot.lane.b32.xlu1 %v352_v2, %s1313_s28 }
  0x14   : > { %1172 = vmatpush3.bf16.xpose.msra.mxu0 %v360_v3  ;;  %v442_v22 = vsel %vm440_vm5, %v1416_v21, 0 }
  0x15   : > { %1189 = vmatprep.subr.bf16.mxu0 %v1309_v0  ;;  %v1402_v16 = vld [vmem:[#allocation2] sm:$0xff]  ;;  %1178 = vmatpush3.bf16.msra.mxu1 %v442_v22 }
  0x16   : > { %1183 = vmatprep.subr.bf16.mxu1 %v1309_v0 }
  0x17   : > { %494 = vrot.lane.b32.xlu1 %v350_v5, %s1313_s28 }
  0x1b   : > { %1174 = vmatmul.mubr.msk.bf16.vlgmr.msra.gmra.mxu0 %vm355_vm1, %v350_v5  ;;  %646 = vrot.lane.b32.xlu1 %v352_v2, %s1314_s29 }
  0x1c   : > { %1191 = vmatprep.mubr.msk.bf16.mxu0 %vm1310_vm0, %v1309_v0 }
  0x1f   : > { %643 = vrot.lane.b32.xlu1 %v350_v5, %s1314_s29 }
  0x23   : > { %795 = vrot.lane.b32.xlu1 %v352_v2, %s1315_s30 }
  0x27   : > { %792 = vrot.lane.b32.xlu1 %v350_v5, %s1315_s30 }
  0x85   : > { %v498_v26 = vpop.permute.xlu1 %497 }
  0x86   : > { %v503_v29 = vsel %vm355_vm1, %v498_v26, 0 }
  0x89   : > { %v495_v27 = vpop.permute.xlu1 %494 }
  0x8d   : > { %v647_v31 = vpop.permute.xlu1 %646 }
  0x8e   : > { %v652_v33 = vsel %vm355_vm1, %v647_v31, 0 }
  0x91   : > { %v644_v32 = vpop.permute.xlu1 %643 }
  0x95   : > { %v796_v34 = vpop.permute.xlu1 %795 }
  0x96   : > { %v801_v35 = vsel %vm355_vm1, %v796_v34, 0 }
  0x99   : > { %v793_v36 = vpop.permute.xlu1 %792 }
  0xdb   : > { %v396_v7 = vpop.f32.mrf.mxu0 }
  0xdc   : > { %v402_v9 = vmul.f32 0.17677669, %v396_v7  ;;  %v1318_v7 = vmov 3  }
  0xdd   : > { %v1175_v10 = vpop.f32.mrf.mxu0 }
  0xde   : > { %v403_v11 = vadd.f32 %v402_v9, %v1391_v8 }
  0xdf   : > { %v399_v12 = vpop.f32.mrf.mxu0 }
  0xe0   : > { %v406_v13 = vsel %vm405_vm3, %v403_v11, -inf }
  0xe1   : > { %407 = vmax.xlane.f32.xlu0 %v406_v13  ;;  %v1176_v14 = vpop.f32.mrf.mxu0 }
 0x16a   : > { %v408_v17 = vpop.xlane.xlu0 %407 }
 0x16b   : > { %v1405_v18 = vmax.f32 %v1402_v16, %v408_v17 }
 0x16d   : > { %v410_v19 = vsub.f32 %v1402_v16, %v1405_v18  ;;  %486 = vst.msk [vmem:[#allocation2] sm:$0xff] %vm427_vm4, %v1405_v18  ;;  %415 = vperm.xlu0 %1254, %v1405_v18  }
 0x16f   : > { %v411_v1 = vmul.f32 1.442695, %v410_v19 }
 0x171   : > { %1256 = vset.pattern.permute.xlu0 %v1317_v63 }
 0x174   : > { %v547_v3 = vld [vmem:[#allocation2] sm:$0xff] }
 0x1e8   : > { %v416_v23 = vpop.permute.xlu0 %415 }
 0x1e9   : > { %v418_v24 = vsub.f32 %v403_v11, %v416_v23 }
 0x1eb   : > { %v419_v25 = vmul.f32 1.442695, %v418_v24 }
 0x1ed   : > { %1267 = vpow2.f32 %v419_v25 }
 0x1ee   : > { %1269 = vpow2.f32 %v411_v1 }
 0x1fa   : > { %v1421_v28 = vpop.eup %1267 }
 0x1fb   : > { %v436_v30 = vpack.c.bf16 %v1421_v28, %v1421_v28  ;;  %v1467_v11 = vpop.eup %1269  ;;  %v423_v18 = vsel %vm405_vm3, %v1421_v28, 0.0 }
 0x1fd   : > { %1180 = vmatmul.mubr.msk.bf16.vlgmr.msra.gmra.mxu1 %vm405_vm3, %v436_v30 }
 0x1fe   : > { %1184 = vmatpush3.bf16.xpose.msra.mxu1 %v503_v29  ;;  %1185 = vmatprep.mubr.msk.bf16.mxu1 %vm1310_vm0, %v1309_v0 }
 0x1ff   : > { %1195 = vmatprep.subr.bf16.mxu1 %v1309_v0 }
 0x205   : > { %1186 = vmatmul.mubr.msk.bf16.vlgmr.msra.gmra.mxu1 %vm355_vm1, %v495_v27 }
 0x206   : > { %1196 = vmatpush3.bf16.xpose.msra.mxu1 %v652_v33  ;;  %1197 = vmatprep.mubr.msk.bf16.mxu1 %vm1310_vm0, %v1309_v0 }
 0x207   : > { %1207 = vmatprep.subr.bf16.mxu1 %v1309_v0 }
 0x20d   : > { %1198 = vmatmul.mubr.msk.bf16.vlgmr.msra.gmra.mxu1 %vm355_vm1, %v644_v32 }
 0x20e   : > { %1208 = vmatpush3.bf16.xpose.msra.mxu1 %v801_v35  ;;  %1209 = vmatprep.mubr.msk.bf16.mxu1 %vm1310_vm0, %v1309_v0 }
 0x215   : > { %1210 = vmatmul.mubr.msk.bf16.vlgmr.msra.gmra.mxu1 %vm355_vm1, %v793_v36 }
 0x2bd   : > { %v1440_v37 = vpop.f32.mrf.mxu1 }
 0x2bf   : > { %v1181_v38 = vpop.f32.mrf.mxu1 }
 0x2c1   : > { %v481_v39 = vpop.f32.mrf.mxu1 }
 0x2c3   : > { %v1182_v40 = vpop.f32.mrf.mxu1 }
 0x2c5   : > { %v539_v41 = vpop.f32.mrf.mxu1 }
 0x2c6   : > { %v545_v42 = vmul.f32 0.17677669, %v539_v41 }
 0x2c7   : > { %v1187_v43 = vpop.f32.mrf.mxu1 }
 0x2c8   : > { %v1443_v44 = vadd.f32 %v545_v42, %v1391_v8 }
 0x2c9   : > { %v542_v45 = vpop.f32.mrf.mxu1 }
 0x2ca   : > { %v548_v46 = vsel %vm405_vm3, %v1443_v44, -inf }
 0x2cb   : > { %549 = vmax.xlane.f32.xlu1 %v548_v46  ;;  %v1188_v47 = vpop.f32.mrf.mxu1 }
 0x2cd   : > { %v688_v48 = vpop.f32.mrf.mxu1 }
 0x2ce   : > { %v694_v49 = vmul.f32 0.17677669, %v688_v48 }
 0x2cf   : > { %v1199_v50 = vpop.f32.mrf.mxu1 }
 0x2d0   : > { %v1448_v51 = vadd.f32 %v694_v49, %v1391_v8  ;;  %v421_v49 = vld [vmem:[#allocation3] sm:$0xff] }
 0x2d1   : > { %v691_v52 = vpop.f32.mrf.mxu1  ;;  %v422_v50 = vmul.f32 %v1467_v11, %v421_v49 }
 0x2d2   : > { %v697_v53 = vsel %vm405_vm3, %v1448_v51, -inf }
 0x2d3   : > { %698 = vmax.xlane.f32.xlu0 %v697_v53  ;;  %v1200_v54 = vpop.f32.mrf.mxu1 }
 0x2d5   : > { %v837_v55 = vpop.f32.mrf.mxu1 }
 0x2d6   : > { %v843_v56 = vmul.f32 0.17677669, %v837_v55 }
 0x2d7   : > { %v1211_v58 = vpop.f32.mrf.mxu1 }
 0x2d8   : > { %v1454_v59 = vadd.f32 %v843_v56, %v1391_v8 }
 0x2d9   : > { %v840_v60 = vpop.f32.mrf.mxu1 }
 0x2da   : > { %v846_v61 = vsel %vm405_vm3, %v1454_v59, -inf }
 0x2db   : > { %v1212_v62 = vpop.f32.mrf.mxu1  ;;  %847 = vmax.xlane.f32.xlu1 %v846_v61 }
 0x354   : > { %v550_v2 = vpop.xlane.xlu1 %549 }
 0x355   : > { %v551_v4 = vmax.f32 %v547_v3, %v550_v2 }
 0x357   : > { %v552_v5 = vsub.f32 %v547_v3, %v551_v4  ;;  %635 = vst.msk [vmem:[#allocation2] sm:$0xff] %vm569_vm6, %v551_v4  ;;  %557 = vperm.xlu1 %1255, %v551_v4  }
 0x359   : > { %v553_v17 = vmul.f32 1.442695, %v552_v5 }
 0x35b   : > { %580 = vrot.lane.b32.xlu1 %v1416_v21, %s1313_s28  ;;  %1271 = vpow2.f32 %v553_v17 }
 0x35c   : > { %v699_v6 = vpop.xlane.xlu0 %698  ;;  %1257 = vset.pattern.permute.xlu1 %v1318_v7 }
 0x35e   : > { %v696_v8 = vld [vmem:[#allocation2] sm:$0xff] }
 0x35f   : > { %v700_v9 = vmax.f32 %v696_v8, %v699_v6 }
 0x361   : > { %v701_v10 = vsub.f32 %v696_v8, %v700_v9  ;;  %784 = vst.msk [vmem:[#allocation2] sm:$0xff] %vm718_vm7, %v700_v9  ;;  %706 = vperm.xlu0 %1256, %v700_v9  }
 0x363   : > { %v702_v41 = vmul.f32 1.442695, %v701_v10 }
 0x364   : > { %v848_v12 = vpop.xlane.xlu1 %847 }
 0x365   : > { %1258 = vset.pattern.permute.xlu0 %v1312_v15 }
 0x366   : > { %432 = vperm.xlu0 %1258, %v1467_v11  }
 0x368   : > { %v1471_v13 = vld [vmem:[#allocation2] sm:$0xff]  ;;  %v1272_v19 = vpop.eup %1271 }
 0x369   : > { %v1474_v14 = vmax.f32 %v1471_v13, %v848_v12 }
 0x36a   : > { %1261 = vset.pattern.permute.xlu0 %v1318_v7 }
 0x36b   : > { %v850_v16 = vsub.f32 %v1471_v13, %v1474_v14  ;;  %933 = vst.msk [vmem:[#allocation2] sm:$0xff] %vm867_vm8, %v1474_v14  ;;  %855 = vperm.xlu1 %1257, %v1474_v14  }
 0x36d   : > { %v851_v56 = vmul.f32 1.442695, %v850_v16 }
 0x36f   : > { %729 = vrot.lane.b32.xlu1 %v1416_v21, %s1314_s29 }
 0x370   : > { %1259 = vset.pattern.permute.xlu1 %v1316_v57 }
 0x373   : > { %878 = vrot.lane.b32.xlu1 %v1416_v21, %s1315_s30 }
 0x397   : > { %424 = vadd.xlane.f32.xlu1 %v423_v18 }
 0x3a8   : > { %574 = vperm.xlu1 %1259, %v1272_v19  }
 0x3ac   : > { %1260 = vset.pattern.permute.xlu1 %v1317_v63 }
 0x3d2   : > { %v558_v20 = vpop.permute.xlu1 %557 }
 0x3d3   : > { %v560_v22 = vsub.f32 %v1443_v44, %v558_v20 }
 0x3d5   : > { %v561_v23 = vmul.f32 1.442695, %v560_v22 }
 0x3d6   : > { %v581_v24 = vpop.permute.xlu1 %580 }
 0x3d7   : > { %1273 = vpow2.f32 %v561_v23  ;;  %v586_v25 = vsel %vm440_vm5, %v581_v24, 0 }
 0x3d8   : > { %1190 = vmatpush3.bf16.msra.mxu0 %v586_v25 }
 0x3d9   : > { %1201 = vmatprep.subr.bf16.mxu0 %v1309_v0 }
 0x3dc   : > { %v707_v21 = vpop.permute.xlu0 %706 }
 0x3dd   : > { %v709_v26 = vsub.f32 %v1448_v51, %v707_v21 }
 0x3df   : > { %v710_v27 = vmul.f32 1.442695, %v709_v26 }
 0x3e1   : > { %1275 = vpow2.f32 %v710_v27  ;;  %v433_v28 = vpop.permute.xlu0 %432 }
 0x3e2   : > { %v435_v29 = vmul.f32 0.0, %v433_v28 }
 0x3e4   : > { %v1274_v30 = vpop.eup %1273  ;;  %v484_v31 = vadd.f32 %v1440_v37, %v435_v29 }
 0x3e5   : > { %v565_v32 = vsel %vm405_vm3, %v1274_v30, 0.0  ;;  %v578_v33 = vpack.c.bf16 %v1274_v30, %v1274_v30 }
 0x3e6   : > { %485 = vst.msk [vmem:[#allocation4] sm:$0xff] %vm355_vm1, %v484_v31  ;;  %v856_v34 = vpop.permute.xlu1 %855  ;;  %566 = vadd.xlane.f32.xlu0 %v565_v32 }
 0x3e7   : > { %v858_v35 = vsub.f32 %v1454_v59, %v856_v34  ;;  %1192 = vmatmul.mubr.msk.bf16.vlgmr.msra.gmra.mxu0 %vm405_vm3, %v578_v33 }
 0x3e8   : > { %1203 = vmatprep.mubr.msk.bf16.mxu0 %vm1310_vm0, %v1309_v0 }
 0x3e9   : > { %v859_v36 = vmul.f32 1.442695, %v858_v35 }
 0x3ea   : > { %v730_v38 = vpop.permute.xlu1 %729 }
 0x3eb   : > { %1277 = vpow2.f32 %v859_v36  ;;  %v735_v39 = vsel %vm440_vm5, %v730_v38, 0 }
 0x3ec   : > { %1202 = vmatpush3.bf16.msra.mxu0 %v735_v39  ;;  %1279 = vpow2.f32 %v702_v41 }
 0x3ed   : > { %1213 = vmatprep.subr.bf16.mxu0 %v1309_v0  ;;  %1281 = vpow2.f32 %v851_v56  ;;  %v571_v20 = vld [vmem:[#allocation4] sm:$0xff] }
 0x3ee   : > { %v1276_v37 = vpop.eup %1275  ;;  %v879_v40 = vpop.permute.xlu1 %878 }
 0x3ef   : > { %v714_v42 = vsel %vm405_vm3, %v1276_v37, 0.0  ;;  %v727_v43 = vpack.c.bf16 %v1276_v37, %v1276_v37  ;;  %v884_v44 = vsel %vm440_vm5, %v879_v40, 0 }
 0x3f0   : > { %715 = vadd.xlane.f32.xlu1 %v714_v42 }
 0x3f1   : > { %1204 = vmatmul.mubr.msk.bf16.vlgmr.msra.gmra.mxu0 %vm405_vm3, %v727_v43 }
 0x3f2   : > { %1214 = vmatpush3.bf16.msra.mxu0 %v884_v44  ;;  %1215 = vmatprep.mubr.msk.bf16.mxu0 %vm1310_vm0, %v1309_v0 }
 0x3f8   : > { %v1278_v45 = vpop.eup %1277 }
 0x3f9   : > { %v863_v46 = vsel %vm405_vm3, %v1278_v45, 0.0  ;;  %v876_v47 = vpack.c.bf16 %v1278_v45, %v1278_v45  ;;  %v1280_v48 = vpop.eup %1279 }
 0x3fa   : > { %864 = vadd.xlane.f32.xlu0 %v863_v46  ;;  %v1282_v62 = vpop.eup %1281 }
 0x3fb   : > { %1216 = vmatmul.mubr.msk.bf16.vlgmr.msra.gmra.mxu0 %vm405_vm3, %v876_v47 }
 0x401   : > { %723 = vperm.xlu1 %1260, %v1280_v48  }
 0x405   : > { %1262 = vset.pattern.permute.xlu1 %v1312_v15 }
 0x420   : > { %v425_v51 = vpop.xlane.xlu1 %424 }
 0x421   : > { %v426_v52 = vadd.f32 %v425_v51, %v422_v50 }
 0x423   : > { %428 = vst.msk [vmem:[#allocation3] sm:$0xff] %vm427_vm4, %v426_v52 }
 0x424   : > { %v575_v58 = vpop.permute.xlu1 %574 }
 0x425   : > { %v577_v22 = vmul.f32 %v575_v58, %v571_v20 }
 0x42a   : > { %v563_v0 = vld [vmem:[#allocation3] sm:$0xff] }
 0x42b   : > { %v564_v53 = vmul.f32 %v1272_v19, %v563_v0 }
 0x46f   : > { %v567_v54 = vpop.xlane.xlu0 %566 }
 0x470   : > { %v568_v55 = vadd.f32 %v567_v54, %v564_v53 }
 0x472   : > { %570 = vst.msk [vmem:[#allocation3] sm:$0xff] %vm569_vm6, %v568_v55 }
 0x479   : > { %v712_v15 = vld [vmem:[#allocation3] sm:$0xff]  ;;  %v716_v60 = vpop.xlane.xlu1 %715 }
 0x47a   : > { %v713_v59 = vmul.f32 %v1280_v48, %v712_v15 }
 0x47c   : > { %v717_v61 = vadd.f32 %v716_v60, %v713_v59 }
 0x47d   : > { %v724_v25 = vpop.permute.xlu1 %723 }
 0x47e   : > { %719 = vst.msk [vmem:[#allocation3] sm:$0xff] %vm718_vm7, %v717_v61 }
 0x483   : > { %v865_v3 = vpop.xlane.xlu0 %864 }
 0x485   : > { %v861_v1 = vld [vmem:[#allocation3] sm:$0xff] }
 0x486   : > { %v862_v2 = vmul.f32 %v1282_v62, %v861_v1 }
 0x488   : > { %v866_v4 = vadd.f32 %v865_v3, %v862_v2 }
 0x48a   : > { %868 = vst.msk [vmem:[#allocation3] sm:$0xff] %vm867_vm8, %v866_v4 }
 0x491   : > { %v937_v5 = vld [vmem:[#allocation3] sm:$0xff] }
 0x492   : > { %1283 = vrcp.f32 %v937_v5 }
 0x49f   : > { %v1284_v6 = vpop.eup %1283 }
 0x4a0   : > { %942 = vperm.xlu1 %1262, %v1284_v6  }
 0x4a4   : > { %1264 = vset.pattern.permute.xlu1 %v1317_v63 }
 0x4a5   : > { %962 = vperm.xlu1 %1264, %v1284_v6  }
 0x4a7   : > { %v622_v8 = vpop.f32.mrf.mxu0 }
 0x4a8   : > { %629 = vrot.lane.b32.xlu0 %v622_v8, %s1315_s30 }
 0x4a9   : > { %1265 = vset.pattern.permute.xlu1 %v1318_v7  ;;  %v1193_v9 = vpop.f32.mrf.mxu0 }
 0x4aa   : > { %972 = vperm.xlu1 %1265, %v1284_v6  }
 0x4ab   : > { %v625_v10 = vpop.f32.mrf.mxu0 }
 0x4ad   : > { %v1194_v11 = vpop.f32.mrf.mxu0 }
 0x4b1   : > { %v771_v12 = vpop.f32.mrf.mxu0 }
 0x4b2   : > { %778 = vrot.lane.b32.xlu0 %v771_v12, %s1314_s29 }
 0x4b3   : > { %v1205_v13 = vpop.f32.mrf.mxu0 }
 0x4b5   : > { %v774_v14 = vpop.f32.mrf.mxu0 }
 0x4b6   : > { %872 = vperm.xlu0 %1261, %v1282_v62  }
 0x4b7   : > { %v1206_v16 = vpop.f32.mrf.mxu0 }
 0x4ba   : > { %1263 = vset.pattern.permute.xlu0 %v1316_v57 }
 0x4bb   : > { %v920_v63 = vpop.f32.mrf.mxu0 }
 0x4bc   : > { %927 = vrot.lane.b32.xlu0 %v920_v63, %s1313_s28 }
 0x4bd   : > { %v1217_v17 = vpop.f32.mrf.mxu0 }
 0x4bf   : > { %v923_v18 = vpop.f32.mrf.mxu0 }
 0x4c0   : > { %952 = vperm.xlu0 %1263, %v1284_v6  }
 0x4c1   : > { %v1218_v19 = vpop.f32.mrf.mxu0 }
 0x4c4   : > { %1266 = vset.pattern.permute.xlu0 %v1318_v7 }
 0x51a   : > { %v630_v23 = vpop.permute.xlu0 %629 }
 0x51b   : > { %v632_v24 = vadd.f32 %v630_v23, %v577_v22  ;;  %v943_v31 = vpop.permute.xlu1 %942 }
 0x51d   : > { %634 = vst.msk [vmem:[#allocation4] sm:$0xff] %vm633_vm9, %v632_v24 }
 0x520   : > { %v963_v33 = vpop.permute.xlu1 %962 }
 0x524   : > { %v720_v21 = vld [vmem:[#allocation4] sm:$0xff]  ;;  %v779_v26 = vpop.permute.xlu0 %778 }
 0x525   : > { %v726_v57 = vmul.f32 %v724_v25, %v720_v21  ;;  %v973_v39 = vpop.permute.xlu1 %972 }
 0x527   : > { %v781_v27 = vadd.f32 %v779_v26, %v726_v57 }
 0x529   : > { %783 = vst.msk [vmem:[#allocation4] sm:$0xff] %vm782_vm10, %v781_v27 }
 0x530   : > { %v869_v28 = vld [vmem:[#allocation4] sm:$0xff] }
 0x531   : > { %v873_v29 = vpop.permute.xlu0 %872 }
 0x532   : > { %v875_v30 = vmul.f32 %v873_v29, %v869_v28 }
 0x535   : > { %v928_v7 = vpop.permute.xlu0 %927 }
 0x536   : > { %v930_v32 = vadd.f32 %v928_v7, %v875_v30 }
 0x538   : > { %932 = vst.msk [vmem:[#allocation4] sm:$0xff] %vm931_vm11, %v930_v32 }
 0x53b   : > { %v953_v35 = vpop.permute.xlu0 %952 }
 0x53f   : > { %v939_v34 = vld [vmem:[#allocation4] sm:$0xff] }
 0x540   : > { %v945_v36 = vmul.f32 %v943_v31, %v939_v34  ;;  %v955_v38 = vmul.f32 %v953_v35, %v939_v34  ;;  %v965_v37 = vmul.f32 %v963_v33, %v939_v34  ;;  %v975_v40 = vmul.f32 %v973_v39, %v939_v34 }
 0x542   : > { %946 = vst.msk [vmem:[%s338_s11] sm:$0xff] %vm355_vm1, %v945_v36 }
 0x543   : > { %956 = vst.msk [vmem:[%s338_s11] sm:$0xff] %vm633_vm9, %v955_v38 }
 0x544   : > { %966 = vst.msk [vmem:[%s338_s11] sm:$0xff] %vm782_vm10, %v965_v37 }
 0x545   : > { %976 = vst.msk [vmem:[%s338_s11] sm:$0xff] %vm931_vm11, %v975_v40 }
 0x546 PF: > { %s14_s17 = sadd.s32 1, %s1307_s17   ;;  %s1551_s15 = smov %s1303_s16 }
 0x547   : > { %p11_p5 = scmp.ge.s32.totalorder %s14_s17, 4   ;;  %s1552_s16 = smov %s1554_s18 }
 0x549   :  { %13 = sbr.rel (!%p11_p5) target bundleno = 2 (0x2), region = 83 }

// kernel: transformer_forward.38
= control target key start
LH: loop header
LB: loop body
LE: loop exit
PB: predicated region body
PF: predicated region fallthrough
CT: control target
= control target key end

     0   :  { %s1321_s15 = smov 0   ;;  %s1323_s16 = smov 0   ;;  %s1527_s0 = inlined_call_operand.vmem [shape: f32[2,8,128], index: 0, kind: input, shape index: {}]   ;;  %s1528_s1 = inlined_call_operand.vmem [shape: f32[2,8,256], index: 1, kind: input, shape index: {}, may-alias: {1,2}]   ;;  %s1529_s2 = inlined_call_operand.vmem [shape: f32[2,8,256], index: 2, kind: input, shape index: {}, may-alias: {1,2}]   ;;  %s1530_s3 = inlined_call_operand.vmem [shape: f32[2,1,8], index: 3, kind: input, shape index: {}]   ;;  %s1531_s4 = inlined_call_operand.vmem [shape: f32[2,8,128], index: 4, kind: output, shape index: {}]  }
   0x1   :  { %s1325_s17 = smov 0  }
   0x2 LB: > { %s33_s18 = sadd.s32 1, %s1280_s16  ;;  %p1109_p0 = scmp.ge.s32.totalorder %s1284_s17, 1  ;;  %s1284_s17 = sphi %s1325_s17, %s14_s17   ;;  %s1280_s16 = sphi %s1323_s16, %s1533_s16   ;;  %s1276_s15 = sphi %s1321_s15, %s1532_s15  }
   0x3   : > { %p35_p1 = scmp.ge.s32.totalorder %s33_s18, 2  ;;  %p233_p2 = scmp.lt.s32.totalorder %s1284_s17, 3 }
   0x5   : > { %s1535_s18 = smov (%p35_p1, %s33_s18), 0  ;;  %p234_p3 = pnand %p1109_p0, %p233_p2 }
   0x6   : > { %p288_p4 = scmp.lt.s32.totalorder (!%p234_p3), %s1276_s15, 1  ;;  %s1290_s30 = smov (!%p234_p3), 96  }
   0x7   : > { %237 = sbr.rel (%p234_p3) target bundleno = 1349 (0x545), region = 36  ;;  %s1291_s5 = smov (!%p234_p3), 64  }
   0x8   : > { %s1292_s6 = smov (!%p234_p3), 32  }
   0xc   : > { %v1286_v0 = vmov 0.0   ;;  %vm1287_vm0 = vmmov 0   ;;  %s1537_s15 = smov (!%p288_p4, %s1276_s15), 1  ;;  %vm343_vm1 = vcmask 261120   ;;  %vm332_vm2 = vcmask 31744  }
   0xd   : > { %1149 = vmatprep.subr.bf16.mxu0 %v1286_v0  ;;  %335 = vst [vmem:[#allocation4] sm:$0xff] %v1286_v0  ;;  %1151 = vmatprep.mubr.msk.bf16.mxu0 %vm1287_vm0, %v1286_v0  ;;  %s1131_s19 = sshll.u32 %s1537_s15, 4  ;;  %s1110_s20 = sshll.u32 %s1537_s15, 3  ;;  %v1288_v6 = vmov -inf   ;;  %334 = vst.msk [vmem:[#allocation3] sm:$0xff] %vm332_vm2, %v1286_v0  ;;  %vm399_vm3 = vcmask 64512  }
   0xe   : > { %1155 = vmatprep.subr.bf16.mxu1 %v1286_v0  ;;  %1157 = vmatprep.mubr.msk.bf16.mxu1 %vm1287_vm0, %v1286_v0  ;;  %s303_s23 = scalar_lea.vmem %s1528_s1, %s1131_s19  ;;  %s294_s26 = scalar_lea.vmem %s1527_s0, %s1110_s20  ;;  %333 = vst.msk [vmem:[#allocation2] sm:$0xff] %vm332_vm2, %v1288_v6  ;;  %v1289_v15 = vmov 0   ;;  %vm421_vm4 = vcmask 7168   ;;  %vm434_vm5 = vcmask 1043456   ;;  %v1293_v57 = vmov 1  }
   0xf   : > { %v339_v1 = vld [vmem:[%s303_s23] sm:$0xff]  ;;  %s319_s29 = scalar_lea.vmem %s1530_s3, %s1537_s15  ;;  %1231 = vset.pattern.permute.xlu0 %v1289_v15  ;;  %s1043_s9 = scalar_lea.vmem %s1529_s2, %s1131_s19  ;;  %1232 = vset.pattern.permute.xlu1 %v1293_v57  ;;  %v1294_v63 = vmov 2   ;;  %vm563_vm6 = vcmask 15368   ;;  %vm712_vm7 = vcmask 23568   ;;  %vm861_vm8 = vcmask 31768  }
  0x10   : > { %v340_v2 = vpack.c.bf16 %v339_v1, %v339_v1  ;;  %v337_v4 = vld [vmem:[%s294_s26] sm:$0xff]  ;;  %v1116_v20 = vld [vmem:[%s1043_s9 + $0x8] sm:$0xff]  ;;  %vm627_vm9 = vcmask 523520   ;;  %vm776_vm10 = vcmask 785920   ;;  %vm925_vm11 = vcmask 1048320   ;;  %s326_s12 = scalar_lea.vmem %s1531_s4, %s1110_s20 }
  0x11   : > { %v338_v5 = vpack.c.bf16 %v337_v4, %v337_v4  ;;  %v1370_v8 = vld [vmem:[%s319_s29] ss:$0 sm:$0xff]  ;;  %v1396_v21 = vpack.c.bf16 %v1116_v20, %v1116_v20 }
  0x12   : > { %v348_v3 = vsel %vm343_vm1, %v340_v2, 0  ;;  %491 = vrot.lane.b32.xlu1 %v340_v2, %s1290_s30 }
  0x13   : > { %1150 = vmatpush3.bf16.xpose.msra.mxu0 %v348_v3  ;;  %v436_v22 = vsel %vm434_vm5, %v1396_v21, 0 }
  0x14   : > { %1167 = vmatprep.subr.bf16.mxu0 %v1286_v0  ;;  %1156 = vmatpush3.bf16.msra.mxu1 %v436_v22 }
  0x15   : > { %v1381_v16 = vld [vmem:[#allocation2] sm:$0xff]  ;;  %1161 = vmatprep.subr.bf16.mxu1 %v1286_v0 }
  0x16   : > { %488 = vrot.lane.b32.xlu1 %v338_v5, %s1290_s30 }
  0x1a   : > { %1152 = vmatmul.mubr.msk.bf16.vlgmr.msra.gmra.mxu0 %vm343_vm1, %v338_v5  ;;  %640 = vrot.lane.b32.xlu1 %v340_v2, %s1291_s5 }
  0x1b   : > { %1169 = vmatprep.mubr.msk.bf16.mxu0 %vm1287_vm0, %v1286_v0 }
  0x1e   : > { %637 = vrot.lane.b32.xlu1 %v338_v5, %s1291_s5 }
  0x22   : > { %789 = vrot.lane.b32.xlu1 %v340_v2, %s1292_s6 }
  0x26   : > { %786 = vrot.lane.b32.xlu1 %v338_v5, %s1292_s6 }
  0x84   : > { %v492_v26 = vpop.permute.xlu1 %491 }
  0x85   : > { %v497_v29 = vsel %vm343_vm1, %v492_v26, 0 }
  0x88   : > { %v489_v27 = vpop.permute.xlu1 %488 }
  0x8c   : > { %v641_v31 = vpop.permute.xlu1 %640 }
  0x8d   : > { %v646_v33 = vsel %vm343_vm1, %v641_v31, 0 }
  0x90   : > { %v638_v32 = vpop.permute.xlu1 %637 }
  0x94   : > { %v790_v34 = vpop.permute.xlu1 %789 }
  0x95   : > { %v795_v35 = vsel %vm343_vm1, %v790_v34, 0 }
  0x98   : > { %v787_v36 = vpop.permute.xlu1 %786 }
  0xda   : > { %v384_v7 = vpop.f32.mrf.mxu0 }
  0xdb   : > { %v390_v9 = vmul.f32 0.17677669, %v384_v7  ;;  %v1295_v7 = vmov 3  }
  0xdc   : > { %v1153_v10 = vpop.f32.mrf.mxu0 }
  0xdd   : > { %v397_v11 = vadd.f32 %v1370_v8, %v390_v9 }
  0xde   : > { %v387_v12 = vpop.f32.mrf.mxu0 }
  0xdf   : > { %v400_v13 = vsel %vm399_vm3, %v397_v11, -inf }
  0xe0   : > { %401 = vmax.xlane.f32.xlu0 %v400_v13  ;;  %v1154_v14 = vpop.f32.mrf.mxu0 }
 0x169   : > { %v402_v17 = vpop.xlane.xlu0 %401 }
 0x16a   : > { %v1384_v18 = vmax.f32 %v1381_v16, %v402_v17 }
 0x16c   : > { %v404_v19 = vsub.f32 %v1381_v16, %v1384_v18  ;;  %480 = vst.msk [vmem:[#allocation2] sm:$0xff] %vm421_vm4, %v1384_v18  ;;  %409 = vperm.xlu0 %1231, %v1384_v18  }
 0x16e   : > { %v405_v1 = vmul.f32 1.442695, %v404_v19 }
 0x170   : > { %1233 = vset.pattern.permute.xlu0 %v1294_v63 }
 0x173   : > { %v541_v3 = vld [vmem:[#allocation2] sm:$0xff] }
 0x1e7   : > { %v410_v23 = vpop.permute.xlu0 %409 }
 0x1e8   : > { %v412_v24 = vsub.f32 %v397_v11, %v410_v23 }
 0x1ea   : > { %v413_v25 = vmul.f32 1.442695, %v412_v24 }
 0x1ec   : > { %1244 = vpow2.f32 %v413_v25 }
 0x1ed   : > { %1246 = vpow2.f32 %v405_v1 }
 0x1f9   : > { %v1401_v28 = vpop.eup %1244 }
 0x1fa   : > { %v430_v30 = vpack.c.bf16 %v1401_v28, %v1401_v28  ;;  %v1447_v11 = vpop.eup %1246  ;;  %v417_v18 = vsel %vm399_vm3, %v1401_v28, 0.0 }
 0x1fc   : > { %1158 = vmatmul.mubr.msk.bf16.vlgmr.msra.gmra.mxu1 %vm399_vm3, %v430_v30 }
 0x1fd   : > { %1162 = vmatpush3.bf16.xpose.msra.mxu1 %v497_v29  ;;  %1163 = vmatprep.mubr.msk.bf16.mxu1 %vm1287_vm0, %v1286_v0 }
 0x1fe   : > { %1173 = vmatprep.subr.bf16.mxu1 %v1286_v0 }
 0x204   : > { %1164 = vmatmul.mubr.msk.bf16.vlgmr.msra.gmra.mxu1 %vm343_vm1, %v489_v27 }
 0x205   : > { %1174 = vmatpush3.bf16.xpose.msra.mxu1 %v646_v33  ;;  %1175 = vmatprep.mubr.msk.bf16.mxu1 %vm1287_vm0, %v1286_v0 }
 0x206   : > { %1185 = vmatprep.subr.bf16.mxu1 %v1286_v0 }
 0x20c   : > { %1176 = vmatmul.mubr.msk.bf16.vlgmr.msra.gmra.mxu1 %vm343_vm1, %v638_v32 }
 0x20d   : > { %1186 = vmatpush3.bf16.xpose.msra.mxu1 %v795_v35  ;;  %1187 = vmatprep.mubr.msk.bf16.mxu1 %vm1287_vm0, %v1286_v0 }
 0x214   : > { %1188 = vmatmul.mubr.msk.bf16.vlgmr.msra.gmra.mxu1 %vm343_vm1, %v787_v36 }
 0x2bc   : > { %v1420_v37 = vpop.f32.mrf.mxu1 }
 0x2be   : > { %v1159_v38 = vpop.f32.mrf.mxu1 }
 0x2c0   : > { %v475_v39 = vpop.f32.mrf.mxu1 }
 0x2c2   : > { %v1160_v40 = vpop.f32.mrf.mxu1 }
 0x2c4   : > { %v533_v41 = vpop.f32.mrf.mxu1 }
 0x2c5   : > { %v539_v42 = vmul.f32 0.17677669, %v533_v41 }
 0x2c6   : > { %v1165_v43 = vpop.f32.mrf.mxu1 }
 0x2c7   : > { %v1423_v44 = vadd.f32 %v1370_v8, %v539_v42 }
 0x2c8   : > { %v536_v45 = vpop.f32.mrf.mxu1 }
 0x2c9   : > { %v542_v46 = vsel %vm399_vm3, %v1423_v44, -inf }
 0x2ca   : > { %543 = vmax.xlane.f32.xlu1 %v542_v46  ;;  %v1166_v47 = vpop.f32.mrf.mxu1 }
 0x2cc   : > { %v682_v48 = vpop.f32.mrf.mxu1 }
 0x2cd   : > { %v688_v49 = vmul.f32 0.17677669, %v682_v48 }
 0x2ce   : > { %v1177_v50 = vpop.f32.mrf.mxu1 }
 0x2cf   : > { %v1428_v51 = vadd.f32 %v1370_v8, %v688_v49  ;;  %v415_v49 = vld [vmem:[#allocation3] sm:$0xff] }
 0x2d0   : > { %v685_v52 = vpop.f32.mrf.mxu1  ;;  %v416_v50 = vmul.f32 %v1447_v11, %v415_v49 }
 0x2d1   : > { %v691_v53 = vsel %vm399_vm3, %v1428_v51, -inf }
 0x2d2   : > { %692 = vmax.xlane.f32.xlu0 %v691_v53  ;;  %v1178_v54 = vpop.f32.mrf.mxu1 }
 0x2d4   : > { %v831_v55 = vpop.f32.mrf.mxu1 }
 0x2d5   : > { %v837_v56 = vmul.f32 0.17677669, %v831_v55 }
 0x2d6   : > { %v1189_v58 = vpop.f32.mrf.mxu1 }
 0x2d7   : > { %v1434_v59 = vadd.f32 %v1370_v8, %v837_v56 }
 0x2d8   : > { %v834_v60 = vpop.f32.mrf.mxu1 }
 0x2d9   : > { %v840_v61 = vsel %vm399_vm3, %v1434_v59, -inf }
 0x2da   : > { %v1190_v62 = vpop.f32.mrf.mxu1  ;;  %841 = vmax.xlane.f32.xlu1 %v840_v61 }
 0x353   : > { %v544_v2 = vpop.xlane.xlu1 %543 }
 0x354   : > { %v545_v4 = vmax.f32 %v541_v3, %v544_v2 }
 0x356   : > { %v546_v5 = vsub.f32 %v541_v3, %v545_v4  ;;  %629 = vst.msk [vmem:[#allocation2] sm:$0xff] %vm563_vm6, %v545_v4  ;;  %551 = vperm.xlu1 %1232, %v545_v4  }
 0x358   : > { %v547_v17 = vmul.f32 1.442695, %v546_v5 }
 0x35a   : > { %574 = vrot.lane.b32.xlu1 %v1396_v21, %s1290_s30  ;;  %1248 = vpow2.f32 %v547_v17 }
 0x35b   : > { %v693_v6 = vpop.xlane.xlu0 %692  ;;  %1234 = vset.pattern.permute.xlu1 %v1295_v7 }
 0x35d   : > { %v690_v8 = vld [vmem:[#allocation2] sm:$0xff] }
 0x35e   : > { %v694_v9 = vmax.f32 %v690_v8, %v693_v6 }
 0x360   : > { %v695_v10 = vsub.f32 %v690_v8, %v694_v9  ;;  %778 = vst.msk [vmem:[#allocation2] sm:$0xff] %vm712_vm7, %v694_v9  ;;  %700 = vperm.xlu0 %1233, %v694_v9  }
 0x362   : > { %v696_v41 = vmul.f32 1.442695, %v695_v10 }
 0x363   : > { %v842_v12 = vpop.xlane.xlu1 %841 }
 0x364   : > { %1235 = vset.pattern.permute.xlu0 %v1289_v15 }
 0x365   : > { %426 = vperm.xlu0 %1235, %v1447_v11  }
 0x367   : > { %v1451_v13 = vld [vmem:[#allocation2] sm:$0xff]  ;;  %v1249_v19 = vpop.eup %1248 }
 0x368   : > { %v1454_v14 = vmax.f32 %v1451_v13, %v842_v12 }
 0x369   : > { %1238 = vset.pattern.permute.xlu0 %v1295_v7 }
 0x36a   : > { %v844_v16 = vsub.f32 %v1451_v13, %v1454_v14  ;;  %927 = vst.msk [vmem:[#allocation2] sm:$0xff] %vm861_vm8, %v1454_v14  ;;  %849 = vperm.xlu1 %1234, %v1454_v14  }
 0x36c   : > { %v845_v56 = vmul.f32 1.442695, %v844_v16 }
 0x36e   : > { %723 = vrot.lane.b32.xlu1 %v1396_v21, %s1291_s5 }
 0x36f   : > { %1236 = vset.pattern.permute.xlu1 %v1293_v57 }
 0x372   : > { %872 = vrot.lane.b32.xlu1 %v1396_v21, %s1292_s6 }
 0x396   : > { %418 = vadd.xlane.f32.xlu1 %v417_v18 }
 0x3a7   : > { %568 = vperm.xlu1 %1236, %v1249_v19  }
 0x3ab   : > { %1237 = vset.pattern.permute.xlu1 %v1294_v63 }
 0x3d1   : > { %v552_v20 = vpop.permute.xlu1 %551 }
 0x3d2   : > { %v554_v22 = vsub.f32 %v1423_v44, %v552_v20 }
 0x3d4   : > { %v555_v23 = vmul.f32 1.442695, %v554_v22 }
 0x3d5   : > { %v575_v24 = vpop.permute.xlu1 %574 }
 0x3d6   : > { %1250 = vpow2.f32 %v555_v23  ;;  %v580_v25 = vsel %vm434_vm5, %v575_v24, 0 }
 0x3d7   : > { %1168 = vmatpush3.bf16.msra.mxu0 %v580_v25 }
 0x3d8   : > { %1179 = vmatprep.subr.bf16.mxu0 %v1286_v0 }
 0x3db   : > { %v701_v21 = vpop.permute.xlu0 %700 }
 0x3dc   : > { %v703_v26 = vsub.f32 %v1428_v51, %v701_v21 }
 0x3de   : > { %v704_v27 = vmul.f32 1.442695, %v703_v26 }
 0x3e0   : > { %1252 = vpow2.f32 %v704_v27  ;;  %v427_v28 = vpop.permute.xlu0 %426 }
 0x3e1   : > { %v429_v29 = vmul.f32 0.0, %v427_v28 }
 0x3e3   : > { %v1251_v30 = vpop.eup %1250  ;;  %v478_v31 = vadd.f32 %v1420_v37, %v429_v29 }
 0x3e4   : > { %v559_v32 = vsel %vm399_vm3, %v1251_v30, 0.0  ;;  %v572_v33 = vpack.c.bf16 %v1251_v30, %v1251_v30 }
 0x3e5   : > { %479 = vst.msk [vmem:[#allocation4] sm:$0xff] %vm343_vm1, %v478_v31  ;;  %v850_v34 = vpop.permute.xlu1 %849  ;;  %560 = vadd.xlane.f32.xlu0 %v559_v32 }
 0x3e6   : > { %v852_v35 = vsub.f32 %v1434_v59, %v850_v34  ;;  %1170 = vmatmul.mubr.msk.bf16.vlgmr.msra.gmra.mxu0 %vm399_vm3, %v572_v33 }
 0x3e7   : > { %1181 = vmatprep.mubr.msk.bf16.mxu0 %vm1287_vm0, %v1286_v0 }
 0x3e8   : > { %v853_v36 = vmul.f32 1.442695, %v852_v35 }
 0x3e9   : > { %v724_v38 = vpop.permute.xlu1 %723 }
 0x3ea   : > { %1254 = vpow2.f32 %v853_v36  ;;  %v729_v39 = vsel %vm434_vm5, %v724_v38, 0 }
 0x3eb   : > { %1180 = vmatpush3.bf16.msra.mxu0 %v729_v39  ;;  %1256 = vpow2.f32 %v696_v41 }
 0x3ec   : > { %1191 = vmatprep.subr.bf16.mxu0 %v1286_v0  ;;  %1258 = vpow2.f32 %v845_v56  ;;  %v565_v20 = vld [vmem:[#allocation4] sm:$0xff] }
 0x3ed   : > { %v1253_v37 = vpop.eup %1252  ;;  %v873_v40 = vpop.permute.xlu1 %872 }
 0x3ee   : > { %v708_v42 = vsel %vm399_vm3, %v1253_v37, 0.0  ;;  %v721_v43 = vpack.c.bf16 %v1253_v37, %v1253_v37  ;;  %v878_v44 = vsel %vm434_vm5, %v873_v40, 0 }
 0x3ef   : > { %709 = vadd.xlane.f32.xlu1 %v708_v42 }
 0x3f0   : > { %1182 = vmatmul.mubr.msk.bf16.vlgmr.msra.gmra.mxu0 %vm399_vm3, %v721_v43 }
 0x3f1   : > { %1192 = vmatpush3.bf16.msra.mxu0 %v878_v44  ;;  %1193 = vmatprep.mubr.msk.bf16.mxu0 %vm1287_vm0, %v1286_v0 }
 0x3f7   : > { %v1255_v45 = vpop.eup %1254 }
 0x3f8   : > { %v857_v46 = vsel %vm399_vm3, %v1255_v45, 0.0  ;;  %v870_v47 = vpack.c.bf16 %v1255_v45, %v1255_v45  ;;  %v1257_v48 = vpop.eup %1256 }
 0x3f9   : > { %858 = vadd.xlane.f32.xlu0 %v857_v46  ;;  %v1259_v62 = vpop.eup %1258 }
 0x3fa   : > { %1194 = vmatmul.mubr.msk.bf16.vlgmr.msra.gmra.mxu0 %vm399_vm3, %v870_v47 }
 0x400   : > { %717 = vperm.xlu1 %1237, %v1257_v48  }
 0x404   : > { %1239 = vset.pattern.permute.xlu1 %v1289_v15 }
 0x41f   : > { %v419_v51 = vpop.xlane.xlu1 %418 }
 0x420   : > { %v420_v52 = vadd.f32 %v419_v51, %v416_v50 }
 0x422   : > { %422 = vst.msk [vmem:[#allocation3] sm:$0xff] %vm421_vm4, %v420_v52 }
 0x423   : > { %v569_v58 = vpop.permute.xlu1 %568 }
 0x424   : > { %v571_v22 = vmul.f32 %v569_v58, %v565_v20 }
 0x429   : > { %v557_v0 = vld [vmem:[#allocation3] sm:$0xff] }
 0x42a   : > { %v558_v53 = vmul.f32 %v1249_v19, %v557_v0 }
 0x46e   : > { %v561_v54 = vpop.xlane.xlu0 %560 }
 0x46f   : > { %v562_v55 = vadd.f32 %v561_v54, %v558_v53 }
 0x471   : > { %564 = vst.msk [vmem:[#allocation3] sm:$0xff] %vm563_vm6, %v562_v55 }
 0x478   : > { %v706_v15 = vld [vmem:[#allocation3] sm:$0xff]  ;;  %v710_v60 = vpop.xlane.xlu1 %709 }
 0x479   : > { %v707_v59 = vmul.f32 %v1257_v48, %v706_v15 }
 0x47b   : > { %v711_v61 = vadd.f32 %v710_v60, %v707_v59 }
 0x47c   : > { %v718_v25 = vpop.permute.xlu1 %717 }
 0x47d   : > { %713 = vst.msk [vmem:[#allocation3] sm:$0xff] %vm712_vm7, %v711_v61 }
 0x482   : > { %v859_v3 = vpop.xlane.xlu0 %858 }
 0x484   : > { %v855_v1 = vld [vmem:[#allocation3] sm:$0xff] }
 0x485   : > { %v856_v2 = vmul.f32 %v1259_v62, %v855_v1 }
 0x487   : > { %v860_v4 = vadd.f32 %v859_v3, %v856_v2 }
 0x489   : > { %862 = vst.msk [vmem:[#allocation3] sm:$0xff] %vm861_vm8, %v860_v4 }
 0x490   : > { %v931_v5 = vld [vmem:[#allocation3] sm:$0xff] }
 0x491   : > { %1260 = vrcp.f32 %v931_v5 }
 0x49e   : > { %v1261_v6 = vpop.eup %1260 }
 0x49f   : > { %936 = vperm.xlu1 %1239, %v1261_v6  }
 0x4a3   : > { %1241 = vset.pattern.permute.xlu1 %v1294_v63 }
 0x4a4   : > { %956 = vperm.xlu1 %1241, %v1261_v6  }
 0x4a6   : > { %v616_v8 = vpop.f32.mrf.mxu0 }
 0x4a7   : > { %623 = vrot.lane.b32.xlu0 %v616_v8, %s1292_s6 }
 0x4a8   : > { %1242 = vset.pattern.permute.xlu1 %v1295_v7  ;;  %v1171_v9 = vpop.f32.mrf.mxu0 }
 0x4a9   : > { %966 = vperm.xlu1 %1242, %v1261_v6  }
 0x4aa   : > { %v619_v10 = vpop.f32.mrf.mxu0 }
 0x4ac   : > { %v1172_v11 = vpop.f32.mrf.mxu0 }
 0x4b0   : > { %v765_v12 = vpop.f32.mrf.mxu0 }
 0x4b1   : > { %772 = vrot.lane.b32.xlu0 %v765_v12, %s1291_s5 }
 0x4b2   : > { %v1183_v13 = vpop.f32.mrf.mxu0 }
 0x4b4   : > { %v768_v14 = vpop.f32.mrf.mxu0 }
 0x4b5   : > { %866 = vperm.xlu0 %1238, %v1259_v62  }
 0x4b6   : > { %v1184_v16 = vpop.f32.mrf.mxu0 }
 0x4b9   : > { %1240 = vset.pattern.permute.xlu0 %v1293_v57 }
 0x4ba   : > { %v914_v63 = vpop.f32.mrf.mxu0 }
 0x4bb   : > { %921 = vrot.lane.b32.xlu0 %v914_v63, %s1290_s30 }
 0x4bc   : > { %v1195_v17 = vpop.f32.mrf.mxu0 }
 0x4be   : > { %v917_v18 = vpop.f32.mrf.mxu0 }
 0x4bf   : > { %946 = vperm.xlu0 %1240, %v1261_v6  }
 0x4c0   : > { %v1196_v19 = vpop.f32.mrf.mxu0 }
 0x4c3   : > { %1243 = vset.pattern.permute.xlu0 %v1295_v7 }
 0x519   : > { %v624_v23 = vpop.permute.xlu0 %623 }
 0x51a   : > { %v626_v24 = vadd.f32 %v624_v23, %v571_v22  ;;  %v937_v31 = vpop.permute.xlu1 %936 }
 0x51c   : > { %628 = vst.msk [vmem:[#allocation4] sm:$0xff] %vm627_vm9, %v626_v24 }
 0x51f   : > { %v957_v33 = vpop.permute.xlu1 %956 }
 0x523   : > { %v714_v21 = vld [vmem:[#allocation4] sm:$0xff]  ;;  %v773_v26 = vpop.permute.xlu0 %772 }
 0x524   : > { %v720_v57 = vmul.f32 %v718_v25, %v714_v21  ;;  %v967_v39 = vpop.permute.xlu1 %966 }
 0x526   : > { %v775_v27 = vadd.f32 %v773_v26, %v720_v57 }
 0x528   : > { %777 = vst.msk [vmem:[#allocation4] sm:$0xff] %vm776_vm10, %v775_v27 }
 0x52f   : > { %v863_v28 = vld [vmem:[#allocation4] sm:$0xff] }
 0x530   : > { %v867_v29 = vpop.permute.xlu0 %866 }
 0x531   : > { %v869_v30 = vmul.f32 %v867_v29, %v863_v28 }
 0x534   : > { %v922_v7 = vpop.permute.xlu0 %921 }
 0x535   : > { %v924_v32 = vadd.f32 %v922_v7, %v869_v30 }
 0x537   : > { %926 = vst.msk [vmem:[#allocation4] sm:$0xff] %vm925_vm11, %v924_v32 }
 0x53a   : > { %v947_v35 = vpop.permute.xlu0 %946 }
 0x53e   : > { %v933_v34 = vld [vmem:[#allocation4] sm:$0xff] }
 0x53f   : > { %v939_v36 = vmul.f32 %v937_v31, %v933_v34  ;;  %v949_v38 = vmul.f32 %v947_v35, %v933_v34  ;;  %v959_v37 = vmul.f32 %v957_v33, %v933_v34  ;;  %v969_v40 = vmul.f32 %v967_v39, %v933_v34 }
 0x541   : > { %940 = vst.msk [vmem:[%s326_s12] sm:$0xff] %vm343_vm1, %v939_v36 }
 0x542   : > { %950 = vst.msk [vmem:[%s326_s12] sm:$0xff] %vm627_vm9, %v949_v38 }
 0x543   : > { %960 = vst.msk [vmem:[%s326_s12] sm:$0xff] %vm776_vm10, %v959_v37 }
 0x544   : > { %970 = vst.msk [vmem:[%s326_s12] sm:$0xff] %vm925_vm11, %v969_v40 }
 0x545 PF: > { %s14_s17 = sadd.s32 1, %s1284_s17   ;;  %s1532_s15 = smov %s1280_s16 }
 0x546   : > { %p11_p5 = scmp.ge.s32.totalorder %s14_s17, 4   ;;  %s1533_s16 = smov %s1535_s18 }
 0x548   :  { %13 = sbr.rel (!%p11_p5) target bundleno = 2 (0x2), region = 83 }

</bundles_post_ra>
